<compile_context>
chip_gen: v7x
topology: tpu7x:2x2x1
jax: 0.10.0
libtpu: 0.0.40
codegen_flags: <defaults>
</compile_context>

<pallas_src>
import math
import jax
import jax.numpy as jnp
from jax.experimental import pallas as pl
from jax.experimental.pallas import tpu as pltpu

# ----------------------------- config ------------------------------------- #
EMBED_DIM   = 128          # embed_dim
IN_CHANNELS = 3
NUM_HEADS   = 4            # reference forward's SDPA is single-head over full dim
NUM_CLASSES = 1000
NUM_LAYERS  = 6            # params hold 6 layers, forward only uses layer 0
PATCH       = 4
MLP_RATIO   = 4.0
IMG         = 32           # linear_proj weight hard-codes 32x32 input
BATCH       = 2
LN_EPS      = 1e-5
SEQ         = 2            # [cls, projected-image]
HEAD_PAD    = 1024         # fc_out N=1000 zero-padded to lane-dense 1024
FF          = int(EMBED_DIM * MLP_RATIO)          # 512
SCALE       = 1.0 / math.sqrt(float(EMBED_DIM))
INV_SQRT2   = 1.0 / math.sqrt(2.0)

_VMEM = pl.BlockSpec(memory_space=pltpu.MemorySpace.VMEM)
_ANY  = pl.BlockSpec(memory_space=pl.ANY)


# --------------------------- fused Pallas kernel --------------------------- #
def _layernorm(x, gamma, beta):
    mu = jnp.mean(x, axis=-1, keepdims=True)
    var = jnp.mean(jnp.square(x - mu), axis=-1, keepdims=True)
    return (x - mu) * jax.lax.rsqrt(var + LN_EPS) * gamma + beta


def _cvt_kernel(x_ref, wproj_ref, wqkv_ref, wo_ref, vecs_ref,
                w1_hbm, w2_hbm, wfc_hbm,
                o_ref,
                w1_buf, w2_buf, wfc_buf, dma_sem):
    B = x_ref.shape[0]
    E = EMBED_DIM
    S2 = SEQ * B

    # ---- kick off tail-weight DMAs; they overlap with all compute below ----
    cp_w1 = pltpu.make_async_copy(w1_hbm, w1_buf, dma_sem.at[0]);  cp_w1.start()
    cp_w2 = pltpu.make_async_copy(w2_hbm, w2_buf, dma_sem.at[1]);  cp_w2.start()
    cp_fc = pltpu.make_async_copy(wfc_hbm, wfc_buf, dma_sem.at[2]); cp_fc.start()

    # ---- packed small vectors (single DMA'd (11, 1024) array) ----
    bproj = vecs_ref[0:1, 0:E]
    cls   = vecs_ref[1:2, 0:E]
    bqkv  = vecs_ref[2:3, 0:3 * E]
    bo    = vecs_ref[3:4, 0:E]
    b1    = vecs_ref[4:5, 0:FF]
    b2    = vecs_ref[5:6, 0:E]
    g1    = vecs_ref[6:7, 0:E]
    be1   = vecs_ref[7:8, 0:E]
    g2    = vecs_ref[8:9, 0:E]
    be2   = vecs_ref[9:10, 0:E]
    bfc   = vecs_ref[10:11, :]

    # ---- folded (patch-embed conv ∘ flatten ∘ linear_proj): (B, 3072)@(3072, E) ----
    xp = (jnp.dot(x_ref[...], wproj_ref[...],
                  preferred_element_type=jnp.float32) + bproj)                # (B, E)

    # ---- token matrix (2B, E), s-major rows: [cls]*B then [img]*B ----
    seq = jnp.concatenate([jnp.broadcast_to(cls, (B, E)), xp], axis=0)        # (2B, E)

    # ---- single-head SDPA over full embed dim (matches F.sdpa on (B,S,E)) ----
    qkv = jnp.dot(seq, wqkv_ref[...], preferred_element_type=jnp.float32) + bqkv
    q = qkv[:, 0 * E:1 * E]
    k = qkv[:, 1 * E:2 * E]
    v = qkv[:, 2 * E:3 * E]
    s = jax.lax.dot_general(q, k, (((1,), (1,)), ((), ())),
                            preferred_element_type=jnp.float32)               # (2B, 2B)
    # block-diagonal (same-batch) mask built in-registers: row%B == col%B
    row = jax.lax.broadcasted_iota(jnp.int32, (S2, S2), 0)
    col = jax.lax.broadcasted_iota(jnp.int32, (S2, S2), 1)
    same = (row % B) == (col % B)
    s = jnp.where(same, s * SCALE, -1e30)
    s = s - jnp.max(s, axis=-1, keepdims=True)
    p = jnp.exp(s)
    p = p * pl.reciprocal(jnp.sum(p, axis=-1, keepdims=True), approx=True)
    attn = jnp.dot(p, v, preferred_element_type=jnp.float32)                  # (2B, E)
    attn = jnp.dot(attn, wo_ref[...], preferred_element_type=jnp.float32) + bo

    # ---- residual + norm1 (post-norm, as in the reference fn) ----
    x1 = _layernorm(seq + attn, g1, be1)

    # ---- MLP: linear1 -> exact GELU -> linear2 (weights arrive via async DMA) ----
    cp_w1.wait()
    h = jnp.dot(x1, w1_buf[...], preferred_element_type=jnp.float32) + b1
    h = 0.5 * h * (1.0 + jax.lax.erf(h * INV_SQRT2))
    cp_w2.wait()
    ff = jnp.dot(h, w2_buf[...], preferred_element_type=jnp.float32) + b2

    # ---- residual + norm2 ----
    x2 = _layernorm(x1 + ff, g2, be2)

    # ---- classifier head on cls rows; N padded to 1024 for lane-dense stores ----
    cls_out = x2[0:B, :]
    cp_fc.wait()
    o_ref[...] = (jnp.dot(cls_out, wfc_buf[...], preferred_element_type=jnp.float32)
                  + bfc).astype(o_ref.dtype)


# --------------------- one-time parameter repacking ------------------------ #
def prepare_params(params):
    """Runs ONCE (outside the per-forward path).
    * Folds conv1 ∘ flatten ∘ linear_proj into a single (3072, E) weight whose
      row order matches the contiguous NCHW flatten x.reshape(B, -1)
      (so no per-forward transpose is needed).
    * Pre-transposes every weight into (K, N) kernel layout.
    * Pads the classifier head to a lane-dense width (1000 -> 1024).
    * Packs every small vector into one (11, 1024) array -> a single DMA."""
    E, C, P = EMBED_DIM, IN_CHANNELS, PATCH
    Hp = Wp = IMG // P
    i = 0

    convw = params['conv1_weight']                                 # [e, c, p, q]
    lp = params['linear_proj_weight'].reshape(E, E, Hp, Wp)        # [n, e, h, w]
    # W[c,h,p,w,q, n] = sum_e convw[e,c,p,q] * lp[n,e,h,w]
    # row flat-order (c, h, p, w, q) == flat index of x[b, c, h*P+p, w*P+q]
    wproj = jnp.einsum('ecpq,nehw->chpwqn', convw, lp).reshape(C * IMG * IMG, E)
    bproj = (params['linear_proj_bias']
             + jnp.einsum('e,nehw->n', params['conv1_bias'], lp))             # (E,)

    wfc = jnp.zeros((E, HEAD_PAD), jnp.float32).at[:, :NUM_CLASSES].set(
        params['fc_out_weight'].T)

    vecs = jnp.zeros((11, HEAD_PAD), jnp.float32)
    vecs = vecs.at[0, :E].set(bproj)
    vecs = vecs.at[1, :E].set(params['cls_token'].reshape(E))
    vecs = vecs.at[2, :3 * E].set(params['transformer_layers_self_attn_in_proj_bias'][i])
    vecs = vecs.at[3, :E].set(params['transformer_layers_self_attn_out_proj_bias'][i])
    vecs = vecs.at[4, :FF].set(params['transformer_layers_linear1_bias'][i])
    vecs = vecs.at[5, :E].set(params['transformer_layers_linear2_bias'][i])
    vecs = vecs.at[6, :E].set(params['transformer_layers_norm1_weight'][i])
    vecs = vecs.at[7, :E].set(params['transformer_layers_norm1_bias'][i])
    vecs = vecs.at[8, :E].set(params['transformer_layers_norm2_weight'][i])
    vecs = vecs.at[9, :E].set(params['transformer_layers_norm2_bias'][i])
    vecs = vecs.at[10, :NUM_CLASSES].set(params['fc_out_bias'])

    prep = {
        'wproj': wproj,                                                        # (3072, E)
        'wqkv': params['transformer_layers_self_attn_in_proj_weight'][i].T,   # (E, 3E)
        'wo': params['transformer_layers_self_attn_out_proj_weight'][i].T,    # (E, E)
        'w1': params['transformer_layers_linear1_weight'][i].T,               # (E, FF)
        'w2': params['transformer_layers_linear2_weight'][i].T,               # (FF, E)
        'wfc': wfc,                                                           # (E, 1024)
        'vecs': vecs,                                                         # (11, 1024)
    }
    # TODO(synk): optionally cast the large weights to bf16 here (f32 accumulation
    # in-kernel) to halve HBM bytes on v5e/v6e if a ~1e-2 tolerance is acceptable.
    return {k: jnp.asarray(v, jnp.float32) for k, v in prep.items()}


# ----------------------------- forward pass -------------------------------- #
@jax.jit
def cvt_forward(x, prep):
    """x: (B, C, 32, 32) f32, prep: output of prepare_params -> logits (B, 1000)."""
    B = x.shape[0]
    # Contiguous NCHW flatten; the patch permutation lives in wproj's row order.
    x2d = x.reshape(B, -1)                                                    # (B, 3072)

    logits = pl.pallas_call(
        _cvt_kernel,
        out_shape=jax.ShapeDtypeStruct((B, HEAD_PAD), jnp.float32),
        in_specs=[_VMEM, _VMEM, _VMEM, _VMEM, _VMEM, _ANY, _ANY, _ANY],
        out_specs=_VMEM,
        scratch_shapes=[
            pltpu.VMEM((EMBED_DIM, FF), jnp.float32),        # w1 buffer
            pltpu.VMEM((FF, EMBED_DIM), jnp.float32),        # w2 buffer
            pltpu.VMEM((EMBED_DIM, HEAD_PAD), jnp.float32),  # wfc buffer
            pltpu.SemaphoreType.DMA((3,)),
        ],
    )(x2d, prep['wproj'], prep['wqkv'], prep['wo'], prep['vecs'],
      prep['w1'], prep['w2'], prep['wfc'])
    return logits[:, :NUM_CLASSES]


# --------------------------- parameter init -------------------------------- #
def _kaiming_uniform(key, shape, fan_in, gain=1.0):
    bound = gain * math.sqrt(3.0 / fan_in)
    return jax.random.uniform(key, shape, jnp.float32, -bound, bound)


def _xavier_uniform(key, shape, fan_in, fan_out):
    bound = math.sqrt(6.0 / (fan_in + fan_out))
    return jax.random.uniform(key, shape, jnp.float32, -bound, bound)


def init_params(key):
    ks = jax.random.split(key, 16)
    E, C, P, L = EMBED_DIM, IN_CHANNELS, PATCH, NUM_LAYERS
    ff = FF
    proj_in = E * (32 // P) * (32 // P)
    params = {
        'conv1_weight': _kaiming_uniform(ks[0], (E, C, P, P), fan_in=C * P * P),
        'conv1_bias': jnp.zeros((E,), jnp.float32),
        'linear_proj_weight': _kaiming_uniform(ks[1], (E, proj_in), fan_in=proj_in),
        'linear_proj_bias': jnp.zeros((E,), jnp.float32),
        'cls_token': 0.02 * jax.random.normal(ks[2], (1, 1, E), jnp.float32),
        'transformer_layers_self_attn_in_proj_weight':
            _xavier_uniform(ks[3], (L, 3 * E, E), fan_in=E, fan_out=3 * E),
        'transformer_layers_self_attn_in_proj_bias': jnp.zeros((L, 3 * E), jnp.float32),
        'transformer_layers_self_attn_out_proj_weight':
            _xavier_uniform(ks[4], (L, E, E), fan_in=E, fan_out=E),
        'transformer_layers_self_attn_out_proj_bias': jnp.zeros((L, E), jnp.float32),
        'transformer_layers_linear1_weight':
            _kaiming_uniform(ks[5], (L, ff, E), fan_in=E, gain=math.sqrt(2.0)),
        'transformer_layers_linear1_bias': jnp.zeros((L, ff), jnp.float32),
        'transformer_layers_linear2_weight':
            _kaiming_uniform(ks[6], (L, E, ff), fan_in=ff),
        'transformer_layers_linear2_bias': jnp.zeros((L, E), jnp.float32),
        'transformer_layers_norm1_weight': jnp.ones((L, E), jnp.float32),
        'transformer_layers_norm1_bias': jnp.zeros((L, E), jnp.float32),
        'transformer_layers_norm2_weight': jnp.ones((L, E), jnp.float32),
        'transformer_layers_norm2_bias': jnp.zeros((L, E), jnp.float32),
        'fc_out_weight': _kaiming_uniform(ks[7], (NUM_CLASSES, E), fan_in=E),
        'fc_out_bias': jnp.zeros((NUM_CLASSES,), jnp.float32),
    }
    return params


# ------------------------- pure-JAX reference ------------------------------ #
def jax_reference(x, params):
    B = x.shape[0]
    E = EMBED_DIM
    y = jax.lax.conv_general_dilated(
        x, params['conv1_weight'], window_strides=(PATCH, PATCH), padding='VALID',
        dimension_numbers=('NCHW', 'OIHW', 'NCHW'))
    y = y + params['conv1_bias'][None, :, None, None]
    y = y.reshape(B, -1)
    y = y @ params['linear_proj_weight'].T + params['linear_proj_bias']
    cls = jnp.broadcast_to(params['cls_token'], (B, 1, E))
    s = jnp.concatenate([cls, y[:, None, :]], axis=1)

    i = 0
    w_in = params['transformer_layers_self_attn_in_proj_weight'][i]
    b_in = params['transformer_layers_self_attn_in_proj_bias'][i]
    qkv = s @ w_in.T + b_in
    q, k, v = qkv[..., :E], qkv[..., E:2 * E], qkv[..., 2 * E:]
    att = jax.nn.softmax(jnp.einsum('bqd,bkd->bqk', q, k) / math.sqrt(E), axis=-1)
    a = jnp.einsum('bqk,bkd->bqd', att, v)
    a = a @ params['transformer_layers_self_attn_out_proj_weight'][i].T + \
        params['transformer_layers_self_attn_out_proj_bias'][i]

    def ln(z, g, b):
        mu = jnp.mean(z, -1, keepdims=True)
        var = jnp.mean((z - mu) ** 2, -1, keepdims=True)
        return (z - mu) / jnp.sqrt(var + LN_EPS) * g + b

    s = ln(s + a, params['transformer_layers_norm1_weight'][i],
           params['transformer_layers_norm1_bias'][i])
    h = s @ params['transformer_layers_linear1_weight'][i].T + \
        params['transformer_layers_linear1_bias'][i]
    h = jax.nn.gelu(h, approximate=False)
    f = h @ params['transformer_layers_linear2_weight'][i].T + \
        params['transformer_layers_linear2_bias'][i]
    s = ln(s + f, params['transformer_layers_norm2_weight'][i],
           params['transformer_layers_norm2_bias'][i])
    return s[:, 0] @ params['fc_out_weight'].T + params['fc_out_bias']


# --------------------------------- main ------------------------------------ #
if __name__ == "__main__":
    key = jax.random.PRNGKey(0)
    kx, kp = jax.random.split(key)
    x = jax.random.normal(kx, (BATCH, IN_CHANNELS, IMG, IMG), jnp.float32)
    params = init_params(kp)
    prep = prepare_params(params)      # one-time weight repack (not per-forward)

    out = jax.block_until_ready(cvt_forward(x, prep))
    ref = jax.block_until_ready(jax_reference(x, params))

    assert out.shape == (BATCH, NUM_CLASSES), out.shape
    assert bool(jnp.all(jnp.isfinite(out)))
    assert bool(jnp.allclose(out, ref, atol=1e-3, rtol=1e-3)), \
        float(jnp.max(jnp.abs(out - ref)))
    print("KERNEL_OK")
</pallas_src>

<mosaic_0001>
module attributes {stable_mosaic.version = 11 : i64} {
  func.func @_cvt_kernel(%arg0: memref<2x3072xf32, #tpu.memory_space<vmem>>, %arg1: memref<3072x128xf32, #tpu.memory_space<vmem>>, %arg2: memref<128x384xf32, #tpu.memory_space<vmem>>, %arg3: memref<128x128xf32, #tpu.memory_space<vmem>>, %arg4: memref<11x1024xf32, #tpu.memory_space<vmem>>, %arg5: memref<128x512xf32, #tpu.memory_space<any>>, %arg6: memref<512x128xf32, #tpu.memory_space<any>>, %arg7: memref<128x1024xf32, #tpu.memory_space<any>>, %arg8: memref<2x1024xf32, #tpu.memory_space<vmem>>, %arg9: memref<128x512xf32, #tpu.memory_space<vmem>>, %arg10: memref<512x128xf32, #tpu.memory_space<vmem>>, %arg11: memref<128x1024xf32, #tpu.memory_space<vmem>>, %arg12: memref<3x!tpu.dma_semaphore, #tpu.memory_space<semaphore_mem>>) attributes {dimension_semantics = [], scalar_prefetch = 0 : i64, scratch_operands = 4 : i64, tpu.core_type = #tpu.core_type<tc>} {
    %c0_i32 = arith.constant 0 : i32
    %0 = tpu.memref_slice %arg12[%c0_i32] : memref<3x!tpu.dma_semaphore, #tpu.memory_space<semaphore_mem>> -> memref<1x!tpu.dma_semaphore, #tpu.memory_space<semaphore_mem>>
    %1 = tpu.memref_squeeze %0 : memref<1x!tpu.dma_semaphore, #tpu.memory_space<semaphore_mem>> -> memref<!tpu.dma_semaphore, #tpu.memory_space<semaphore_mem>>
    tpu.enqueue_dma source(%arg5 : memref<128x512xf32, #tpu.memory_space<any>>) target(%arg9 : memref<128x512xf32, #tpu.memory_space<vmem>>) target_semaphore(%1 : memref<!tpu.dma_semaphore, #tpu.memory_space<semaphore_mem>>)
    %c1_i32 = arith.constant 1 : i32
    %2 = tpu.memref_slice %arg12[%c1_i32] : memref<3x!tpu.dma_semaphore, #tpu.memory_space<semaphore_mem>> -> memref<1x!tpu.dma_semaphore, #tpu.memory_space<semaphore_mem>>
    %3 = tpu.memref_squeeze %2 : memref<1x!tpu.dma_semaphore, #tpu.memory_space<semaphore_mem>> -> memref<!tpu.dma_semaphore, #tpu.memory_space<semaphore_mem>>
    tpu.enqueue_dma source(%arg6 : memref<512x128xf32, #tpu.memory_space<any>>) target(%arg10 : memref<512x128xf32, #tpu.memory_space<vmem>>) target_semaphore(%3 : memref<!tpu.dma_semaphore, #tpu.memory_space<semaphore_mem>>)
    %c2_i32 = arith.constant 2 : i32
    %4 = tpu.memref_slice %arg12[%c2_i32] : memref<3x!tpu.dma_semaphore, #tpu.memory_space<semaphore_mem>> -> memref<1x!tpu.dma_semaphore, #tpu.memory_space<semaphore_mem>>
    %5 = tpu.memref_squeeze %4 : memref<1x!tpu.dma_semaphore, #tpu.memory_space<semaphore_mem>> -> memref<!tpu.dma_semaphore, #tpu.memory_space<semaphore_mem>>
    tpu.enqueue_dma source(%arg7 : memref<128x1024xf32, #tpu.memory_space<any>>) target(%arg11 : memref<128x1024xf32, #tpu.memory_space<vmem>>) target_semaphore(%5 : memref<!tpu.dma_semaphore, #tpu.memory_space<semaphore_mem>>)
    %c0 = arith.constant 0 : index
    %c0_0 = arith.constant 0 : index
    %6 = vector.load %arg4[%c0, %c0_0] : memref<11x1024xf32, #tpu.memory_space<vmem>>, vector<1x128xf32>
    %c1 = arith.constant 1 : index
    %c0_1 = arith.constant 0 : index
    %7 = vector.load %arg4[%c1, %c0_1] : memref<11x1024xf32, #tpu.memory_space<vmem>>, vector<1x128xf32>
    %c2 = arith.constant 2 : index
    %c0_2 = arith.constant 0 : index
    %8 = vector.load %arg4[%c2, %c0_2] : memref<11x1024xf32, #tpu.memory_space<vmem>>, vector<1x384xf32>
    %c3 = arith.constant 3 : index
    %c0_3 = arith.constant 0 : index
    %9 = vector.load %arg4[%c3, %c0_3] : memref<11x1024xf32, #tpu.memory_space<vmem>>, vector<1x128xf32>
    %c4 = arith.constant 4 : index
    %c0_4 = arith.constant 0 : index
    %10 = vector.load %arg4[%c4, %c0_4] : memref<11x1024xf32, #tpu.memory_space<vmem>>, vector<1x512xf32>
    %c5 = arith.constant 5 : index
    %c0_5 = arith.constant 0 : index
    %11 = vector.load %arg4[%c5, %c0_5] : memref<11x1024xf32, #tpu.memory_space<vmem>>, vector<1x128xf32>
    %c6 = arith.constant 6 : index
    %c0_6 = arith.constant 0 : index
    %12 = vector.load %arg4[%c6, %c0_6] : memref<11x1024xf32, #tpu.memory_space<vmem>>, vector<1x128xf32>
    %c7 = arith.constant 7 : index
    %c0_7 = arith.constant 0 : index
    %13 = vector.load %arg4[%c7, %c0_7] : memref<11x1024xf32, #tpu.memory_space<vmem>>, vector<1x128xf32>
    %c8 = arith.constant 8 : index
    %c0_8 = arith.constant 0 : index
    %14 = vector.load %arg4[%c8, %c0_8] : memref<11x1024xf32, #tpu.memory_space<vmem>>, vector<1x128xf32>
    %c9 = arith.constant 9 : index
    %c0_9 = arith.constant 0 : index
    %15 = vector.load %arg4[%c9, %c0_9] : memref<11x1024xf32, #tpu.memory_space<vmem>>, vector<1x128xf32>
    %c10 = arith.constant 10 : index
    %c0_10 = arith.constant 0 : index
    %16 = vector.load %arg4[%c10, %c0_10] : memref<11x1024xf32, #tpu.memory_space<vmem>>, vector<1x1024xf32>
    %c0_11 = arith.constant 0 : index
    %c0_12 = arith.constant 0 : index
    %17 = vector.load %arg0[%c0_11, %c0_12] : memref<2x3072xf32, #tpu.memory_space<vmem>>, vector<2x3072xf32>
    %c0_13 = arith.constant 0 : index
    %c0_14 = arith.constant 0 : index
    %18 = vector.load %arg1[%c0_13, %c0_14] : memref<3072x128xf32, #tpu.memory_space<vmem>>, vector<3072x128xf32>
    %cst = arith.constant dense<0.000000e+00> : vector<2x128xf32>
    %19 = tpu.matmul %17, %18, %cst {dimension_numbers = #tpu.dot_dimension_numbers<[1], [0], [0], [1], [0, 0, 1, 1], [], []>} : vector<2x3072xf32>, vector<3072x128xf32>, vector<2x128xf32> -> vector<2x128xf32>
    %20 = vector.broadcast %6 : vector<1x128xf32> to vector<2x128xf32>
    %21 = arith.addf %19, %20 : vector<2x128xf32>
    %22 = vector.shape_cast %7 : vector<1x128xf32> to vector<1x128xf32>
    %23 = vector.broadcast %22 : vector<1x128xf32> to vector<2x128xf32>
    %24 = tpu.concatenate %23, %21 in 0 : vector<2x128xf32>, vector<2x128xf32> -> vector<4x128xf32>
    %c0_15 = arith.constant 0 : index
    %c0_16 = arith.constant 0 : index
    %25 = vector.load %arg2[%c0_15, %c0_16] : memref<128x384xf32, #tpu.memory_space<vmem>>, vector<128x384xf32>
    %cst_17 = arith.constant dense<0.000000e+00> : vector<4x384xf32>
    %26 = tpu.matmul %24, %25, %cst_17 {dimension_numbers = #tpu.dot_dimension_numbers<[1], [0], [0], [1], [0, 0, 1, 1], [], []>} : vector<4x128xf32>, vector<128x384xf32>, vector<4x384xf32> -> vector<4x384xf32>
    %27 = vector.broadcast %8 : vector<1x384xf32> to vector<4x384xf32>
    %28 = arith.addf %26, %27 : vector<4x384xf32>
    %29 = vector.extract_strided_slice %28 {offsets = [0, 0], sizes = [4, 128], strides = [1, 1]} : vector<4x384xf32> to vector<4x128xf32>
    %30 = vector.extract_strided_slice %28 {offsets = [0, 128], sizes = [4, 128], strides = [1, 1]} : vector<4x384xf32> to vector<4x128xf32>
    %31 = vector.extract_strided_slice %28 {offsets = [0, 256], sizes = [4, 128], strides = [1, 1]} : vector<4x384xf32> to vector<4x128xf32>
    %cst_18 = arith.constant dense<0.000000e+00> : vector<4x4xf32>
    %32 = tpu.matmul %29, %30, %cst_18 {dimension_numbers = #tpu.dot_dimension_numbers<[1], [1], [0], [0], [0, 0, 1, 0], [], []>} : vector<4x128xf32>, vector<4x128xf32>, vector<4x4xf32> -> vector<4x4xf32>
    %33 = tpu.iota {dimensions = array<i32: 0>} : vector<4x4xi32>
    %34 = tpu.iota {dimensions = array<i32: 1>} : vector<4x4xi32>
    %c2_i32_19 = arith.constant 2 : i32
    %c0_i32_20 = arith.constant 0 : i32
    %35 = arith.cmpi eq, %c2_i32_19, %c0_i32_20 : i32
    %c1_i32_21 = arith.constant 1 : i32
    %36 = arith.select %35, %c1_i32_21, %c2_i32_19 : i32
    %37 = vector.broadcast %36 : i32 to vector<4x4xi32>
    %38 = arith.remsi %33, %37 : vector<4x4xi32>
    %c0_i32_22 = arith.constant 0 : i32
    %39 = vector.broadcast %c0_i32_22 : i32 to vector<4x4xi32>
    %40 = arith.cmpi ne, %38, %39 : vector<4x4xi32>
    %c0_i32_23 = arith.constant 0 : i32
    %41 = vector.broadcast %c0_i32_23 : i32 to vector<4x4xi32>
    %42 = arith.cmpi slt, %38, %41 : vector<4x4xi32>
    %c0_i32_24 = arith.constant 0 : i32
    %43 = arith.cmpi slt, %36, %c0_i32_24 : i32
    %44 = vector.broadcast %43 : i1 to vector<4x4xi1>
    %45 = vector.broadcast %44 : vector<4x4xi1> to vector<4x4xi1>
    %46 = arith.xori %42, %45 : vector<4x4xi1>
    %47 = arith.andi %46, %40 : vector<4x4xi1>
    %48 = vector.broadcast %36 : i32 to vector<4x4xi32>
    %49 = arith.addi %38, %48 : vector<4x4xi32>
    %50 = arith.select %47, %49, %38 : vector<4x4xi1>, vector<4x4xi32>
    %c2_i32_25 = arith.constant 2 : i32
    %c0_i32_26 = arith.constant 0 : i32
    %51 = arith.cmpi eq, %c2_i32_25, %c0_i32_26 : i32
    %c1_i32_27 = arith.constant 1 : i32
    %52 = arith.select %51, %c1_i32_27, %c2_i32_25 : i32
    %53 = vector.broadcast %52 : i32 to vector<4x4xi32>
    %54 = arith.remsi %34, %53 : vector<4x4xi32>
    %c0_i32_28 = arith.constant 0 : i32
    %55 = vector.broadcast %c0_i32_28 : i32 to vector<4x4xi32>
    %56 = arith.cmpi ne, %54, %55 : vector<4x4xi32>
    %c0_i32_29 = arith.constant 0 : i32
    %57 = vector.broadcast %c0_i32_29 : i32 to vector<4x4xi32>
    %58 = arith.cmpi slt, %54, %57 : vector<4x4xi32>
    %c0_i32_30 = arith.constant 0 : i32
    %59 = arith.cmpi slt, %52, %c0_i32_30 : i32
    %60 = vector.broadcast %59 : i1 to vector<4x4xi1>
    %61 = vector.broadcast %60 : vector<4x4xi1> to vector<4x4xi1>
    %62 = arith.xori %58, %61 : vector<4x4xi1>
    %63 = arith.andi %62, %56 : vector<4x4xi1>
    %64 = vector.broadcast %52 : i32 to vector<4x4xi32>
    %65 = arith.addi %54, %64 : vector<4x4xi32>
    %66 = arith.select %63, %65, %54 : vector<4x4xi1>, vector<4x4xi32>
    %67 = arith.cmpi eq, %50, %66 : vector<4x4xi32>
    %cst_31 = arith.constant 0.0883883461 : f32
    %68 = vector.broadcast %cst_31 : f32 to vector<4x4xf32>
    %69 = arith.mulf %32, %68 : vector<4x4xf32>
    %cst_32 = arith.constant -1.000000e+30 : f32
    %70 = vector.broadcast %cst_32 : f32 to vector<4x4xf32>
    %71 = arith.select %67, %69, %70 : vector<4x4xi1>, vector<4x4xf32>
    %cst_33 = arith.constant dense<0xFF800000> : vector<4xf32>
    %72 = vector.multi_reduction <maximumf>, %71, %cst_33 [1] : vector<4x4xf32> to vector<4xf32>
    %73 = vector.shape_cast %72 : vector<4xf32> to vector<4x1xf32>
    %74 = vector.broadcast %73 : vector<4x1xf32> to vector<4x4xf32>
    %75 = arith.subf %71, %74 : vector<4x4xf32>
    %76 = math.exp %75 : vector<4x4xf32>
    %cst_34 = arith.constant dense<0.000000e+00> : vector<4xf32>
    %77 = vector.multi_reduction <add>, %76, %cst_34 [1] : vector<4x4xf32> to vector<4xf32>
    %78 = vector.shape_cast %77 : vector<4xf32> to vector<4x1xf32>
    %79 = tpu.reciprocal %78 {approx = true} : vector<4x1xf32> -> vector<4x1xf32>
    %80 = vector.broadcast %79 : vector<4x1xf32> to vector<4x4xf32>
    %81 = arith.mulf %76, %80 : vector<4x4xf32>
    %cst_35 = arith.constant dense<0.000000e+00> : vector<4x128xf32>
    %82 = tpu.matmul %81, %31, %cst_35 {dimension_numbers = #tpu.dot_dimension_numbers<[1], [0], [0], [1], [0, 0, 1, 1], [], []>} : vector<4x4xf32>, vector<4x128xf32>, vector<4x128xf32> -> vector<4x128xf32>
    %c0_36 = arith.constant 0 : index
    %c0_37 = arith.constant 0 : index
    %83 = vector.load %arg3[%c0_36, %c0_37] : memref<128x128xf32, #tpu.memory_space<vmem>>, vector<128x128xf32>
    %cst_38 = arith.constant dense<0.000000e+00> : vector<4x128xf32>
    %84 = tpu.matmul %82, %83, %cst_38 {dimension_numbers = #tpu.dot_dimension_numbers<[1], [0], [0], [1], [0, 0, 1, 1], [], []>} : vector<4x128xf32>, vector<128x128xf32>, vector<4x128xf32> -> vector<4x128xf32>
    %85 = vector.broadcast %9 : vector<1x128xf32> to vector<4x128xf32>
    %86 = arith.addf %84, %85 : vector<4x128xf32>
    %87 = arith.addf %24, %86 : vector<4x128xf32>
    %cst_39 = arith.constant dense<0.000000e+00> : vector<4xf32>
    %88 = vector.multi_reduction <add>, %87, %cst_39 [1] : vector<4x128xf32> to vector<4xf32>
    %89 = vector.shape_cast %88 : vector<4xf32> to vector<4x1xf32>
    %cst_40 = arith.constant 1.280000e+02 : f32
    %90 = vector.broadcast %cst_40 : f32 to vector<4x1xf32>
    %91 = arith.divf %89, %90 : vector<4x1xf32>
    %92 = vector.broadcast %91 : vector<4x1xf32> to vector<4x128xf32>
    %93 = arith.subf %87, %92 : vector<4x128xf32>
    %94 = arith.mulf %93, %93 : vector<4x128xf32>
    %cst_41 = arith.constant dense<0.000000e+00> : vector<4xf32>
    %95 = vector.multi_reduction <add>, %94, %cst_41 [1] : vector<4x128xf32> to vector<4xf32>
    %96 = vector.shape_cast %95 : vector<4xf32> to vector<4x1xf32>
    %cst_42 = arith.constant 1.280000e+02 : f32
    %97 = vector.broadcast %cst_42 : f32 to vector<4x1xf32>
    %98 = arith.divf %96, %97 : vector<4x1xf32>
    %99 = vector.broadcast %91 : vector<4x1xf32> to vector<4x128xf32>
    %100 = arith.subf %87, %99 : vector<4x128xf32>
    %cst_43 = arith.constant 9.99999974E-6 : f32
    %101 = vector.broadcast %cst_43 : f32 to vector<4x1xf32>
    %102 = arith.addf %98, %101 : vector<4x1xf32>
    %103 = math.rsqrt %102 : vector<4x1xf32>
    %104 = vector.broadcast %103 : vector<4x1xf32> to vector<4x128xf32>
    %105 = arith.mulf %100, %104 : vector<4x128xf32>
    %106 = vector.broadcast %12 : vector<1x128xf32> to vector<4x128xf32>
    %107 = arith.mulf %105, %106 : vector<4x128xf32>
    %108 = vector.broadcast %13 : vector<1x128xf32> to vector<4x128xf32>
    %109 = arith.addf %107, %108 : vector<4x128xf32>
    %c0_i32_44 = arith.constant 0 : i32
    %110 = tpu.memref_slice %arg12[%c0_i32_44] : memref<3x!tpu.dma_semaphore, #tpu.memory_space<semaphore_mem>> -> memref<1x!tpu.dma_semaphore, #tpu.memory_space<semaphore_mem>>
    %111 = tpu.memref_squeeze %110 : memref<1x!tpu.dma_semaphore, #tpu.memory_space<semaphore_mem>> -> memref<!tpu.dma_semaphore, #tpu.memory_space<semaphore_mem>>
    tpu.wait_dma2 semaphore(%111 : memref<!tpu.dma_semaphore, #tpu.memory_space<semaphore_mem>>) src(%arg5 : memref<128x512xf32, #tpu.memory_space<any>>) dst(%arg9 : memref<128x512xf32, #tpu.memory_space<vmem>>)
    %c0_45 = arith.constant 0 : index
    %c0_46 = arith.constant 0 : index
    %112 = vector.load %arg9[%c0_45, %c0_46] : memref<128x512xf32, #tpu.memory_space<vmem>>, vector<128x512xf32>
    %cst_47 = arith.constant dense<0.000000e+00> : vector<4x512xf32>
    %113 = tpu.matmul %109, %112, %cst_47 {dimension_numbers = #tpu.dot_dimension_numbers<[1], [0], [0], [1], [0, 0, 1, 1], [], []>} : vector<4x128xf32>, vector<128x512xf32>, vector<4x512xf32> -> vector<4x512xf32>
    %114 = vector.broadcast %10 : vector<1x512xf32> to vector<4x512xf32>
    %115 = arith.addf %113, %114 : vector<4x512xf32>
    %cst_48 = arith.constant 5.000000e-01 : f32
    %116 = vector.broadcast %cst_48 : f32 to vector<4x512xf32>
    %117 = arith.mulf %116, %115 : vector<4x512xf32>
    %cst_49 = arith.constant 0.707106769 : f32
    %118 = vector.broadcast %cst_49 : f32 to vector<4x512xf32>
    %119 = arith.mulf %115, %118 : vector<4x512xf32>
    %120 = math.erf %119 : vector<4x512xf32>
    %cst_50 = arith.constant 1.000000e+00 : f32
    %121 = vector.broadcast %cst_50 : f32 to vector<4x512xf32>
    %122 = arith.addf %121, %120 : vector<4x512xf32>
    %123 = arith.mulf %117, %122 : vector<4x512xf32>
    %c1_i32_51 = arith.constant 1 : i32
    %124 = tpu.memref_slice %arg12[%c1_i32_51] : memref<3x!tpu.dma_semaphore, #tpu.memory_space<semaphore_mem>> -> memref<1x!tpu.dma_semaphore, #tpu.memory_space<semaphore_mem>>
    %125 = tpu.memref_squeeze %124 : memref<1x!tpu.dma_semaphore, #tpu.memory_space<semaphore_mem>> -> memref<!tpu.dma_semaphore, #tpu.memory_space<semaphore_mem>>
    tpu.wait_dma2 semaphore(%125 : memref<!tpu.dma_semaphore, #tpu.memory_space<semaphore_mem>>) src(%arg6 : memref<512x128xf32, #tpu.memory_space<any>>) dst(%arg10 : memref<512x128xf32, #tpu.memory_space<vmem>>)
    %c0_52 = arith.constant 0 : index
    %c0_53 = arith.constant 0 : index
    %126 = vector.load %arg10[%c0_52, %c0_53] : memref<512x128xf32, #tpu.memory_space<vmem>>, vector<512x128xf32>
    %cst_54 = arith.constant dense<0.000000e+00> : vector<4x128xf32>
    %127 = tpu.matmul %123, %126, %cst_54 {dimension_numbers = #tpu.dot_dimension_numbers<[1], [0], [0], [1], [0, 0, 1, 1], [], []>} : vector<4x512xf32>, vector<512x128xf32>, vector<4x128xf32> -> vector<4x128xf32>
    %128 = vector.broadcast %11 : vector<1x128xf32> to vector<4x128xf32>
    %129 = arith.addf %127, %128 : vector<4x128xf32>
    %130 = arith.addf %109, %129 : vector<4x128xf32>
    %cst_55 = arith.constant dense<0.000000e+00> : vector<4xf32>
    %131 = vector.multi_reduction <add>, %130, %cst_55 [1] : vector<4x128xf32> to vector<4xf32>
    %132 = vector.shape_cast %131 : vector<4xf32> to vector<4x1xf32>
    %cst_56 = arith.constant 1.280000e+02 : f32
    %133 = vector.broadcast %cst_56 : f32 to vector<4x1xf32>
    %134 = arith.divf %132, %133 : vector<4x1xf32>
    %135 = vector.broadcast %134 : vector<4x1xf32> to vector<4x128xf32>
    %136 = arith.subf %130, %135 : vector<4x128xf32>
    %137 = arith.mulf %136, %136 : vector<4x128xf32>
    %cst_57 = arith.constant dense<0.000000e+00> : vector<4xf32>
    %138 = vector.multi_reduction <add>, %137, %cst_57 [1] : vector<4x128xf32> to vector<4xf32>
    %139 = vector.shape_cast %138 : vector<4xf32> to vector<4x1xf32>
    %cst_58 = arith.constant 1.280000e+02 : f32
    %140 = vector.broadcast %cst_58 : f32 to vector<4x1xf32>
    %141 = arith.divf %139, %140 : vector<4x1xf32>
    %142 = vector.broadcast %134 : vector<4x1xf32> to vector<4x128xf32>
    %143 = arith.subf %130, %142 : vector<4x128xf32>
    %cst_59 = arith.constant 9.99999974E-6 : f32
    %144 = vector.broadcast %cst_59 : f32 to vector<4x1xf32>
    %145 = arith.addf %141, %144 : vector<4x1xf32>
    %146 = math.rsqrt %145 : vector<4x1xf32>
    %147 = vector.broadcast %146 : vector<4x1xf32> to vector<4x128xf32>
    %148 = arith.mulf %143, %147 : vector<4x128xf32>
    %149 = vector.broadcast %14 : vector<1x128xf32> to vector<4x128xf32>
    %150 = arith.mulf %148, %149 : vector<4x128xf32>
    %151 = vector.broadcast %15 : vector<1x128xf32> to vector<4x128xf32>
    %152 = arith.addf %150, %151 : vector<4x128xf32>
    %153 = vector.extract_strided_slice %152 {offsets = [0, 0], sizes = [2, 128], strides = [1, 1]} : vector<4x128xf32> to vector<2x128xf32>
    %c2_i32_60 = arith.constant 2 : i32
    %154 = tpu.memref_slice %arg12[%c2_i32_60] : memref<3x!tpu.dma_semaphore, #tpu.memory_space<semaphore_mem>> -> memref<1x!tpu.dma_semaphore, #tpu.memory_space<semaphore_mem>>
    %155 = tpu.memref_squeeze %154 : memref<1x!tpu.dma_semaphore, #tpu.memory_space<semaphore_mem>> -> memref<!tpu.dma_semaphore, #tpu.memory_space<semaphore_mem>>
    tpu.wait_dma2 semaphore(%155 : memref<!tpu.dma_semaphore, #tpu.memory_space<semaphore_mem>>) src(%arg7 : memref<128x1024xf32, #tpu.memory_space<any>>) dst(%arg11 : memref<128x1024xf32, #tpu.memory_space<vmem>>)
    %c0_61 = arith.constant 0 : index
    %c0_62 = arith.constant 0 : index
    %156 = vector.load %arg11[%c0_61, %c0_62] : memref<128x1024xf32, #tpu.memory_space<vmem>>, vector<128x1024xf32>
    %cst_63 = arith.constant dense<0.000000e+00> : vector<2x1024xf32>
    %157 = tpu.matmul %153, %156, %cst_63 {dimension_numbers = #tpu.dot_dimension_numbers<[1], [0], [0], [1], [0, 0, 1, 1], [], []>} : vector<2x128xf32>, vector<128x1024xf32>, vector<2x1024xf32> -> vector<2x1024xf32>
    %158 = vector.broadcast %16 : vector<1x1024xf32> to vector<2x1024xf32>
    %159 = arith.addf %157, %158 : vector<2x1024xf32>
    %c0_64 = arith.constant 0 : index
    %c0_65 = arith.constant 0 : index
    %160 = vector.load %arg8[%c0_64, %c0_65] : memref<2x1024xf32, #tpu.memory_space<vmem>>, vector<2x1024xf32>
    tpu.vector_store %arg8[%c0_64, %c0_65], %159 {strides = array<i32>} : memref<2x1024xf32, #tpu.memory_space<vmem>>, vector<2x1024xf32>,
    return
  }
}

</mosaic_0001>

<bundles_post_ra>
// kernel: cvt_forward.1
= control target key start
LH: loop header
LB: loop body
LE: loop exit
PB: predicated region body
PF: predicated region fallthrough
CT: control target
= control target key end

     0   :  { %13 = vsyncpa [#allocation7], 0  ;;  %s4945_s0 = inlined_call_operand.vmem [shape: f32[2,3072], index: 0, kind: input, shape index: {}]   ;;  %s4946_s1 = inlined_call_operand.hbm [shape: f32[3072,128], index: 1, kind: input, shape index: {}]   ;;  %s4947_s2 = inlined_call_operand.hbm [shape: f32[128,384], index: 2, kind: input, shape index: {}]   ;;  %s4948_s3 = inlined_call_operand.hbm [shape: f32[128,128], index: 3, kind: input, shape index: {}]   ;;  %s4949_s4 = inlined_call_operand.hbm [shape: f32[11,1024], index: 4, kind: input, shape index: {}]   ;;  %s4950_s5 = inlined_call_operand.hbm [shape: f32[128,512], index: 5, kind: input, shape index: {}]   ;;  %s4951_s6 = inlined_call_operand.hbm [shape: f32[512,128], index: 6, kind: input, shape index: {}]   ;;  %s4952_s7 = inlined_call_operand.hbm [shape: f32[128,1024], index: 7, kind: input, shape index: {}]   ;;  %s4953_s8 = inlined_call_operand.hbm [shape: f32[2,1024], index: 8, kind: output, shape index: {}]  }
   0x1   :  { %14 = vsyncpa [#allocation10], 0 }
   0x2   :  { %15 = vsyncpa [#allocation13], 0 }
   0x3   :  { %16 = vsyncpa [#allocation8], 0  ;;  %s4572_s27 = smov [#allocation9]   ;;  %s4382_s9 = scalar_lea.hbm %s4947_s2, 6144 }
   0x4   :  { %s36_s28 = sshll.u32 %s4572_s27, 4  ;;  %p4383_p0 = scmp.ne.s32.totalorder %s4947_s2, %s4382_s9  ;;  %s37_s28 = int_to_ptr.vmem [resolvable:$true] %s36_s28 }
   0x5   :  { %p4386_p1 = scmp.lt.u32.totalorder %s4382_s9, %s4947_s2 }
   0x7   :  { %p4388_p2 = pnand %p4386_p1, %p4383_p0 }
   0x9   :  { %4391 = shalt.err (!%p4388_p2)
}
   0xa   :  { %s4392_s14 = scalar_lea.vmem %s37_s28, 6144  ;;  %p4397_p4 = scmp.lt.s32.totalorder %s37_s28, %s37_s28 }
   0xb   :  { %p4393_p3 = scmp.ne.s32.totalorder %s37_s28, %s4392_s14  ;;  %p4398_p5 = scmp.lt.s32.totalorder %s4392_s14, %s4392_s14 }
   0xd   :  { %p4399_p6 = por %p4398_p5, %p4397_p4 }
   0xf   :  { %p4400_p7 = pnand %p4399_p6, %p4393_p3 }
  0x11   :  { %4403 = shalt.err (!%p4400_p7)
}
  0x12   :  { %s4573_s15 = smov 384   ;;  %s4574_s16 = smov 24  }
  0x13   :  { %42 = dma.hbm_to_vmem [thread:$0]  %s4947_s2, 6144, %s37_s28, [#allocation10], %s4573_s15, %s4573_s15, %s4574_s16  }
  0x14   :  { %s4575_s19 = smov [#allocation6]   ;;  %s4404_s23 = scalar_lea.hbm %s4946_s1, 49152 }
  0x15   :  { %s24_s20 = sshll.u32 %s4575_s19, 4  ;;  %p4405_p8 = scmp.ne.s32.totalorder %s4946_s1, %s4404_s23  ;;  %s25_s20 = int_to_ptr.vmem [resolvable:$true] %s24_s20 }
  0x16   :  { %p4408_p9 = scmp.lt.u32.totalorder %s4404_s23, %s4946_s1 }
  0x18   :  { %p4410_p10 = pnand %p4408_p9, %p4405_p8 }
  0x1a   :  { %4413 = shalt.err (!%p4410_p10)
}
  0x1b   :  { %s4414_s29 = scalar_lea.vmem %s25_s20, 49152  ;;  %p4419_p12 = scmp.lt.s32.totalorder %s25_s20, %s25_s20 }
  0x1c   :  { %p4415_p11 = scmp.ne.s32.totalorder %s25_s20, %s4414_s29  ;;  %p4420_p13 = scmp.lt.s32.totalorder %s4414_s29, %s4414_s29 }
  0x1e   :  { %p4421_p0 = por %p4420_p13, %p4419_p12 }
  0x20   :  { %p4422_p1 = pnand %p4421_p0, %p4415_p11 }
  0x22   :  { %4425 = shalt.err (!%p4422_p1)
}
  0x23   :  { %s4576_s2 = smov 128   ;;  %s4577_s28 = smov 8  }
  0x24   :  { %30 = dma.hbm_to_vmem [thread:$0]  %s4946_s1, 49152, %s25_s20, [#allocation7], %s4576_s2, %s4576_s2, %s4577_s28  }
  0x25   :  { %s4578_s10 = smov [#allocation11]   ;;  %s4579_s12 = smov [#allocation12]  }
  0x26   :  { %s48_s11 = sshll.u32 %s4578_s10, 4  ;;  %s60_s13 = sshll.u32 %s4579_s12, 4  ;;  %s49_s11 = int_to_ptr.vmem [resolvable:$true] %s48_s11  ;;  %s4659_s13 = int_to_ptr.vmem [resolvable:$true] %s60_s13 }
  0x27   :  { %s4426_s16 = scalar_lea.hbm %s4948_s3, 2048 }
  0x28   :  { %p4427_p2 = scmp.ne.s32.totalorder %s4948_s3, %s4426_s16  ;;  %p4430_p3 = scmp.lt.u32.totalorder %s4426_s16, %s4948_s3 }
  0x2a   :  { %p4432_p4 = pnand %p4430_p3, %p4427_p2 }
  0x2c   :  { %4435 = shalt.err (!%p4432_p4)
}
  0x2d   :  { %s4436_s1 = scalar_lea.vmem %s49_s11, 2048  ;;  %p4441_p6 = scmp.lt.s32.totalorder %s49_s11, %s49_s11 }
  0x2e   :  { %p4437_p5 = scmp.ne.s32.totalorder %s49_s11, %s4436_s1  ;;  %p4442_p7 = scmp.lt.s32.totalorder %s4436_s1, %s4436_s1 }
  0x30   :  { %p4443_p8 = por %p4442_p7, %p4441_p6 }
  0x32   :  { %p4444_p9 = pnand %p4443_p8, %p4437_p5 }
  0x34   :  { %4447 = shalt.err (!%p4444_p9)
}
  0x35   :  { %54 = dma.hbm_to_vmem [thread:$0]  %s4948_s3, 2048, %s49_s11, [#allocation10], %s4576_s2, %s4576_s2, %s4577_s28  }
  0x36   :  { %s4448_s25 = scalar_lea.hbm %s4949_s4, 2048 }
  0x37   :  { %p4449_p10 = scmp.ne.s32.totalorder %s4949_s4, %s4448_s25  ;;  %p4452_p11 = scmp.lt.u32.totalorder %s4448_s25, %s4949_s4 }
  0x39   :  { %p4454_p12 = pnand %p4452_p11, %p4449_p10 }
  0x3b   :  { %4457 = shalt.err (!%p4454_p12)
}
  0x3c   :  { %s4458_s9 = scalar_lea.vmem %s4659_s13, 2048  ;;  %p4463_p0 = scmp.lt.s32.totalorder %s4659_s13, %s4659_s13 }
  0x3d   :  { %p4459_p13 = scmp.ne.s32.totalorder %s4659_s13, %s4458_s9  ;;  %p4464_p1 = scmp.lt.s32.totalorder %s4458_s9, %s4458_s9 }
  0x3f   :  { %p4465_p2 = por %p4464_p1, %p4463_p0 }
  0x41   :  { %p4466_p3 = pnand %p4465_p2, %p4459_p13 }
  0x43   :  { %4469 = shalt.err (!%p4466_p3)
}
  0x44   :  { %s4580_s3 = smov 1024   ;;  %s4581_s2 = smov 64  }
  0x45   :  { %66 = dma.hbm_to_vmem [thread:$0]  %s4949_s4, 2048, %s4659_s13, [#allocation13], %s4580_s3, %s4580_s3, %s4581_s2  }
  0x46   :  { %4558 = dma.done.wait [#allocation7], 49152  }
  0x47   :  { %4559 = vsyncadd [#allocation7], 4294918144 }
  0x48   :  { %4560 = dma.done.wait [#allocation10], 8192  }
  0x49   :  { %4561 = vsyncadd [#allocation10], 4294959104 }
  0x4a   :  { %4562 = dma.done.wait [#allocation13], 2048  }
  0x4b   :  { %4563 = vsyncadd [#allocation13], 4294965248  ;;  %v4690_v0 = vld [vmem:[#allocation12 + $0x4] ss:$8 sm:$0xf]  ;;  %v530_v53 = vlaneseq  ;;  %vm4585_vm0 = vmmov 0  }
  0x4c   :  { %v4692_v1 = vld [vmem:[#allocation12 + $0x5] ss:$0 sm:$0xff]  ;;  %v4694_v3 = vld [vmem:[#allocation12 + $0x40] ss:$0 sm:$0xff]  ;;  %v4696_v4 = vld [vmem:[#allocation12 + $0x41] ss:$0 sm:$0xff] }
  0x4d   :  { %v152_v2 = vld [vmem:[#allocation6 + $0x80] sm:$0xff]  ;;  %v153_v5 = vld [vmem:[#allocation6 + $0x88] sm:$0xff]  ;;  %v154_v19 = vld [vmem:[#allocation6 + $0x90] sm:$0xff]  ;;  %v4582_v51 = vmov 1983009808   ;;  %vm1495_vm1 = vcmask 1041408  }
  0x4e   :  { %v127_v6 = vld [vmem:[#allocation12 + $0x42] ss:$8 sm:$0xf]  ;;  %v3622_v8 = vpack.c.bf16 %v153_v5, %v152_v2  ;;  %v528_v52 = vunpack.c.l.s4 %v4582_v51  ;;  %vm1819_vm2 = vcmask 1043456   ;;  %vm1803_vm4 = vcmask 27648   ;;  %s4587_s22 = smov [#allocation3]  }
  0x4f   :  { %v128_v7 = vld [vmem:[#allocation12 + $0x42] ss:$8 sm:$0xf0]  ;;  %vm1815_vm5 = vcmask 31744   ;;  %s98_s23 = sshll.u32 %s4587_s22, 4  ;;  %s4470_s26 = scalar_lea.hbm %s4950_s5, 8192  ;;  %s99_s23 = int_to_ptr.vmem [resolvable:$true] %s98_s23 }
  0x50   :  { %v4698_v9 = vor.u32 %v128_v7, %v127_v6  ;;  %v136_v10 = vld [vmem:[#allocation6] sm:$0xff]  ;;  %v137_v11 = vld [vmem:[#allocation6 + $0x8] sm:$0xff]  ;;  %3623 = vmatprep.subr.bf16.mxu0 %v3622_v8  ;;  %v155_v20 = vld [vmem:[#allocation6 + $0x98] sm:$0xff]  ;;  %v529_v7 = vunpack.c.0.s8 %v528_v52  ;;  %v4701_v8 = vshrl.u32 %v530_v53, 7  ;;  %p4471_p4 = scmp.ne.s32.totalorder %s4950_s5, %s4470_s26  ;;  %p4474_p5 = scmp.lt.u32.totalorder %s4470_s26, %s4950_s5 }
  0x51   :  { %v184_v12 = vld [vmem:[#allocation6 + $0x180] sm:$0xff]  ;;  %v3624_v13 = vpack.c.bf16 %v137_v11, %v136_v10  ;;  %v185_v14 = vld [vmem:[#allocation6 + $0x188] sm:$0xff]  ;;  %v138_v21 = vld [vmem:[#allocation6 + $0x10] sm:$0xff]  ;;  %v3626_v22 = vpack.c.bf16 %v155_v20, %v154_v19 }
  0x52   :  { %v168_v15 = vld [vmem:[#allocation6 + $0x100] sm:$0xff]  ;;  %v169_v16 = vld [vmem:[#allocation6 + $0x108] sm:$0xff]  ;;  %v3654_v17 = vpack.c.bf16 %v185_v14, %v184_v12  ;;  %v139_v23 = vld [vmem:[#allocation6 + $0x18] sm:$0xff]  ;;  %p4476_p6 = pnand %p4474_p5, %p4471_p4 }
  0x53   :  { %v3656_v18 = vpack.c.bf16 %v169_v16, %v168_v15  ;;  %3625 = vmatpush3.bf16.msra.mxu0 %v3624_v13  ;;  %v186_v24 = vld [vmem:[#allocation6 + $0x190] sm:$0xff]  ;;  %v187_v25 = vld [vmem:[#allocation6 + $0x198] sm:$0xff]  ;;  %v3628_v26 = vpack.c.bf16 %v139_v23, %v138_v21  ;;  %v156_v30 = vld [vmem:[#allocation6 + $0xa0] sm:$0xff] }
  0x54   :  { %3655 = vmatprep.subr.bf16.mxu1 %v3654_v17  ;;  %v3658_v27 = vpack.c.bf16 %v187_v25, %v186_v24  ;;  %v170_v28 = vld [vmem:[#allocation6 + $0x110] sm:$0xff]  ;;  %v171_v29 = vld [vmem:[#allocation6 + $0x118] sm:$0xff]  ;;  %3627 = vmatprep.subr.bf16.mxu0 %v3626_v22  ;;  %v157_v32 = vld [vmem:[#allocation6 + $0xa8] sm:$0xff]  ;;  %v4704_v22 = vsub.s32 %v529_v7, %v4701_v8 }
  0x55   :  { %3657 = vmatpush3.bf16.msra.mxu1 %v3656_v18  ;;  %v3660_v31 = vpack.c.bf16 %v171_v29, %v170_v28  ;;  %v140_v33 = vld [vmem:[#allocation6 + $0x20] sm:$0xff]  ;;  %v141_v34 = vld [vmem:[#allocation6 + $0x28] sm:$0xff]  ;;  %v3630_v35 = vpack.c.bf16 %v157_v32, %v156_v30  ;;  %v158_v42 = vld [vmem:[#allocation6 + $0xb0] sm:$0xff] }
  0x56   :  { %3659 = vmatprep.subr.bf16.mxu1 %v3658_v27  ;;  %v188_v36 = vld [vmem:[#allocation6 + $0x1a0] sm:$0xff]  ;;  %v189_v37 = vld [vmem:[#allocation6 + $0x1a8] sm:$0xff]  ;;  %v3632_v39 = vpack.c.bf16 %v141_v34, %v140_v33  ;;  %v159_v43 = vld [vmem:[#allocation6 + $0xb8] sm:$0xff] }
  0x57   :  { %v172_v38 = vld [vmem:[#allocation6 + $0x120] sm:$0xff]  ;;  %3629 = vmatpush3.bf16.msra.mxu0 %v3628_v26  ;;  %v3662_v40 = vpack.c.bf16 %v189_v37, %v188_v36  ;;  %v173_v41 = vld [vmem:[#allocation6 + $0x128] sm:$0xff]  ;;  %v3634_v44 = vpack.c.bf16 %v159_v43, %v158_v42  ;;  %v142_v45 = vld [vmem:[#allocation6 + $0x30] sm:$0xff] }
  0x58   :  { %3631 = vmatprep.subr.bf16.mxu0 %v3630_v35  ;;  %v143_v46 = vld [vmem:[#allocation6 + $0x38] sm:$0xff]  ;;  %v190_v47 = vld [vmem:[#allocation6 + $0x1b0] sm:$0xff]  ;;  %v3664_v48 = vpack.c.bf16 %v173_v41, %v172_v38  ;;  %v160_v56 = vld [vmem:[#allocation6 + $0xc0] sm:$0xff] }
  0x59   :  { %3661 = vmatpush3.bf16.msra.mxu1 %v3660_v31  ;;  %v191_v49 = vld [vmem:[#allocation6 + $0x1b8] sm:$0xff]  ;;  %v174_v50 = vld [vmem:[#allocation6 + $0x130] sm:$0xff]  ;;  %v161_v57 = vld [vmem:[#allocation6 + $0xc8] sm:$0xff]  ;;  %v3636_v58 = vpack.c.bf16 %v143_v46, %v142_v45 }
  0x5a   :  { %3663 = vmatprep.subr.bf16.mxu1 %v3662_v40  ;;  %v3666_v54 = vpack.c.bf16 %v191_v49, %v190_v47  ;;  %v175_v55 = vld [vmem:[#allocation6 + $0x138] sm:$0xff]  ;;  %v192_v59 = vld [vmem:[#allocation6 + $0x1c0] sm:$0xff]  ;;  %v193_v60 = vld [vmem:[#allocation6 + $0x1c8] sm:$0xff]  ;;  %v3638_v61 = vpack.c.bf16 %v161_v57, %v160_v56 }
  0x5b   :  { %3633 = vmatpush3.bf16.msra.mxu0 %v3632_v39  ;;  %v144_v62 = vld [vmem:[#allocation6 + $0x40] sm:$0xff]  ;;  %v145_v63 = vld [vmem:[#allocation6 + $0x48] sm:$0xff]  ;;  %v3668_v2 = vpack.c.bf16 %v175_v55, %v174_v50  ;;  %v162_v5 = vld [vmem:[#allocation6 + $0xd0] sm:$0xff]  ;;  %v3670_v10 = vpack.c.bf16 %v193_v60, %v192_v59 }
  0x5c   :  { %3635 = vmatprep.subr.bf16.mxu0 %v3634_v44  ;;  %v163_v6 = vld [vmem:[#allocation6 + $0xd8] sm:$0xff]  ;;  %v176_v11 = vld [vmem:[#allocation6 + $0x140] sm:$0xff]  ;;  %v177_v12 = vld [vmem:[#allocation6 + $0x148] sm:$0xff]  ;;  %v3640_v13 = vpack.c.bf16 %v145_v63, %v144_v62 }
  0x5d   :  { %3665 = vmatpush3.bf16.msra.mxu1 %v3664_v48  ;;  %v194_v14 = vld [vmem:[#allocation6 + $0x1d0] sm:$0xff]  ;;  %v195_v15 = vld [vmem:[#allocation6 + $0x1d8] sm:$0xff]  ;;  %v3642_v16 = vpack.c.bf16 %v163_v6, %v162_v5  ;;  %v3672_v19 = vpack.c.bf16 %v177_v12, %v176_v11  ;;  %v164_v20 = vld [vmem:[#allocation6 + $0xe0] sm:$0xff] }
  0x5e   :  { %3667 = vmatprep.subr.bf16.mxu1 %v3666_v54  ;;  %v146_v17 = vld [vmem:[#allocation6 + $0x50] sm:$0xff]  ;;  %v147_v18 = vld [vmem:[#allocation6 + $0x58] sm:$0xff]  ;;  %v165_v21 = vld [vmem:[#allocation6 + $0xe8] sm:$0xff]  ;;  %v3674_v23 = vpack.c.bf16 %v195_v15, %v194_v14 }
  0x5f   :  { %3637 = vmatpush3.bf16.msra.mxu0 %v3636_v58  ;;  %v178_v24 = vld [vmem:[#allocation6 + $0x150] sm:$0xff]  ;;  %v179_v25 = vld [vmem:[#allocation6 + $0x158] sm:$0xff]  ;;  %v3644_v26 = vpack.c.bf16 %v147_v18, %v146_v17  ;;  %v196_v27 = vld [vmem:[#allocation6 + $0x1e0] sm:$0xff]  ;;  %v3646_v29 = vpack.c.bf16 %v165_v21, %v164_v20 }
  0x60   :  { %3639 = vmatprep.subr.bf16.mxu0 %v3638_v61  ;;  %v197_v28 = vld [vmem:[#allocation6 + $0x1e8] sm:$0xff]  ;;  %v148_v30 = vld [vmem:[#allocation6 + $0x60] sm:$0xff]  ;;  %v3676_v33 = vpack.c.bf16 %v179_v25, %v178_v24  ;;  %v166_v34 = vld [vmem:[#allocation6 + $0xf0] sm:$0xff] }
  0x61   :  { %3669 = vmatpush3.bf16.msra.mxu1 %v3668_v2  ;;  %v149_v31 = vld [vmem:[#allocation6 + $0x68] sm:$0xff]  ;;  %v130_v32 = vld [vmem:[%s4945_s0] sm:$0xff]  ;;  %v167_v35 = vld [vmem:[#allocation6 + $0xf8] sm:$0xff]  ;;  %v3678_v38 = vpack.c.bf16 %v197_v28, %v196_v27 }
  0x62   :  { %3671 = vmatprep.subr.bf16.mxu1 %v3670_v10  ;;  %v533_v36 = vrot.slane %v130_v32, %v4704_v22  ;;  %v526_v37 = vcombine.high %v130_v32, %v130_v32  ;;  %v180_v39 = vld [vmem:[#allocation6 + $0x160] sm:$0xff]  ;;  %v181_v40 = vld [vmem:[#allocation6 + $0x168] sm:$0xff]  ;;  %v3648_v41 = vpack.c.bf16 %v149_v31, %v148_v30  ;;  %v198_v42 = vld [vmem:[#allocation6 + $0x1f0] sm:$0xff]  ;;  %v3650_v46 = vpack.c.bf16 %v167_v35, %v166_v34 }
  0x63   :  { %3641 = vmatpush3.bf16.msra.mxu0 %v3640_v13  ;;  %v199_v43 = vld [vmem:[#allocation6 + $0x1f8] sm:$0xff]  ;;  %v150_v47 = vld [vmem:[#allocation6 + $0x70] sm:$0xff]  ;;  %v3680_v49 = vpack.c.bf16 %v181_v40, %v180_v39  ;;  %v216_v50 = vld [vmem:[#allocation6 + $0x280] sm:$0xff] }
  0x64   :  { %3643 = vmatprep.subr.bf16.mxu0 %v3642_v16  ;;  %v541_v44 = vcombine.high %v533_v36, %v533_v36  ;;  %v540_v45 = vrot.slane %v526_v37, %v4704_v22  ;;  %v151_v48 = vld [vmem:[#allocation6 + $0x78] sm:$0xff]  ;;  %v217_v51 = vld [vmem:[#allocation6 + $0x288] sm:$0xff]  ;;  %v3682_v54 = vpack.c.bf16 %v199_v43, %v198_v42  ;;  %v182_v55 = vld [vmem:[#allocation6 + $0x170] sm:$0xff] }
  0x65   :  { %3673 = vmatpush3.bf16.msra.mxu1 %v3672_v19  ;;  %v183_v56 = vld [vmem:[#allocation6 + $0x178] sm:$0xff]  ;;  %v3652_v57 = vpack.c.bf16 %v151_v48, %v150_v47  ;;  %v248_v58 = vld [vmem:[#allocation6 + $0x380] sm:$0xff]  ;;  %v249_v59 = vld [vmem:[#allocation6 + $0x388] sm:$0xff]  ;;  %v3686_v60 = vpack.c.bf16 %v217_v51, %v216_v50 }
  0x66   :  { %3675 = vmatprep.subr.bf16.mxu1 %v3674_v23  ;;  %716 = vmatprep.mubr.f32.mxu0 %v541_v44  ;;  %v542_v52 = vcombine.high %v540_v45, %v540_v45  ;;  %v200_v61 = vld [vmem:[#allocation6 + $0x200] sm:$0xff]  ;;  %v201_v62 = vld [vmem:[#allocation6 + $0x208] sm:$0xff]  ;;  %v3684_v63 = vpack.c.bf16 %v183_v56, %v182_v55  ;;  %v218_v2 = vld [vmem:[#allocation6 + $0x290] sm:$0xff]  ;;  %v3718_v6 = vpack.c.bf16 %v249_v59, %v248_v58 }
  0x67   :  { %3645 = vmatpush3.bf16.msra.mxu0 %v3644_v26  ;;  %v219_v5 = vld [vmem:[#allocation6 + $0x298] sm:$0xff]  ;;  %v232_v7 = vld [vmem:[#allocation6 + $0x300] sm:$0xff]  ;;  %v233_v10 = vld [vmem:[#allocation6 + $0x308] sm:$0xff]  ;;  %v3688_v11 = vpack.c.bf16 %v201_v62, %v200_v61 }
  0x68   :  { %3647 = vmatprep.subr.bf16.mxu0 %v3646_v29  ;;  %786 = vmatprep.mubr.f32.mxu1 %v542_v52  ;;  %v250_v12 = vld [vmem:[#allocation6 + $0x390] sm:$0xff]  ;;  %v251_v13 = vld [vmem:[#allocation6 + $0x398] sm:$0xff]  ;;  %v3690_v14 = vpack.c.bf16 %v219_v5, %v218_v2  ;;  %v3720_v17 = vpack.c.bf16 %v233_v10, %v232_v7  ;;  %v220_v18 = vld [vmem:[#allocation6 + $0x2a0] sm:$0xff] }
  0x69   :  { %3677 = vmatpush3.bf16.msra.mxu1 %v3676_v33  ;;  %v202_v15 = vld [vmem:[#allocation6 + $0x210] sm:$0xff]  ;;  %v203_v16 = vld [vmem:[#allocation6 + $0x218] sm:$0xff]  ;;  %v221_v19 = vld [vmem:[#allocation6 + $0x2a8] sm:$0xff]  ;;  %v3722_v20 = vpack.c.bf16 %v251_v13, %v250_v12 }
  0x6a   :  { %3679 = vmatprep.subr.bf16.mxu1 %v3678_v38  ;;  %v234_v21 = vld [vmem:[#allocation6 + $0x310] sm:$0xff]  ;;  %v235_v23 = vld [vmem:[#allocation6 + $0x318] sm:$0xff]  ;;  %v3692_v24 = vpack.c.bf16 %v203_v16, %v202_v15  ;;  %v252_v25 = vld [vmem:[#allocation6 + $0x3a0] sm:$0xff]  ;;  %v3694_v27 = vpack.c.bf16 %v221_v19, %v220_v18 }
  0x6b   :  { %3649 = vmatpush3.bf16.msra.mxu0 %v3648_v41  ;;  %v253_v26 = vld [vmem:[#allocation6 + $0x3a8] sm:$0xff]  ;;  %v204_v28 = vld [vmem:[#allocation6 + $0x220] sm:$0xff]  ;;  %v3724_v30 = vpack.c.bf16 %v235_v23, %v234_v21  ;;  %v222_v31 = vld [vmem:[#allocation6 + $0x2b0] sm:$0xff] }
  0x6c   :  { %3651 = vmatprep.subr.bf16.mxu0 %v3650_v46  ;;  %v205_v29 = vld [vmem:[#allocation6 + $0x228] sm:$0xff]  ;;  %v223_v32 = vld [vmem:[#allocation6 + $0x2b8] sm:$0xff]  ;;  %v3726_v33 = vpack.c.bf16 %v253_v26, %v252_v25  ;;  %v236_v34 = vld [vmem:[#allocation6 + $0x320] sm:$0xff] }
  0x6d   :  { %3681 = vmatpush3.bf16.msra.mxu1 %v3680_v49  ;;  %v237_v35 = vld [vmem:[#allocation6 + $0x328] sm:$0xff]  ;;  %v254_v37 = vld [vmem:[#allocation6 + $0x3b0] sm:$0xff]  ;;  %v255_v38 = vld [vmem:[#allocation6 + $0x3b8] sm:$0xff]  ;;  %v3698_v39 = vpack.c.bf16 %v223_v32, %v222_v31 }
  0x6e   :  { %3683 = vmatprep.subr.bf16.mxu1 %v3682_v54  ;;  %v206_v40 = vld [vmem:[#allocation6 + $0x230] sm:$0xff]  ;;  %v207_v41 = vld [vmem:[#allocation6 + $0x238] sm:$0xff]  ;;  %v3728_v42 = vpack.c.bf16 %v237_v35, %v236_v34  ;;  %v224_v43 = vld [vmem:[#allocation6 + $0x2c0] sm:$0xff] }
  0x6f   :  { %3653 = vmatpush3.bf16.msra.mxu0 %v3652_v57  ;;  %v225_v44 = vld [vmem:[#allocation6 + $0x2c8] sm:$0xff]  ;;  %v238_v46 = vld [vmem:[#allocation6 + $0x330] sm:$0xff]  ;;  %v239_v47 = vld [vmem:[#allocation6 + $0x338] sm:$0xff]  ;;  %v3700_v49 = vpack.c.bf16 %v207_v41, %v206_v40 }
  0x70   :  { %3687 = vmatprep.subr.bf16.mxu0 %v3686_v60  ;;  %v131_v48 = vld [vmem:[%s4945_s0 + $0x8] sm:$0xff]  ;;  %v256_v50 = vld [vmem:[#allocation6 + $0x3c0] sm:$0xff]  ;;  %v3702_v55 = vpack.c.bf16 %v225_v44, %v224_v43  ;;  %v3732_v58 = vpack.c.bf16 %v239_v47, %v238_v46  ;;  %v226_v59 = vld [vmem:[#allocation6 + $0x2d0] sm:$0xff] }
  0x71   :  { %3685 = vmatpush3.bf16.msra.mxu1 %v3684_v63  ;;  %v257_v51 = vld [vmem:[#allocation6 + $0x3c8] sm:$0xff]  ;;  %v4715_v52 = vrot.slane %v131_v48, %v4704_v22  ;;  %v543_v54 = vcombine.high %v131_v48, %v131_v48  ;;  %v208_v56 = vld [vmem:[#allocation6 + $0x240] sm:$0xff]  ;;  %v227_v60 = vld [vmem:[#allocation6 + $0x2d8] sm:$0xff] }
  0x72   :  { %717 = vmatmul.mubr.f32.vlgmr.msra.gmra.mrb[0].mxu0 %v533_v36  ;;  %3719 = vmatprep.subr.bf16.mxu1 %v3718_v6  ;;  %v3696_v36 = vpack.c.bf16 %v205_v29, %v204_v28  ;;  %v209_v57 = vld [vmem:[#allocation6 + $0x248] sm:$0xff]  ;;  %v3734_v63 = vpack.c.bf16 %v257_v51, %v256_v50  ;;  %v240_v2 = vld [vmem:[#allocation6 + $0x340] sm:$0xff]  ;;  %v258_v7 = vld [vmem:[#allocation6 + $0x3d0] sm:$0xff]  ;;  %v3706_v12 = vpack.c.bf16 %v227_v60, %v226_v59 }
  0x73   :  { %3689 = vmatpush3.bf16.msra.mxu0 %v3688_v11  ;;  %v558_v61 = vcombine.high %v4715_v52, %v4715_v52  ;;  %v4720_v62 = vrot.slane %v543_v54, %v4704_v22  ;;  %v241_v5 = vld [vmem:[#allocation6 + $0x348] sm:$0xff]  ;;  %v3704_v6 = vpack.c.bf16 %v209_v57, %v208_v56  ;;  %v259_v10 = vld [vmem:[#allocation6 + $0x3d8] sm:$0xff]  ;;  %v210_v13 = vld [vmem:[#allocation6 + $0x250] sm:$0xff] }
  0x74   :  { %787 = vmatmul.mubr.f32.vlgmr.msra.gmra.mrb[0].mxu1 %v540_v45  ;;  %3691 = vmatprep.subr.bf16.mxu0 %v3690_v14  ;;  %v3730_v45 = vpack.c.bf16 %v255_v38, %v254_v37  ;;  %v211_v14 = vld [vmem:[#allocation6 + $0x258] sm:$0xff]  ;;  %v3736_v15 = vpack.c.bf16 %v241_v5, %v240_v2  ;;  %v228_v16 = vld [vmem:[#allocation6 + $0x2e0] sm:$0xff]  ;;  %v3738_v18 = vpack.c.bf16 %v259_v10, %v258_v7  ;;  %v242_v19 = vld [vmem:[#allocation6 + $0x350] sm:$0xff] }
  0x75   :  { %3721 = vmatpush3.bf16.msra.mxu1 %v3720_v17  ;;  %856 = vmatprep.mubr.f32.mxu0 %v558_v61  ;;  %v559_v11 = vcombine.high %v4720_v62, %v4720_v62  ;;  %v229_v17 = vld [vmem:[#allocation6 + $0x2e8] sm:$0xff]  ;;  %v3708_v21 = vpack.c.bf16 %v211_v14, %v210_v13  ;;  %v260_v23 = vld [vmem:[#allocation6 + $0x3e0] sm:$0xff]  ;;  %v230_v29 = vld [vmem:[#allocation6 + $0x2f0] sm:$0xff] }
  0x76   :  { %3723 = vmatprep.subr.bf16.mxu1 %v3722_v20  ;;  %v243_v20 = vld [vmem:[#allocation6 + $0x358] sm:$0xff]  ;;  %v3710_v25 = vpack.c.bf16 %v229_v17, %v228_v16  ;;  %v212_v26 = vld [vmem:[#allocation6 + $0x260] sm:$0xff]  ;;  %v262_v35 = vld [vmem:[#allocation6 + $0x3f0] sm:$0xff] }
  0x77   :  { %3693 = vmatpush3.bf16.msra.mxu0 %v3692_v24  ;;  %926 = vmatprep.mubr.f32.mxu1 %v559_v11  ;;  %v261_v24 = vld [vmem:[#allocation6 + $0x3e8] sm:$0xff]  ;;  %v3740_v28 = vpack.c.bf16 %v243_v20, %v242_v19  ;;  %v244_v32 = vld [vmem:[#allocation6 + $0x360] sm:$0xff]  ;;  %v214_v38 = vld [vmem:[#allocation6 + $0x270] sm:$0xff] }
  0x78   :  { %3695 = vmatprep.subr.bf16.mxu0 %v3694_v27  ;;  %v213_v27 = vld [vmem:[#allocation6 + $0x268] sm:$0xff]  ;;  %v3742_v31 = vpack.c.bf16 %v261_v24, %v260_v23  ;;  %v280_v41 = vld [vmem:[#allocation6 + $0x480] sm:$0xff]  ;;  %v246_v44 = vld [vmem:[#allocation6 + $0x370] sm:$0xff] }
  0x79   :  { %3725 = vmatpush3.bf16.msra.mxu1 %v3724_v30  ;;  %v231_v30 = vld [vmem:[#allocation6 + $0x2f8] sm:$0xff]  ;;  %v3712_v34 = vpack.c.bf16 %v213_v27, %v212_v26  ;;  %v312_v47 = vld [vmem:[#allocation6 + $0x580] sm:$0xff]  ;;  %v313_v48 = vld [vmem:[#allocation6 + $0x588] sm:$0xff] }
  0x7a   :  { %3727 = vmatprep.subr.bf16.mxu1 %v3726_v33  ;;  %v245_v33 = vld [vmem:[#allocation6 + $0x368] sm:$0xff]  ;;  %v3714_v37 = vpack.c.bf16 %v231_v30, %v230_v29  ;;  %v264_v50 = vld [vmem:[#allocation6 + $0x400] sm:$0xff]  ;;  %v283_v56 = vld [vmem:[#allocation6 + $0x498] sm:$0xff]  ;;  %v3782_v57 = vpack.c.bf16 %v313_v48, %v312_v47 }
  0x7b   :  { %3697 = vmatpush3.bf16.msra.mxu0 %v3696_v36  ;;  %v263_v36 = vld [vmem:[#allocation6 + $0x3f8] sm:$0xff]  ;;  %v3744_v40 = vpack.c.bf16 %v245_v33, %v244_v32  ;;  %v265_v51 = vld [vmem:[#allocation6 + $0x408] sm:$0xff]  ;;  %v314_v61 = vld [vmem:[#allocation6 + $0x590] sm:$0xff] }
  0x7c   :  { %3699 = vmatprep.subr.bf16.mxu0 %v3698_v39  ;;  %v215_v39 = vld [vmem:[#allocation6 + $0x278] sm:$0xff]  ;;  %v3746_v43 = vpack.c.bf16 %v263_v36, %v262_v35  ;;  %v297_v59 = vld [vmem:[#allocation6 + $0x508] sm:$0xff]  ;;  %v3752_v60 = vpack.c.bf16 %v265_v51, %v264_v50  ;;  %v266_v5 = vld [vmem:[#allocation6 + $0x410] sm:$0xff] }
  0x7d   :  { %3729 = vmatpush3.bf16.msra.mxu1 %v3728_v42  ;;  %v281_v42 = vld [vmem:[#allocation6 + $0x488] sm:$0xff]  ;;  %v3716_v46 = vpack.c.bf16 %v215_v39, %v214_v38  ;;  %v132_v7 = vld [vmem:[%s4945_s0 + $0x10] sm:$0xff]  ;;  %v284_v11 = vld [vmem:[#allocation6 + $0x4a0] sm:$0xff] }
  0x7e   :  { %3731 = vmatprep.subr.bf16.mxu1 %v3730_v45  ;;  %v247_v45 = vld [vmem:[#allocation6 + $0x378] sm:$0xff]  ;;  %v4728_v13 = vrot.slane %v132_v7, %v4704_v22  ;;  %v560_v14 = vcombine.high %v132_v7, %v132_v7  ;;  %v298_v16 = vld [vmem:[#allocation6 + $0x510] sm:$0xff]  ;;  %v316_v19 = vld [vmem:[#allocation6 + $0x5a0] sm:$0xff] }
  0x7f   :  { %3701 = vmatpush3.bf16.msra.mxu0 %v3700_v49  ;;  %v3750_v49 = vpack.c.bf16 %v281_v42, %v280_v41  ;;  %v3748_v54 = vpack.c.bf16 %v247_v45, %v246_v44  ;;  %v299_v17 = vld [vmem:[#allocation6 + $0x518] sm:$0xff]  ;;  %v317_v20 = vld [vmem:[#allocation6 + $0x5a8] sm:$0xff]  ;;  %v286_v27 = vld [vmem:[#allocation6 + $0x4b0] sm:$0xff] }
  0x80   :  { %3703 = vmatprep.subr.bf16.mxu0 %v3702_v55  ;;  %v282_v55 = vld [vmem:[#allocation6 + $0x490] sm:$0xff]  ;;  %v4734_v23 = vrot.slane %v560_v14, %v4704_v22  ;;  %v3788_v26 = vpack.c.bf16 %v299_v17, %v298_v16  ;;  %v3790_v30 = vpack.c.bf16 %v317_v20, %v316_v19  ;;  %v301_v32 = vld [vmem:[#allocation6 + $0x528] sm:$0xff]  ;;  %v288_v39 = vld [vmem:[#allocation6 + $0x4c0] sm:$0xff] }
  0x81   :  { %3733 = vmatpush3.bf16.msra.mxu1 %v3732_v58  ;;  %v296_v58 = vld [vmem:[#allocation6 + $0x500] sm:$0xff]  ;;  %v3754_v2 = vpack.c.bf16 %v283_v56, %v282_v55  ;;  %v270_v36 = vld [vmem:[#allocation6 + $0x430] sm:$0xff]  ;;  %v293_v7 = vld [vmem:[#allocation6 + $0x4e8] sm:$0xff] }
  0x82   :  { %3735 = vmatprep.subr.bf16.mxu1 %v3734_v63  ;;  %v315_v63 = vld [vmem:[#allocation6 + $0x598] sm:$0xff]  ;;  %v3784_v10 = vpack.c.bf16 %v297_v59, %v296_v58  ;;  %v576_v29 = vcombine.high %v4734_v23, %v4734_v23  ;;  %v302_v42 = vld [vmem:[#allocation6 + $0x530] sm:$0xff]  ;;  %v320_v45 = vld [vmem:[#allocation6 + $0x5c0] sm:$0xff] }
  0x83   :  { %3705 = vmatpush3.bf16.msra.mxu0 %v3704_v6  ;;  %v267_v6 = vld [vmem:[#allocation6 + $0x418] sm:$0xff]  ;;  %v272_v48 = vld [vmem:[#allocation6 + $0x440] sm:$0xff]  ;;  %v290_v51 = vld [vmem:[#allocation6 + $0x4d0] sm:$0xff] }
  0x84   :  { %3707 = vmatprep.subr.bf16.mxu0 %v3706_v12  ;;  %v285_v12 = vld [vmem:[#allocation6 + $0x4a8] sm:$0xff]  ;;  %v304_v56 = vld [vmem:[#allocation6 + $0x540] sm:$0xff]  ;;  %v322_v59 = vld [vmem:[#allocation6 + $0x5d0] sm:$0xff] }
  0x85   :  { %3737 = vmatpush3.bf16.msra.mxu1 %v3736_v15  ;;  %v3786_v15 = vpack.c.bf16 %v315_v63, %v314_v61  ;;  %v3758_v24 = vpack.c.bf16 %v285_v12, %v284_v11  ;;  %v274_v63 = vld [vmem:[#allocation6 + $0x450] sm:$0xff]  ;;  %v307_v12 = vld [vmem:[#allocation6 + $0x558] sm:$0xff]  ;;  %v325_v16 = vld [vmem:[#allocation6 + $0x5e8] sm:$0xff] }
  0x86   :  { %3739 = vmatprep.subr.bf16.mxu1 %v3738_v18  ;;  %v3756_v18 = vpack.c.bf16 %v267_v6, %v266_v5  ;;  %v292_v6 = vld [vmem:[#allocation6 + $0x4e0] sm:$0xff]  ;;  %v306_v11 = vld [vmem:[#allocation6 + $0x550] sm:$0xff]  ;;  %v277_v19 = vld [vmem:[#allocation6 + $0x468] sm:$0xff] }
  0x87   :  { %3709 = vmatpush3.bf16.msra.mxu0 %v3708_v21  ;;  %v575_v21 = vcombine.high %v4728_v13, %v4728_v13  ;;  %v3774_v17 = vpack.c.bf16 %v293_v7, %v292_v6  ;;  %v3804_v20 = vpack.c.bf16 %v307_v12, %v306_v11  ;;  %v349_v6 = vld [vmem:[#allocation6 + $0x6a8] sm:$0xff]  ;;  %v362_v11 = vld [vmem:[#allocation6 + $0x710] sm:$0xff]  ;;  %v363_v12 = vld [vmem:[#allocation6 + $0x718] sm:$0xff] }
  0x88   :  { %3711 = vmatprep.subr.bf16.mxu0 %v3710_v25  ;;  %v268_v25 = vld [vmem:[#allocation6 + $0x420] sm:$0xff] }
  0x89   :  { %3741 = vmatpush3.bf16.msra.mxu1 %v3740_v28  ;;  %v287_v28 = vld [vmem:[#allocation6 + $0x4b8] sm:$0xff] }
  0x8a   :  { %3743 = vmatprep.subr.bf16.mxu1 %v3742_v31  ;;  %v300_v31 = vld [vmem:[#allocation6 + $0x520] sm:$0xff]  ;;  %v3762_v35 = vpack.c.bf16 %v287_v28, %v286_v27  ;;  %v133_v27 = vld [vmem:[%s4945_s0 + $0x18] sm:$0xff] }
  0x8b   :  { %3713 = vmatpush3.bf16.msra.mxu0 %v3712_v34  ;;  %v318_v34 = vld [vmem:[#allocation6 + $0x5b0] sm:$0xff]  ;;  %v3792_v38 = vpack.c.bf16 %v301_v32, %v300_v31 }
  0x8c   :  { %3715 = vmatprep.subr.bf16.mxu0 %v3714_v37  ;;  %v271_v37 = vld [vmem:[#allocation6 + $0x438] sm:$0xff]  ;;  %v278_v32 = vld [vmem:[#allocation6 + $0x470] sm:$0xff] }
  0x8d   :  { %3745 = vmatpush3.bf16.msra.mxu1 %v3744_v40  ;;  %v289_v40 = vld [vmem:[#allocation6 + $0x4c8] sm:$0xff]  ;;  %v3764_v44 = vpack.c.bf16 %v271_v37, %v270_v36  ;;  %v577_v36 = vcombine.high %v133_v27, %v133_v27 }
  0x8e   :  { %3747 = vmatprep.subr.bf16.mxu1 %v3746_v43  ;;  %v303_v43 = vld [vmem:[#allocation6 + $0x538] sm:$0xff]  ;;  %v3766_v47 = vpack.c.bf16 %v289_v40, %v288_v39 }
  0x8f   :  { %3717 = vmatpush3.bf16.msra.mxu0 %v3716_v46  ;;  %v321_v46 = vld [vmem:[#allocation6 + $0x5c8] sm:$0xff]  ;;  %v3796_v50 = vpack.c.bf16 %v303_v43, %v302_v42  ;;  %v311_v39 = vld [vmem:[#allocation6 + $0x578] sm:$0xff]  ;;  %v4743_v43 = vrot.slane %v133_v27, %v4704_v22  ;;  %v382_v27 = vld [vmem:[#allocation6 + $0x7b0] sm:$0xff] }
  0x90   :  { %3751 = vmatprep.subr.bf16.mxu0 %v3750_v49  ;;  %v273_v49 = vld [vmem:[#allocation6 + $0x448] sm:$0xff]  ;;  %v3798_v55 = vpack.c.bf16 %v321_v46, %v320_v45  ;;  %v328_v45 = vld [vmem:[#allocation6 + $0x600] sm:$0xff] }
  0x91   :  { %3749 = vmatpush3.bf16.msra.mxu1 %v3748_v54  ;;  %v291_v54 = vld [vmem:[#allocation6 + $0x4d8] sm:$0xff]  ;;  %v3768_v58 = vpack.c.bf16 %v273_v49, %v272_v48  ;;  %v377_v42 = vld [vmem:[#allocation6 + $0x788] sm:$0xff]  ;;  %v346_v48 = vld [vmem:[#allocation6 + $0x690] sm:$0xff] }
  0x92   :  { %857 = vmatmul.mubr.f32.vlgmr.msra.gmra.mrb[2].mxu0 %v4715_v52  ;;  %3783 = vmatprep.subr.bf16.mxu1 %v3782_v57  ;;  %v269_v52 = vld [vmem:[#allocation6 + $0x428] sm:$0xff]  ;;  %v3770_v61 = vpack.c.bf16 %v291_v54, %v290_v51  ;;  %v347_v49 = vld [vmem:[#allocation6 + $0x698] sm:$0xff]  ;;  %v360_v54 = vld [vmem:[#allocation6 + $0x700] sm:$0xff] }
  0x93   :  { %3753 = vmatpush3.bf16.msra.mxu0 %v3752_v60  ;;  %996 = vmatprep.mubr.f32.mxu0 %v575_v21  ;;  %v3760_v33 = vpack.c.bf16 %v269_v52, %v268_v25  ;;  %v305_v57 = vld [vmem:[#allocation6 + $0x548] sm:$0xff]  ;;  %v323_v60 = vld [vmem:[#allocation6 + $0x5d8] sm:$0xff]  ;;  %v294_v21 = vld [vmem:[#allocation6 + $0x4f0] sm:$0xff] }
  0x94   :  { %927 = vmatmul.mubr.f32.vlgmr.msra.gmra.mrb[2].mxu1 %v4720_v62  ;;  %3755 = vmatprep.subr.bf16.mxu0 %v3754_v2  ;;  %v319_v62 = vld [vmem:[#allocation6 + $0x5b8] sm:$0xff]  ;;  %v3800_v5 = vpack.c.bf16 %v305_v57, %v304_v56  ;;  %v308_v52 = vld [vmem:[#allocation6 + $0x560] sm:$0xff]  ;;  %v329_v46 = vld [vmem:[#allocation6 + $0x608] sm:$0xff] }
  0x95   :  { %3785 = vmatpush3.bf16.msra.mxu1 %v3784_v10  ;;  %1066 = vmatprep.mubr.f32.mxu1 %v576_v29  ;;  %v3794_v41 = vpack.c.bf16 %v319_v62, %v318_v34  ;;  %v275_v2 = vld [vmem:[#allocation6 + $0x458] sm:$0xff]  ;;  %v3802_v10 = vpack.c.bf16 %v323_v60, %v322_v59  ;;  %v326_v29 = vld [vmem:[#allocation6 + $0x5f0] sm:$0xff]  ;;  %v344_v62 = vld [vmem:[#allocation6 + $0x680] sm:$0xff]  ;;  %v3816_v56 = vpack.c.bf16 %v329_v46, %v328_v45 }
  0x96   :  { %3787 = vmatprep.subr.bf16.mxu1 %v3786_v15  ;;  %v3772_v14 = vpack.c.bf16 %v275_v2, %v274_v63  ;;  %v324_v15 = vld [vmem:[#allocation6 + $0x5e0] sm:$0xff]  ;;  %v378_v57 = vld [vmem:[#allocation6 + $0x790] sm:$0xff]  ;;  %v592_v59 = vcombine.high %v4743_v43, %v4743_v43  ;;  %v3818_v60 = vpack.c.bf16 %v347_v49, %v346_v48  ;;  %v331_v63 = vld [vmem:[#allocation6 + $0x618] sm:$0xff] }
  0x97   :  { %3757 = vmatpush3.bf16.msra.mxu0 %v3756_v18  ;;  %v276_v18 = vld [vmem:[#allocation6 + $0x460] sm:$0xff]  ;;  %v3806_v25 = vpack.c.bf16 %v325_v16, %v324_v15  ;;  %v381_v16 = vld [vmem:[#allocation6 + $0x7a8] sm:$0xff]  ;;  %v355_v45 = vld [vmem:[#allocation6 + $0x6d8] sm:$0xff] }
  0x98   :  { %3759 = vmatprep.subr.bf16.mxu0 %v3758_v24  ;;  %v295_v24 = vld [vmem:[#allocation6 + $0x4f8] sm:$0xff]  ;;  %v3776_v28 = vpack.c.bf16 %v277_v19, %v276_v18  ;;  %v380_v15 = vld [vmem:[#allocation6 + $0x7a0] sm:$0xff]  ;;  %v333_v19 = vld [vmem:[#allocation6 + $0x628] sm:$0xff] }
  0x99   :  { %3789 = vmatpush3.bf16.msra.mxu1 %v3788_v26  ;;  %v309_v26 = vld [vmem:[#allocation6 + $0x568] sm:$0xff]  ;;  %v3778_v31 = vpack.c.bf16 %v295_v24, %v294_v21  ;;  %v332_v18 = vld [vmem:[#allocation6 + $0x620] sm:$0xff]  ;;  %v350_v21 = vld [vmem:[#allocation6 + $0x6b0] sm:$0xff] }
  0x9a   :  { %3791 = vmatprep.subr.bf16.mxu1 %v3790_v30  ;;  %v327_v30 = vld [vmem:[#allocation6 + $0x5f8] sm:$0xff]  ;;  %v3808_v34 = vpack.c.bf16 %v309_v26, %v308_v52  ;;  %v365_v52 = vld [vmem:[#allocation6 + $0x728] sm:$0xff]  ;;  %v3824_v26 = vpack.c.bf16 %v333_v19, %v332_v18  ;;  %v372_v18 = vld [vmem:[#allocation6 + $0x760] sm:$0xff] }
  0x9b   :  { %3761 = vmatpush3.bf16.msra.mxu0 %v3760_v33  ;;  %v279_v33 = vld [vmem:[#allocation6 + $0x478] sm:$0xff]  ;;  %v3810_v37 = vpack.c.bf16 %v327_v30, %v326_v29  ;;  %v369_v48 = vld [vmem:[#allocation6 + $0x748] sm:$0xff] }
  0x9c   :  { %3763 = vmatprep.subr.bf16.mxu0 %v3762_v35  ;;  %v345_v35 = vld [vmem:[#allocation6 + $0x688] sm:$0xff]  ;;  %v3780_v40 = vpack.c.bf16 %v279_v33, %v278_v32  ;;  %v351_v24 = vld [vmem:[#allocation6 + $0x6b8] sm:$0xff]  ;;  %v352_v32 = vld [vmem:[#allocation6 + $0x6c0] sm:$0xff] }
  0x9d   :  { %3793 = vmatpush3.bf16.msra.mxu1 %v3792_v38  ;;  %v310_v38 = vld [vmem:[#allocation6 + $0x570] sm:$0xff]  ;;  %v3826_v29 = vpack.c.bf16 %v351_v24, %v350_v21  ;;  %v335_v30 = vld [vmem:[#allocation6 + $0x638] sm:$0xff]  ;;  %v353_v33 = vld [vmem:[#allocation6 + $0x6c8] sm:$0xff] }
  0x9e   :  { %3795 = vmatprep.subr.bf16.mxu1 %v3794_v41  ;;  %v376_v41 = vld [vmem:[#allocation6 + $0x780] sm:$0xff]  ;;  %v373_v19 = vld [vmem:[#allocation6 + $0x768] sm:$0xff]  ;;  %v390_v24 = vld [vmem:[#allocation6 + $0x7f0] sm:$0xff] }
  0x9f   :  { %3765 = vmatpush3.bf16.msra.mxu0 %v3764_v44  ;;  %v3814_v44 = vpack.c.bf16 %v345_v35, %v344_v62  ;;  %v3846_v51 = vpack.c.bf16 %v377_v42, %v376_v41  ;;  %v366_v62 = vld [vmem:[#allocation6 + $0x730] sm:$0xff]  ;;  %v367_v35 = vld [vmem:[#allocation6 + $0x738] sm:$0xff]  ;;  %v337_v41 = vld [vmem:[#allocation6 + $0x648] sm:$0xff] }
  0xa0   :  { %3767 = vmatprep.subr.bf16.mxu0 %v3766_v47  ;;  %v3812_v47 = vpack.c.bf16 %v311_v39, %v310_v38  ;;  %v385_v38 = vld [vmem:[#allocation6 + $0x7c8] sm:$0xff]  ;;  %v3830_v39 = vpack.c.bf16 %v353_v33, %v352_v32  ;;  %v3860_v42 = vpack.c.bf16 %v367_v35, %v366_v62  ;;  %v375_v32 = vld [vmem:[#allocation6 + $0x778] sm:$0xff] }
  0xa1   :  { %3797 = vmatpush3.bf16.msra.mxu1 %v3796_v50  ;;  %v4746_v50 = vrot.slane %v577_v36, %v4704_v22  ;;  %v441_v62 = vld [vmem:[#allocation6 + $0x988] sm:$0xff] }
  0xa2   :  { %3799 = vmatprep.subr.bf16.mxu1 %v3798_v55  ;;  %v361_v55 = vld [vmem:[#allocation6 + $0x708] sm:$0xff] }
  0xa3   :  { %3769 = vmatpush3.bf16.msra.mxu0 %v3768_v58  ;;  %v379_v58 = vld [vmem:[#allocation6 + $0x798] sm:$0xff]  ;;  %v3848_v2 = vpack.c.bf16 %v361_v55, %v360_v54  ;;  %v593_v7 = vcombine.high %v4746_v50, %v4746_v50 }
  0xa4   :  { %3771 = vmatprep.subr.bf16.mxu0 %v3770_v61  ;;  %v330_v61 = vld [vmem:[#allocation6 + $0x610] sm:$0xff]  ;;  %v387_v54 = vld [vmem:[#allocation6 + $0x7d8] sm:$0xff] }
  0xa5   :  { %3801 = vmatpush3.bf16.msra.mxu1 %v3800_v5  ;;  %v348_v5 = vld [vmem:[#allocation6 + $0x6a0] sm:$0xff] }
  0xa6   :  { %3803 = vmatprep.subr.bf16.mxu1 %v3802_v10  ;;  %v3850_v10 = vpack.c.bf16 %v379_v58, %v378_v57  ;;  %v339_v57 = vld [vmem:[#allocation6 + $0x658] sm:$0xff] }
  0xa7   :  { %3773 = vmatpush3.bf16.msra.mxu0 %v3772_v14  ;;  %v3820_v14 = vpack.c.bf16 %v331_v63, %v330_v61  ;;  %v370_v63 = vld [vmem:[#allocation6 + $0x750] sm:$0xff] }
  0xa8   :  { %3775 = vmatprep.subr.bf16.mxu0 %v3774_v17  ;;  %v3822_v17 = vpack.c.bf16 %v349_v6, %v348_v5  ;;  %v388_v6 = vld [vmem:[#allocation6 + $0x7e0] sm:$0xff] }
  0xa9   :  { %3805 = vmatpush3.bf16.msra.mxu1 %v3804_v20  ;;  %v3852_v20 = vpack.c.bf16 %v363_v12, %v362_v11  ;;  %v340_v11 = vld [vmem:[#allocation6 + $0x660] sm:$0xff]  ;;  %v341_v12 = vld [vmem:[#allocation6 + $0x668] sm:$0xff] }
  0xaa   :  { %3807 = vmatprep.subr.bf16.mxu1 %v3806_v25  ;;  %v364_v25 = vld [vmem:[#allocation6 + $0x720] sm:$0xff]  ;;  %v3840_v21 = vpack.c.bf16 %v341_v12, %v340_v11  ;;  %v397_v12 = vld [vmem:[#allocation6 + $0x828] sm:$0xff] }
  0xab   :  { %3777 = vmatpush3.bf16.msra.mxu0 %v3776_v28  ;;  %v383_v28 = vld [vmem:[#allocation6 + $0x7b8] sm:$0xff]  ;;  %v396_v11 = vld [vmem:[#allocation6 + $0x820] sm:$0xff] }
  0xac   :  { %3779 = vmatprep.subr.bf16.mxu0 %v3778_v31  ;;  %v3856_v31 = vpack.c.bf16 %v365_v52, %v364_v25  ;;  %v342_v52 = vld [vmem:[#allocation6 + $0x670] sm:$0xff] }
  0xad   :  { %3809 = vmatpush3.bf16.msra.mxu1 %v3808_v34  ;;  %v3858_v34 = vpack.c.bf16 %v383_v28, %v382_v27  ;;  %v3872_v27 = vpack.c.bf16 %v373_v19, %v372_v18  ;;  %v408_v28 = vld [vmem:[#allocation6 + $0x880] sm:$0xff]  ;;  %v429_v18 = vld [vmem:[#allocation6 + $0x928] sm:$0xff]  ;;  %v3888_v19 = vpack.c.bf16 %v397_v12, %v396_v11 }
  0xae   :  { %3811 = vmatprep.subr.bf16.mxu1 %v3810_v37  ;;  %v384_v37 = vld [vmem:[#allocation6 + $0x7c0] sm:$0xff]  ;;  %v437_v12 = vld [vmem:[#allocation6 + $0x968] sm:$0xff] }
  0xaf   :  { %3781 = vmatpush3.bf16.msra.mxu0 %v3780_v40  ;;  %v336_v40 = vld [vmem:[#allocation6 + $0x640] sm:$0xff]  ;;  %v3862_v46 = vpack.c.bf16 %v385_v38, %v384_v37  ;;  %v393_v38 = vld [vmem:[#allocation6 + $0x808] sm:$0xff] }
  0xb0   :  { %3815 = vmatprep.subr.bf16.mxu0 %v3814_v44  ;;  %v354_v44 = vld [vmem:[#allocation6 + $0x6d0] sm:$0xff]  ;;  %v3832_v49 = vpack.c.bf16 %v337_v41, %v336_v40  ;;  %v392_v37 = vld [vmem:[#allocation6 + $0x800] sm:$0xff]  ;;  %v411_v41 = vld [vmem:[#allocation6 + $0x898] sm:$0xff] }
  0xb1   :  { %3813 = vmatpush3.bf16.msra.mxu1 %v3812_v47  ;;  %v368_v47 = vld [vmem:[#allocation6 + $0x740] sm:$0xff]  ;;  %v3834_v55 = vpack.c.bf16 %v355_v45, %v354_v44  ;;  %v410_v40 = vld [vmem:[#allocation6 + $0x890] sm:$0xff] }
  0xb2   :  { %997 = vmatmul.mubr.f32.vlgmr.msra.gmra.mrb[4].mxu0 %v4728_v13  ;;  %3847 = vmatprep.subr.bf16.mxu1 %v3846_v51  ;;  %v3854_v13 = vpack.c.bf16 %v381_v16, %v380_v15  ;;  %v386_v51 = vld [vmem:[#allocation6 + $0x7d0] sm:$0xff]  ;;  %v3864_v58 = vpack.c.bf16 %v369_v48, %v368_v47  ;;  %v359_v16 = vld [vmem:[#allocation6 + $0x6f8] sm:$0xff]  ;;  %v424_v45 = vld [vmem:[#allocation6 + $0x900] sm:$0xff]  ;;  %v3880_v47 = vpack.c.bf16 %v393_v38, %v392_v37 }
  0xb3   :  { %3817 = vmatpush3.bf16.msra.mxu0 %v3816_v56  ;;  %1136 = vmatprep.mubr.f32.mxu0 %v592_v59  ;;  %v338_v56 = vld [vmem:[#allocation6 + $0x650] sm:$0xff]  ;;  %v356_v59 = vld [vmem:[#allocation6 + $0x6e0] sm:$0xff]  ;;  %v3866_v61 = vpack.c.bf16 %v387_v54, %v386_v51  ;;  %v3882_v54 = vpack.c.bf16 %v411_v41, %v410_v40  ;;  %v419_v37 = vld [vmem:[#allocation6 + $0x8d8] sm:$0xff] }
  0xb4   :  { %1067 = vmatmul.mubr.f32.vlgmr.msra.gmra.mrb[4].mxu1 %v4734_v23  ;;  %3819 = vmatprep.subr.bf16.mxu0 %v3818_v60  ;;  %v334_v23 = vld [vmem:[#allocation6 + $0x630] sm:$0xff]  ;;  %v357_v60 = vld [vmem:[#allocation6 + $0x6e8] sm:$0xff]  ;;  %v3836_v5 = vpack.c.bf16 %v339_v57, %v338_v56  ;;  %v395_v56 = vld [vmem:[#allocation6 + $0x818] sm:$0xff] }
  0xb5   :  { %3849 = vmatpush3.bf16.msra.mxu1 %v3848_v2  ;;  %1206 = vmatprep.mubr.f32.mxu1 %v593_v7  ;;  %v3828_v36 = vpack.c.bf16 %v335_v30, %v334_v23  ;;  %v371_v2 = vld [vmem:[#allocation6 + $0x758] sm:$0xff]  ;;  %v389_v7 = vld [vmem:[#allocation6 + $0x7e8] sm:$0xff]  ;;  %v358_v15 = vld [vmem:[#allocation6 + $0x6f0] sm:$0xff] }
  0xb6   :  { %3851 = vmatprep.subr.bf16.mxu1 %v3850_v10  ;;  %v3838_v10 = vpack.c.bf16 %v357_v60, %v356_v59  ;;  %v3842_v25 = vpack.c.bf16 %v359_v16, %v358_v15  ;;  %v442_v48 = vld [vmem:[#allocation6 + $0x990] sm:$0xff]  ;;  %v413_v59 = vld [vmem:[#allocation6 + $0x8a8] sm:$0xff]  ;;  %v415_v16 = vld [vmem:[#allocation6 + $0x8b8] sm:$0xff] }
  0xb7   :  { %3821 = vmatpush3.bf16.msra.mxu0 %v3820_v14  ;;  %v3868_v14 = vpack.c.bf16 %v371_v2, %v370_v63  ;;  %v426_v63 = vld [vmem:[#allocation6 + $0x910] sm:$0xff]  ;;  %v427_v2 = vld [vmem:[#allocation6 + $0x918] sm:$0xff]  ;;  %v433_v40 = vld [vmem:[#allocation6 + $0x948] sm:$0xff] }
  0xb8   :  { %3823 = vmatprep.subr.bf16.mxu0 %v3822_v17  ;;  %v3870_v17 = vpack.c.bf16 %v389_v7, %v388_v6  ;;  %v444_v6 = vld [vmem:[#allocation6 + $0x9a0] sm:$0xff]  ;;  %v445_v7 = vld [vmem:[#allocation6 + $0x9a8] sm:$0xff]  ;;  %v414_v15 = vld [vmem:[#allocation6 + $0x8b0] sm:$0xff] }
  0xb9   :  { %3853 = vmatpush3.bf16.msra.mxu1 %v3852_v20  ;;  %v134_v20 = vld [vmem:[%s4945_s0 + $0x20] sm:$0xff] }
  0xba   :  { %3855 = vmatprep.subr.bf16.mxu1 %v3854_v13  ;;  %v391_v13 = vld [vmem:[#allocation6 + $0x7f8] sm:$0xff]  ;;  %v594_v23 = vcombine.high %v134_v20, %v134_v20  ;;  %v4758_v35 = vrot.slane %v134_v20, %v4704_v22  ;;  %v446_v20 = vld [vmem:[#allocation6 + $0x9b0] sm:$0xff]  ;;  %v436_v11 = vld [vmem:[#allocation6 + $0x960] sm:$0xff] }
  0xbb   :  { %3825 = vmatpush3.bf16.msra.mxu0 %v3824_v26  ;;  %v343_v26 = vld [vmem:[#allocation6 + $0x678] sm:$0xff]  ;;  %v3874_v30 = vpack.c.bf16 %v391_v13, %v390_v24  ;;  %v3890_v24 = vpack.c.bf16 %v415_v16, %v414_v15  ;;  %v454_v16 = vld [vmem:[#allocation6 + $0x9f0] sm:$0xff] }
  0xbc   :  { %3827 = vmatprep.subr.bf16.mxu0 %v3826_v29  ;;  %v409_v29 = vld [vmem:[#allocation6 + $0x888] sm:$0xff]  ;;  %v3844_v33 = vpack.c.bf16 %v343_v26, %v342_v52  ;;  %v609_v51 = vcombine.high %v4758_v35, %v4758_v35  ;;  %v399_v13 = vld [vmem:[#allocation6 + $0x838] sm:$0xff]  ;;  %v416_v52 = vld [vmem:[#allocation6 + $0x8c0] sm:$0xff] }
  0xbd   :  { %3857 = vmatpush3.bf16.msra.mxu1 %v3856_v31  ;;  %v374_v31 = vld [vmem:[#allocation6 + $0x770] sm:$0xff]  ;;  %v417_v26 = vld [vmem:[#allocation6 + $0x8c8] sm:$0xff] }
  0xbe   :  { %3859 = vmatprep.subr.bf16.mxu1 %v3858_v34  ;;  %v440_v34 = vld [vmem:[#allocation6 + $0x980] sm:$0xff] }
  0xbf   :  { %3829 = vmatpush3.bf16.msra.mxu0 %v3828_v36  ;;  %v3878_v36 = vpack.c.bf16 %v409_v29, %v408_v28  ;;  %v3910_v44 = vpack.c.bf16 %v441_v62, %v440_v34  ;;  %v430_v28 = vld [vmem:[#allocation6 + $0x930] sm:$0xff]  ;;  %v431_v29 = vld [vmem:[#allocation6 + $0x938] sm:$0xff]  ;;  %v401_v34 = vld [vmem:[#allocation6 + $0x848] sm:$0xff] }
  0xc0   :  { %3831 = vmatprep.subr.bf16.mxu0 %v3830_v39  ;;  %v3876_v39 = vpack.c.bf16 %v375_v32, %v374_v31  ;;  %v449_v31 = vld [vmem:[#allocation6 + $0x9c8] sm:$0xff]  ;;  %v3894_v32 = vpack.c.bf16 %v417_v26, %v416_v52  ;;  %v3924_v62 = vpack.c.bf16 %v431_v29, %v430_v28  ;;  %v439_v52 = vld [vmem:[#allocation6 + $0x978] sm:$0xff] }
  0xc1   :  { %3861 = vmatpush3.bf16.msra.mxu1 %v3860_v42  ;;  %v4761_v42 = vrot.slane %v594_v23, %v4704_v22  ;;  %v505_v28 = vld [vmem:[#allocation6 + $0xb88] sm:$0xff] }
  0xc2   :  { %3863 = vmatprep.subr.bf16.mxu1 %v3862_v46  ;;  %v425_v46 = vld [vmem:[#allocation6 + $0x908] sm:$0xff] }
  0xc3   :  { %3833 = vmatpush3.bf16.msra.mxu0 %v3832_v49  ;;  %v443_v49 = vld [vmem:[#allocation6 + $0x998] sm:$0xff]  ;;  %v3912_v57 = vpack.c.bf16 %v425_v46, %v424_v45  ;;  %v610_v60 = vcombine.high %v4761_v42, %v4761_v42 }
  0xc4   :  { %3835 = vmatprep.subr.bf16.mxu0 %v3834_v55  ;;  %v394_v55 = vld [vmem:[#allocation6 + $0x810] sm:$0xff]  ;;  %v451_v45 = vld [vmem:[#allocation6 + $0x9d8] sm:$0xff] }
  0xc5   :  { %3865 = vmatpush3.bf16.msra.mxu1 %v3864_v58  ;;  %v412_v58 = vld [vmem:[#allocation6 + $0x8a0] sm:$0xff] }
  0xc6   :  { %3867 = vmatprep.subr.bf16.mxu1 %v3866_v61  ;;  %v3914_v61 = vpack.c.bf16 %v443_v49, %v442_v48  ;;  %v403_v48 = vld [vmem:[#allocation6 + $0x858] sm:$0xff] }
  0xc7   :  { %3837 = vmatpush3.bf16.msra.mxu0 %v3836_v5  ;;  %v3884_v5 = vpack.c.bf16 %v395_v56, %v394_v55  ;;  %v434_v56 = vld [vmem:[#allocation6 + $0x950] sm:$0xff] }
  0xc8   :  { %3839 = vmatprep.subr.bf16.mxu0 %v3838_v10  ;;  %v3886_v10 = vpack.c.bf16 %v413_v59, %v412_v58  ;;  %v452_v59 = vld [vmem:[#allocation6 + $0x9e0] sm:$0xff] }
  0xc9   :  { %3869 = vmatpush3.bf16.msra.mxu1 %v3868_v14  ;;  %v3916_v14 = vpack.c.bf16 %v427_v2, %v426_v63  ;;  %v404_v63 = vld [vmem:[#allocation6 + $0x860] sm:$0xff]  ;;  %v405_v2 = vld [vmem:[#allocation6 + $0x868] sm:$0xff] }
  0xca   :  { %3871 = vmatprep.subr.bf16.mxu1 %v3870_v17  ;;  %v428_v17 = vld [vmem:[#allocation6 + $0x920] sm:$0xff]  ;;  %v3904_v15 = vpack.c.bf16 %v405_v2, %v404_v63  ;;  %v461_v2 = vld [vmem:[#allocation6 + $0xa28] sm:$0xff] }
  0xcb   :  { %3841 = vmatpush3.bf16.msra.mxu0 %v3840_v21  ;;  %v447_v21 = vld [vmem:[#allocation6 + $0x9b8] sm:$0xff]  ;;  %v460_v63 = vld [vmem:[#allocation6 + $0xa20] sm:$0xff] }
  0xcc   :  { %3843 = vmatprep.subr.bf16.mxu0 %v3842_v25  ;;  %v3920_v25 = vpack.c.bf16 %v429_v18, %v428_v17  ;;  %v406_v18 = vld [vmem:[#allocation6 + $0x870] sm:$0xff] }
  0xcd   :  { %3873 = vmatpush3.bf16.msra.mxu1 %v3872_v27  ;;  %v3922_v27 = vpack.c.bf16 %v447_v21, %v446_v20  ;;  %v3936_v20 = vpack.c.bf16 %v437_v12, %v436_v11  ;;  %v472_v21 = vld [vmem:[#allocation6 + $0xa80] sm:$0xff]  ;;  %v493_v11 = vld [vmem:[#allocation6 + $0xb28] sm:$0xff]  ;;  %v3952_v12 = vpack.c.bf16 %v461_v2, %v460_v63 }
  0xce   :  { %3875 = vmatprep.subr.bf16.mxu1 %v3874_v30  ;;  %v448_v30 = vld [vmem:[#allocation6 + $0x9c0] sm:$0xff]  ;;  %v501_v2 = vld [vmem:[#allocation6 + $0xb68] sm:$0xff] }
  0xcf   :  { %3845 = vmatpush3.bf16.msra.mxu0 %v3844_v33  ;;  %v400_v33 = vld [vmem:[#allocation6 + $0x840] sm:$0xff]  ;;  %v3926_v38 = vpack.c.bf16 %v449_v31, %v448_v30  ;;  %v457_v31 = vld [vmem:[#allocation6 + $0xa08] sm:$0xff] }
  0xd0   :  { %3879 = vmatprep.subr.bf16.mxu0 %v3878_v36  ;;  %v418_v36 = vld [vmem:[#allocation6 + $0x8d0] sm:$0xff]  ;;  %v3896_v41 = vpack.c.bf16 %v401_v34, %v400_v33  ;;  %v456_v30 = vld [vmem:[#allocation6 + $0xa00] sm:$0xff]  ;;  %v475_v34 = vld [vmem:[#allocation6 + $0xa98] sm:$0xff] }
  0xd1   :  { %3877 = vmatpush3.bf16.msra.mxu1 %v3876_v39  ;;  %v432_v39 = vld [vmem:[#allocation6 + $0x940] sm:$0xff]  ;;  %v3898_v46 = vpack.c.bf16 %v419_v37, %v418_v36  ;;  %v474_v33 = vld [vmem:[#allocation6 + $0xa90] sm:$0xff] }
  0xd2   :  { %1137 = vmatmul.mubr.f32.vlgmr.msra.gmra.mrb[6].mxu0 %v4743_v43  ;;  %3911 = vmatprep.subr.bf16.mxu1 %v3910_v44  ;;  %v3918_v43 = vpack.c.bf16 %v445_v7, %v444_v6  ;;  %v450_v44 = vld [vmem:[#allocation6 + $0x9d0] sm:$0xff]  ;;  %v3928_v49 = vpack.c.bf16 %v433_v40, %v432_v39  ;;  %v423_v7 = vld [vmem:[#allocation6 + $0x8f8] sm:$0xff]  ;;  %v488_v37 = vld [vmem:[#allocation6 + $0xb00] sm:$0xff]  ;;  %v3944_v39 = vpack.c.bf16 %v457_v31, %v456_v30 }
  0xd3   :  { %3881 = vmatpush3.bf16.msra.mxu0 %v3880_v47  ;;  %1276 = vmatprep.mubr.f32.mxu0 %v609_v51  ;;  %v402_v47 = vld [vmem:[#allocation6 + $0x850] sm:$0xff]  ;;  %v420_v51 = vld [vmem:[#allocation6 + $0x8e0] sm:$0xff]  ;;  %v3930_v55 = vpack.c.bf16 %v451_v45, %v450_v44  ;;  %v3946_v45 = vpack.c.bf16 %v475_v34, %v474_v33  ;;  %v483_v30 = vld [vmem:[#allocation6 + $0xad8] sm:$0xff] }
  0xd4   :  { %1207 = vmatmul.mubr.f32.vlgmr.msra.gmra.mrb[6].mxu1 %v4746_v50  ;;  %3883 = vmatprep.subr.bf16.mxu0 %v3882_v54  ;;  %v398_v50 = vld [vmem:[#allocation6 + $0x830] sm:$0xff]  ;;  %v421_v54 = vld [vmem:[#allocation6 + $0x8e8] sm:$0xff]  ;;  %v3900_v58 = vpack.c.bf16 %v403_v48, %v402_v47  ;;  %v459_v47 = vld [vmem:[#allocation6 + $0xa18] sm:$0xff] }
  0xd5   :  { %3913 = vmatpush3.bf16.msra.mxu1 %v3912_v57  ;;  %1346 = vmatprep.mubr.f32.mxu1 %v610_v60  ;;  %v3892_v23 = vpack.c.bf16 %v399_v13, %v398_v50  ;;  %v435_v57 = vld [vmem:[#allocation6 + $0x958] sm:$0xff]  ;;  %v453_v60 = vld [vmem:[#allocation6 + $0x9e8] sm:$0xff]  ;;  %v422_v6 = vld [vmem:[#allocation6 + $0x8f0] sm:$0xff] }
  0xd6   :  { %3915 = vmatprep.subr.bf16.mxu1 %v3914_v61  ;;  %v3902_v61 = vpack.c.bf16 %v421_v54, %v420_v51  ;;  %v3906_v17 = vpack.c.bf16 %v423_v7, %v422_v6  ;;  %v506_v40 = vld [vmem:[#allocation6 + $0xb90] sm:$0xff]  ;;  %v477_v51 = vld [vmem:[#allocation6 + $0xaa8] sm:$0xff]  ;;  %v479_v7 = vld [vmem:[#allocation6 + $0xab8] sm:$0xff] }
  0xd7   :  { %3885 = vmatpush3.bf16.msra.mxu0 %v3884_v5  ;;  %v3932_v5 = vpack.c.bf16 %v435_v57, %v434_v56  ;;  %v490_v56 = vld [vmem:[#allocation6 + $0xb10] sm:$0xff]  ;;  %v491_v57 = vld [vmem:[#allocation6 + $0xb18] sm:$0xff]  ;;  %v497_v33 = vld [vmem:[#allocation6 + $0xb48] sm:$0xff] }
  0xd8   :  { %3887 = vmatprep.subr.bf16.mxu0 %v3886_v10  ;;  %v3934_v10 = vpack.c.bf16 %v453_v60, %v452_v59  ;;  %v508_v59 = vld [vmem:[#allocation6 + $0xba0] sm:$0xff]  ;;  %v509_v60 = vld [vmem:[#allocation6 + $0xba8] sm:$0xff]  ;;  %v478_v6 = vld [vmem:[#allocation6 + $0xab0] sm:$0xff] }
  0xd9   :  { %3917 = vmatpush3.bf16.msra.mxu1 %v3916_v14  ;;  %v135_v14 = vld [vmem:[%s4945_s0 + $0x28] sm:$0xff]  ;;  %v500_v63 = vld [vmem:[#allocation6 + $0xb60] sm:$0xff]  ;;  %s4586_s0 = smov [#allocation2]  }
  0xda   :  { %3919 = vmatprep.subr.bf16.mxu1 %v3918_v43  ;;  %v455_v43 = vld [vmem:[#allocation6 + $0x9f8] sm:$0xff]  ;;  %v611_v50 = vcombine.high %v135_v14, %v135_v14  ;;  %v4773_v29 = vrot.slane %v135_v14, %v4704_v22  ;;  %v510_v14 = vld [vmem:[#allocation6 + $0xbb0] sm:$0xff]  ;;  %s86_s20 = sshll.u32 %s4586_s0, 4  ;;  %s87_s20 = int_to_ptr.vmem [resolvable:$true] %s86_s20 }
  0xdb   :  { %3889 = vmatpush3.bf16.msra.mxu0 %v3888_v19  ;;  %v407_v19 = vld [vmem:[#allocation6 + $0x878] sm:$0xff]  ;;  %v3938_v13 = vpack.c.bf16 %v455_v43, %v454_v16  ;;  %v3954_v16 = vpack.c.bf16 %v479_v7, %v478_v6  ;;  %v518_v6 = vld [vmem:[#allocation6 + $0xbf0] sm:$0xff] }
  0xdc   :  { %3891 = vmatprep.subr.bf16.mxu0 %v3890_v24  ;;  %v473_v24 = vld [vmem:[#allocation6 + $0xa88] sm:$0xff]  ;;  %v3908_v26 = vpack.c.bf16 %v407_v19, %v406_v18  ;;  %v626_v44 = vcombine.high %v4773_v29, %v4773_v29  ;;  %v463_v43 = vld [vmem:[#allocation6 + $0xa38] sm:$0xff]  ;;  %v480_v18 = vld [vmem:[#allocation6 + $0xac0] sm:$0xff] }
  0xdd   :  { %3921 = vmatpush3.bf16.msra.mxu1 %v3920_v25  ;;  %v438_v25 = vld [vmem:[#allocation6 + $0x970] sm:$0xff]  ;;  %v481_v19 = vld [vmem:[#allocation6 + $0xac8] sm:$0xff]  ;;  %v519_v7 = vld [vmem:[#allocation6 + $0xbf8] sm:$0xff] }
  0xde   :  { %3923 = vmatprep.subr.bf16.mxu1 %v3922_v27  ;;  %v504_v27 = vld [vmem:[#allocation6 + $0xb80] sm:$0xff] }
  0xdf   :  { %3893 = vmatpush3.bf16.msra.mxu0 %v3892_v23  ;;  %v3942_v23 = vpack.c.bf16 %v473_v24, %v472_v21  ;;  %v3974_v36 = vpack.c.bf16 %v505_v28, %v504_v27  ;;  %v494_v21 = vld [vmem:[#allocation6 + $0xb30] sm:$0xff]  ;;  %v495_v24 = vld [vmem:[#allocation6 + $0xb38] sm:$0xff]  ;;  %v465_v27 = vld [vmem:[#allocation6 + $0xa48] sm:$0xff] }
  0xe0   :  { %3895 = vmatprep.subr.bf16.mxu0 %v3894_v32  ;;  %v3940_v32 = vpack.c.bf16 %v439_v52, %v438_v25  ;;  %v513_v25 = vld [vmem:[#allocation6 + $0xbc8] sm:$0xff]  ;;  %v3958_v52 = vpack.c.bf16 %v481_v19, %v480_v18  ;;  %v3988_v28 = vpack.c.bf16 %v495_v24, %v494_v21  ;;  %v114_v18 = vld [vmem:[#allocation12] ss:$0 sm:$0xff] }
  0xe1   :  { %3925 = vmatpush3.bf16.msra.mxu1 %v3924_v62  ;;  %v4776_v62 = vrot.slane %v611_v50, %v4704_v22 }
  0xe2   :  { %3927 = vmatprep.subr.bf16.mxu1 %v3926_v38  ;;  %v489_v38 = vld [vmem:[#allocation6 + $0xb08] sm:$0xff] }
  0xe3   :  { %3897 = vmatpush3.bf16.msra.mxu0 %v3896_v41  ;;  %v507_v41 = vld [vmem:[#allocation6 + $0xb98] sm:$0xff]  ;;  %v3976_v48 = vpack.c.bf16 %v489_v38, %v488_v37  ;;  %v627_v54 = vcombine.high %v4776_v62, %v4776_v62 }
  0xe4   :  { %3899 = vmatprep.subr.bf16.mxu0 %v3898_v46  ;;  %v458_v46 = vld [vmem:[#allocation6 + $0xa10] sm:$0xff]  ;;  %v515_v37 = vld [vmem:[#allocation6 + $0xbd8] sm:$0xff] }
  0xe5   :  { %3929 = vmatpush3.bf16.msra.mxu1 %v3928_v49  ;;  %v476_v49 = vld [vmem:[#allocation6 + $0xaa0] sm:$0xff] }
  0xe6   :  { %3931 = vmatprep.subr.bf16.mxu1 %v3930_v55  ;;  %v3978_v55 = vpack.c.bf16 %v507_v41, %v506_v40  ;;  %v467_v40 = vld [vmem:[#allocation6 + $0xa58] sm:$0xff] }
  0xe7   :  { %3901 = vmatpush3.bf16.msra.mxu0 %v3900_v58  ;;  %v3948_v58 = vpack.c.bf16 %v459_v47, %v458_v46  ;;  %v498_v47 = vld [vmem:[#allocation6 + $0xb50] sm:$0xff] }
  0xe8   :  { %3903 = vmatprep.subr.bf16.mxu0 %v3902_v61  ;;  %v3950_v61 = vpack.c.bf16 %v477_v51, %v476_v49  ;;  %v516_v51 = vld [vmem:[#allocation6 + $0xbe0] sm:$0xff] }
  0xe9   :  { %3933 = vmatpush3.bf16.msra.mxu1 %v3932_v5  ;;  %v3980_v5 = vpack.c.bf16 %v491_v57, %v490_v56  ;;  %v468_v56 = vld [vmem:[#allocation6 + $0xa60] sm:$0xff]  ;;  %v469_v57 = vld [vmem:[#allocation6 + $0xa68] sm:$0xff] }
  0xea   :  { %3935 = vmatprep.subr.bf16.mxu1 %v3934_v10  ;;  %v492_v10 = vld [vmem:[#allocation6 + $0xb20] sm:$0xff] }
  0xeb   :  { %3905 = vmatpush3.bf16.msra.mxu0 %v3904_v15  ;;  %v511_v15 = vld [vmem:[#allocation6 + $0xbb8] sm:$0xff] }
  0xec   :  { %3907 = vmatprep.subr.bf16.mxu0 %v3906_v17  ;;  %v3984_v17 = vpack.c.bf16 %v493_v11, %v492_v10  ;;  %v470_v10 = vld [vmem:[#allocation6 + $0xa70] sm:$0xff]  ;;  %v471_v11 = vld [vmem:[#allocation6 + $0xa78] sm:$0xff] }
  0xed   :  { %3937 = vmatpush3.bf16.msra.mxu1 %v3936_v20  ;;  %v3986_v20 = vpack.c.bf16 %v511_v15, %v510_v14  ;;  %v4002_v14 = vpack.c.bf16 %v519_v7, %v518_v6  ;;  %v502_v15 = vld [vmem:[#allocation6 + $0xb70] sm:$0xff]  ;;  %v1525_v6 = vld [vmem:[#allocation9 + $0xe0] sm:$0xff] }
  0xee   :  { %3939 = vmatprep.subr.bf16.mxu1 %v3938_v13  ;;  %v512_v13 = vld [vmem:[#allocation6 + $0xbc0] sm:$0xff] }
  0xef   :  { %3909 = vmatpush3.bf16.msra.mxu0 %v3908_v26  ;;  %v464_v26 = vld [vmem:[#allocation6 + $0xa40] sm:$0xff]  ;;  %v3990_v31 = vpack.c.bf16 %v513_v25, %v512_v13 }
  0xf0   :  { %3943 = vmatprep.subr.bf16.mxu0 %v3942_v23  ;;  %v482_v23 = vld [vmem:[#allocation6 + $0xad0] sm:$0xff]  ;;  %v3960_v34 = vpack.c.bf16 %v465_v27, %v464_v26  ;;  %v1501_v26 = vld [vmem:[#allocation9 + $0x20] sm:$0xff] }
  0xf1   :  { %3941 = vmatpush3.bf16.msra.mxu1 %v3940_v32  ;;  %v496_v32 = vld [vmem:[#allocation6 + $0xb40] sm:$0xff]  ;;  %v3962_v38 = vpack.c.bf16 %v483_v30, %v482_v23  ;;  %v4583_v23 = vmov 0.0|0.0   ;;  %v1499_v30 = vld [vmem:[#allocation9 + $0x10] sm:$0xff] }
  0xf2   :  { %1277 = vmatmul.mubr.f32.vlgmr.msra.gmra.mrb[8].mxu0 %v4758_v35  ;;  %3975 = vmatprep.subr.bf16.mxu1 %v3974_v36  ;;  %v3982_v35 = vpack.c.bf16 %v509_v60, %v508_v59  ;;  %v514_v36 = vld [vmem:[#allocation6 + $0xbd0] sm:$0xff]  ;;  %v3992_v41 = vpack.c.bf16 %v497_v33, %v496_v32  ;;  %v487_v60 = vld [vmem:[#allocation6 + $0xaf8] sm:$0xff]  ;;  %v1497_v27 = vld [vmem:[#allocation9] sm:$0xff] }
  0xf3   :  { %3945 = vmatpush3.bf16.msra.mxu0 %v3944_v39  ;;  %1416 = vmatprep.mubr.f32.mxu0 %v626_v44  ;;  %v466_v39 = vld [vmem:[#allocation6 + $0xa50] sm:$0xff]  ;;  %v484_v44 = vld [vmem:[#allocation6 + $0xae0] sm:$0xff]  ;;  %v3994_v46 = vpack.c.bf16 %v515_v37, %v514_v36  ;;  %v1504_v33 = vld [vmem:[#allocation9 + $0x38] sm:$0xff] }
  0xf4   :  { %1347 = vmatmul.mubr.f32.vlgmr.msra.gmra.mrb[8].mxu1 %v4761_v42  ;;  %3947 = vmatprep.subr.bf16.mxu0 %v3946_v45  ;;  %v462_v42 = vld [vmem:[#allocation6 + $0xa30] sm:$0xff]  ;;  %v485_v45 = vld [vmem:[#allocation6 + $0xae8] sm:$0xff]  ;;  %v3964_v49 = vpack.c.bf16 %v467_v40, %v466_v39  ;;  %v1505_v39 = vld [vmem:[#allocation9 + $0x40] sm:$0xff] }
  0xf5   :  { %3977 = vmatpush3.bf16.msra.mxu1 %v3976_v48  ;;  %1486 = vmatprep.mubr.f32.mxu1 %v627_v54  ;;  %v3956_v50 = vpack.c.bf16 %v463_v43, %v462_v42  ;;  %v499_v48 = vld [vmem:[#allocation6 + $0xb58] sm:$0xff]  ;;  %v517_v54 = vld [vmem:[#allocation6 + $0xbe8] sm:$0xff]  ;;  %v486_v59 = vld [vmem:[#allocation6 + $0xaf0] sm:$0xff]  ;;  %v3972_v42 = vpack.c.bf16 %v471_v11, %v470_v10 }
  0xf6   :  { %3979 = vmatprep.subr.bf16.mxu1 %v3978_v55  ;;  %v3966_v55 = vpack.c.bf16 %v485_v45, %v484_v44  ;;  %v1503_v36 = vld [vmem:[#allocation9 + $0x30] sm:$0xff]  ;;  %v1508_v40 = vld [vmem:[#allocation9 + $0x58] sm:$0xff]  ;;  %v1510_v45 = vld [vmem:[#allocation9 + $0x68] sm:$0xff] }
  0xf7   :  { %3949 = vmatpush3.bf16.msra.mxu0 %v3948_v58  ;;  %v3996_v58 = vpack.c.bf16 %v499_v48, %v498_v47  ;;  %v4042_v44 = vpack.c.bf16 %v1508_v40, %v1505_v39  ;;  %v1509_v47 = vld [vmem:[#allocation9 + $0x60] sm:$0xff] }
  0xf8   :  { %3951 = vmatprep.subr.bf16.mxu0 %v3950_v61  ;;  %v3998_v61 = vpack.c.bf16 %v517_v54, %v516_v51  ;;  %v1511_v51 = vld [vmem:[#allocation9 + $0x70] sm:$0xff]  ;;  %v1514_v54 = vld [vmem:[#allocation9 + $0x88] sm:$0xff]  ;;  %v1521_v10 = vld [vmem:[#allocation9 + $0xc0] sm:$0xff] }
  0xf9   :  { %3981 = vmatpush3.bf16.msra.mxu1 %v3980_v5  ;;  %v3968_v5 = vpack.c.bf16 %v469_v57, %v468_v56  ;;  %v1519_v56 = vld [vmem:[#allocation9 + $0xb0] sm:$0xff] }
  0xfa   :  { %3983 = vmatprep.subr.bf16.mxu1 %v3982_v35  ;;  %v3970_v35 = vpack.c.bf16 %v487_v60, %v486_v59  ;;  %v1515_v59 = vld [vmem:[#allocation9 + $0x90] sm:$0xff] }
  0xfb   :  { %3953 = vmatpush3.bf16.msra.mxu0 %v3952_v12  ;;  %v4000_v12 = vpack.c.bf16 %v501_v2, %v500_v63  ;;  %v1517_v63 = vld [vmem:[#allocation9 + $0xa0] sm:$0xff]  ;;  %v1520_v2 = vld [vmem:[#allocation9 + $0xb8] sm:$0xff] }
  0xfc   :  { %3955 = vmatprep.subr.bf16.mxu0 %v3954_v16  ;;  %v503_v16 = vld [vmem:[#allocation6 + $0xb78] sm:$0xff] }
  0xfd   :  { %3985 = vmatpush3.bf16.msra.mxu1 %v3984_v17  ;;  %v4004_v43 = vpack.c.bf16 %v503_v16, %v502_v15  ;;  %v1526_v15 = vld [vmem:[#allocation9 + $0xe8] sm:$0xff]  ;;  %v1528_v16 = vld [vmem:[#allocation9 + $0xf8] sm:$0xff] }
  0xfe   :  { %3987 = vmatprep.subr.bf16.mxu1 %v3986_v20 }
  0xff   :  { %3957 = vmatpush3.bf16.msra.mxu0 %v3956_v50 }
 0x100   :  { %3959 = vmatprep.subr.bf16.mxu0 %v3958_v52  ;;  %v1498_v52 = vld [vmem:[#allocation9 + $0x8] sm:$0xff] }
 0x101   :  { %3989 = vmatpush3.bf16.msra.mxu1 %v3988_v28  ;;  %v4006_v28 = vpack.c.bf16 %v1501_v26, %v1498_v52 }
 0x102   :  { %3991 = vmatprep.subr.bf16.mxu1 %v3990_v31 }
 0x103   :  { %3961 = vmatpush3.bf16.msra.mxu0 %v3960_v34  ;;  %v1507_v34 = vld [vmem:[#allocation9 + $0x50] sm:$0xff] }
 0x104   :  { %3963 = vmatprep.subr.bf16.mxu0 %v3962_v38  ;;  %v4010_v37 = vpack.c.bf16 %v1507_v34, %v1504_v33  ;;  %v1506_v38 = vld [vmem:[#allocation9 + $0x48] sm:$0xff]  ;;  %v1535_v33 = vld [vmem:[#allocation9 + $0x130] sm:$0xff] }
 0x105   :  { %3993 = vmatpush3.bf16.msra.mxu1 %v3992_v41  ;;  %v4012_v41 = vpack.c.bf16 %v1506_v38, %v1503_v36 }
 0x106   :  { %3995 = vmatprep.subr.bf16.mxu1 %v3994_v46  ;;  %v1513_v46 = vld [vmem:[#allocation9 + $0x80] sm:$0xff] }
 0x107   :  { %3965 = vmatpush3.bf16.msra.mxu0 %v3964_v49  ;;  %v4014_v48 = vpack.c.bf16 %v1513_v46, %v1510_v45  ;;  %v1512_v49 = vld [vmem:[#allocation9 + $0x78] sm:$0xff] }
 0x108   :  { %3967 = vmatprep.subr.bf16.mxu0 %v3966_v55  ;;  %v1516_v55 = vld [vmem:[#allocation9 + $0x98] sm:$0xff]  ;;  %v4016_v57 = vpack.c.bf16 %v1512_v49, %v1509_v47  ;;  %v1539_v47 = vld [vmem:[#allocation9 + $0x150] sm:$0xff]  ;;  %v1541_v49 = vld [vmem:[#allocation9 + $0x160] sm:$0xff] }
 0x109   :  { %3997 = vmatpush3.bf16.msra.mxu1 %v3996_v58  ;;  %v4045_v58 = vpack.c.bf16 %v1514_v54, %v1511_v51  ;;  %v4018_v60 = vpack.c.bf16 %v1519_v56, %v1516_v55  ;;  %v1544_v54 = vld [vmem:[#allocation9 + $0x178] sm:$0xff] }
 0x10a   :  { %3999 = vmatprep.subr.bf16.mxu1 %v3998_v61  ;;  %v1518_v61 = vld [vmem:[#allocation9 + $0xa8] sm:$0xff]  ;;  %v4060_v55 = vpack.c.bf16 %v1544_v54, %v1541_v49  ;;  %v1780_v49 = vand.u32 1, %v4701_v8 }
 0x10b   :  { %3969 = vmatpush3.bf16.msra.mxu0 %v3968_v5  ;;  %v1522_v5 = vld [vmem:[#allocation9 + $0xc8] sm:$0xff]  ;;  %v4020_v7 = vpack.c.bf16 %v1518_v61, %v1515_v59 }
 0x10c   :  { %3971 = vmatprep.subr.bf16.mxu0 %v3970_v35  ;;  %v4048_v35 = vpack.c.bf16 %v1520_v2, %v1517_v63  ;;  %v4022_v11 = vpack.c.bf16 %v1525_v6, %v1522_v5 }
 0x10d   :  { %4001 = vmatpush3.bf16.msra.mxu1 %v4000_v12  ;;  %v1524_v12 = vld [vmem:[#allocation9 + $0xd8] sm:$0xff] }
 0x10e   :  { %4003 = vmatprep.subr.bf16.mxu1 %v4002_v14  ;;  %v1523_v14 = vld [vmem:[#allocation9 + $0xd0] sm:$0xff] }
 0x10f   :  { %3973 = vmatpush3.bf16.msra.mxu0 %v3972_v42  ;;  %v1531_v42 = vld [vmem:[#allocation9 + $0x110] sm:$0xff] }
 0x110   :  { %4007 = vmatprep.subr.bf16.mxu0 %v4006_v28  ;;  %v1537_v28 = vld [vmem:[#allocation9 + $0x140] sm:$0xff] }
 0x111   :  { %4005 = vmatpush3.bf16.msra.mxu1 %v4004_v43  ;;  %v4024_v43 = vpack.c.bf16 %v1524_v12, %v1521_v10 }
 0x112   :  { %1417 = vmatmul.mubr.f32.vlgmr.msra.gmra.mrb[10].mxu0 %v4773_v29  ;;  %4038 = vmatprep.subr.bf16.mxu1 %v4583_v23  ;;  %v1500_v29 = vld [vmem:[#allocation9 + $0x18] sm:$0xff] }
 0x113   :  { %v4008_v31 = vpack.c.bf16 %v1500_v29, %v1497_v27  ;;  %v1534_v27 = vld [vmem:[#allocation9 + $0x128] sm:$0xff] }
 0x114   :  { %1487 = vmatmul.mubr.f32.vlgmr.msra.gmra.mrb[10].mxu1 %v4776_v62  ;;  %v1502_v62 = vld [vmem:[#allocation9 + $0x28] sm:$0xff] }
 0x115   :  { %v4039_v32 = vpack.c.bf16 %v1502_v62, %v1499_v30  ;;  %4009 = vmatpush1.bf16.msra.mxu0 %v4008_v31  ;;  %v4030_v62 = vpack.c.bf16 %v1537_v28, %v1534_v27  ;;  %v1533_v31 = vld [vmem:[#allocation9 + $0x120] sm:$0xff] }
 0x116   :  { %4011 = vmatprep.subr.bf16.mxu0 %v4010_v37  ;;  %v1538_v37 = vld [vmem:[#allocation9 + $0x148] sm:$0xff] }
 0x117   :  { %4040 = vmatpush3.bf16.msra.mxu1 %v4039_v32  ;;  %v1536_v32 = vld [vmem:[#allocation9 + $0x138] sm:$0xff]  ;;  %v4057_v40 = vpack.c.bf16 %v1538_v37, %v1535_v33  ;;  %v4814_v33 = vsub.s32 0, %v4701_v8 }
 0x118   :  { %4041 = vmatprep.subr.bf16.mxu1 %v4583_v23  ;;  %v4032_v36 = vpack.c.bf16 %v1536_v32, %v1533_v31  ;;  %v4811_v31 = vsub.s32 1, %v4701_v8  ;;  %v117_v32 = vld [vmem:[#allocation12 + $0x2] ss:$8 sm:$0x7] }
 0x119   :  { %4013 = vmatpush1.bf16.msra.mxu0 %v4012_v41  ;;  %v1540_v41 = vld [vmem:[#allocation9 + $0x158] sm:$0xff] }
 0x11a   :  { %4015 = vmatprep.subr.bf16.mxu0 %v4014_v48  ;;  %v1542_v48 = vld [vmem:[#allocation9 + $0x168] sm:$0xff] }
 0x11b   :  { %4043 = vmatpush3.bf16.msra.mxu1 %v4042_v44  ;;  %v1543_v44 = vld [vmem:[#allocation9 + $0x170] sm:$0xff]  ;;  %v4036_v51 = vpack.c.bf16 %v1542_v48, %v1539_v47  ;;  %v1775_v48 = vand.u32 127, %v530_v53  ;;  %v1894_v53 = vld [vmem:[#allocation11 + $0x8] sm:$0xff] }
 0x11c   :  { %4044 = vmatprep.subr.bf16.mxu1 %v4583_v23  ;;  %v4034_v46 = vpack.c.bf16 %v1543_v44, %v1540_v41 }
 0x11d   :  { %4017 = vmatpush1.bf16.msra.mxu0 %v4016_v57 }
 0x11e   :  { %4019 = vmatprep.subr.bf16.mxu0 %v4018_v60 }
 0x11f   :  { %4046 = vmatpush3.bf16.msra.mxu1 %v4045_v58 }
 0x120   :  { %4047 = vmatprep.subr.bf16.mxu1 %v4583_v23 }
 0x121   :  { %4021 = vmatpush1.bf16.msra.mxu0 %v4020_v7 }
 0x122   :  { %4023 = vmatprep.subr.bf16.mxu0 %v4022_v11 }
 0x123   :  { %4049 = vmatpush3.bf16.msra.mxu1 %v4048_v35 }
 0x124   :  { %4050 = vmatprep.subr.bf16.mxu1 %v4583_v23 }
 0x125   :  { %4025 = vmatpush1.bf16.msra.mxu0 %v4024_v43 }
 0x145   :  { %v3046_v17 = vpop.f32.mrb[0].mxu0 }
 0x146   :  { %v3047_v19 = vpop.f32.mrb[1].mxu0 }
 0x147   :  { %v3048_v20 = vadd.f32 %v3047_v19, %v3046_v17  ;;  %v3081_v21 = vpop.f32.mrb[0].mxu1  ;;  %v4051_v17 = vpack.c.bf16 %v1526_v15, %v1523_v14  ;;  %v1527_v19 = vld [vmem:[#allocation9 + $0xf0] sm:$0xff] }
 0x148   :  { %v3082_v24 = vpop.f32.mrb[1].mxu1 }
 0x149   :  { %v719_v50 = vadd.f32 %v3048_v20, %v114_v18  ;;  %v3083_v13 = vadd.f32 %v3082_v24, %v3081_v21  ;;  %v4026_v18 = vpack.c.bf16 %v1531_v42, %v1528_v16  ;;  %4052 = vmatpush3.bf16.msra.mxu1 %v4051_v17  ;;  %v1530_v20 = vld [vmem:[#allocation9 + $0x108] sm:$0xff]  ;;  %v1529_v21 = vld [vmem:[#allocation9 + $0x100] sm:$0xff] }
 0x14a   :  { %4053 = vmatprep.subr.bf16.mxu1 %v4583_v23  ;;  %v4028_v24 = vpack.c.bf16 %v1530_v20, %v1527_v19 }
 0x14b   :  { %v4786_v25 = vadd.f32 %v3083_v13, %v719_v50  ;;  %4027 = vmatprep.subr.bf16.mxu0 %v4026_v18  ;;  %v1532_v50 = vld [vmem:[#allocation9 + $0x118] sm:$0xff] }
 0x14c   :  { %v4054_v52 = vpack.c.bf16 %v1532_v50, %v1529_v21  ;;  %4029 = vmatpush1.bf16.msra.mxu0 %v4028_v24 }
 0x14d   :  { %4031 = vmatprep.subr.bf16.mxu0 %v4030_v62 }
 0x14e   :  { %4055 = vmatpush3.bf16.msra.mxu1 %v4054_v52 }
 0x14f   :  { %4056 = vmatprep.subr.bf16.mxu1 %v4583_v23 }
 0x150   :  { %4033 = vmatpush1.bf16.msra.mxu0 %v4032_v36  ;;  %v1553_v36 = vrot.slane %v117_v32, %v4811_v31 }
 0x151   :  { %4035 = vmatprep.subr.bf16.mxu0 %v4034_v46 }
 0x152   :  { %4058 = vmatpush3.bf16.msra.mxu1 %v4057_v40 }
 0x153   :  { %4059 = vmatprep.subr.bf16.mxu1 %v4583_v23 }
 0x154   :  { %4037 = vmatpush1.bf16.msra.mxu0 %v4036_v51  ;;  %v1792_v51 = vand.u32 1, %v1775_v48 }
 0x155   :  { %4062 = vmatprep.subr.bf16.mxu0 %v4583_v23 }
 0x156   :  { %4061 = vmatpush3.bf16.msra.mxu1 %v4060_v55  ;;  %vm1800_vm3 = vcmp.eq.s32.totalorder %v1780_v49, %v1792_v51 }
 0x165   :  { %v3116_v13 = vpop.f32.mrb[2].mxu0 }
 0x166   :  { %v3117_v26 = vpop.f32.mrb[3].mxu0 }
 0x167   :  { %v3118_v29 = vadd.f32 %v3117_v26, %v3116_v13  ;;  %v3151_v30 = vpop.f32.mrb[2].mxu1 }
 0x168   :  { %v3152_v34 = vpop.f32.mrb[3].mxu1 }
 0x169   :  { %v859_v38 = vadd.f32 %v3118_v29, %v4786_v25  ;;  %v3153_v39 = vadd.f32 %v3152_v34, %v3151_v30  ;;  %v4584_v25 = vmov 0.0   ;;  %v115_v29 = vld [vmem:[#allocation12 + $0x1] ss:$0 sm:$0xff]  ;;  %v4817_v34 = vsub.s32 2, %v4701_v8 }
 0x16a   :  { %1625 = vmatprep.mubr.f32.mxu0 %v4584_v25  ;;  %3574 = vmatprep.mubr.msk.f32.mxu1 %vm4585_vm0, %v4584_v25 }
 0x16b   :  { %v929_v45 = vadd.f32 %v3153_v39, %v859_v38  ;;  %3577 = vmatprep.subr.mxu1 %v4584_v25  ;;  %v1549_v39 = vrot.slane %v117_v32, %v4814_v33  ;;  %v1557_v44 = vrot.slane %v117_v32, %v4817_v34 }
 0x185   :  { %v3186_v56 = vpop.f32.mrb[4].mxu0 }
 0x186   :  { %v3187_v57 = vpop.f32.mrb[5].mxu0 }
 0x187   :  { %v3188_v58 = vadd.f32 %v3187_v57, %v3186_v56  ;;  %v3221_v59 = vpop.f32.mrb[4].mxu1 }
 0x188   :  { %v3222_v60 = vpop.f32.mrb[5].mxu1 }
 0x189   :  { %v999_v61 = vadd.f32 %v3188_v58, %v929_v45  ;;  %v3223_v63 = vadd.f32 %v3222_v60, %v3221_v59 }
 0x18b   :  { %v1069_v2 = vadd.f32 %v3223_v63, %v999_v61 }
 0x1a5   :  { %v3256_v5 = vpop.f32.mrb[6].mxu0 }
 0x1a6   :  { %v3257_v6 = vpop.f32.mrb[7].mxu0 }
 0x1a7   :  { %v3258_v7 = vadd.f32 %v3257_v6, %v3256_v5  ;;  %v3291_v35 = vpop.f32.mrb[6].mxu1  ;;  %v1893_v5 = vld [vmem:[#allocation11] sm:$0xff]  ;;  %v1895_v6 = vld [vmem:[#allocation11 + $0x10] sm:$0xff] }
 0x1a8   :  { %v3292_v10 = vpop.f32.mrb[7].mxu1 }
 0x1a9   :  { %v1139_v11 = vadd.f32 %v3258_v7, %v1069_v2  ;;  %v3293_v12 = vadd.f32 %v3292_v10, %v3291_v35  ;;  %v4063_v7 = vpack.c.bf16 %v1894_v53, %v1893_v5  ;;  %v1896_v35 = vld [vmem:[#allocation11 + $0x18] sm:$0xff] }
 0x1aa   :  { %v4066_v10 = vpack.c.bf16 %v1896_v35, %v1895_v6 }
 0x1ab   :  { %v1209_v14 = vadd.f32 %v3293_v12, %v1139_v11  ;;  %v1897_v11 = vld [vmem:[#allocation11 + $0x20] sm:$0xff]  ;;  %v1898_v12 = vld [vmem:[#allocation11 + $0x28] sm:$0xff] }
 0x1c5   :  { %v3326_v15 = vpop.f32.mrb[8].mxu0 }
 0x1c6   :  { %v3327_v16 = vpop.f32.mrb[9].mxu0 }
 0x1c7   :  { %v3328_v42 = vadd.f32 %v3327_v16, %v3326_v15  ;;  %v3361_v43 = vpop.f32.mrb[8].mxu1  ;;  %v1899_v15 = vld [vmem:[#allocation11 + $0x30] sm:$0xff]  ;;  %v1900_v16 = vld [vmem:[#allocation11 + $0x38] sm:$0xff] }
 0x1c8   :  { %v3362_v17 = vpop.f32.mrb[9].mxu1 }
 0x1c9   :  { %v1279_v18 = vadd.f32 %v3328_v42, %v1209_v14  ;;  %v3363_v19 = vadd.f32 %v3362_v17, %v3361_v43  ;;  %v4069_v14 = vpack.c.bf16 %v1898_v12, %v1897_v11  ;;  %v4072_v42 = vpack.c.bf16 %v1900_v16, %v1899_v15  ;;  %v1901_v43 = vld [vmem:[#allocation11 + $0x40] sm:$0xff]  ;;  %v1902_v17 = vld [vmem:[#allocation11 + $0x48] sm:$0xff] }
 0x1cb   :  { %v1349_v20 = vadd.f32 %v3363_v19, %v1279_v18  ;;  %v4075_v18 = vpack.c.bf16 %v1902_v17, %v1901_v43  ;;  %v1903_v19 = vld [vmem:[#allocation11 + $0x50] sm:$0xff] }
 0x1e5   :  { %v3396_v21 = vpop.f32.mrb[10].mxu0 }
 0x1e6   :  { %v3397_v24 = vpop.f32.mrb[11].mxu0 }
 0x1e7   :  { %v3398_v50 = vadd.f32 %v3397_v24, %v3396_v21  ;;  %v3431_v13 = vpop.f32.mrb[10].mxu1  ;;  %v1905_v24 = vld [vmem:[#allocation11 + $0x60] sm:$0xff] }
 0x1e8   :  { %v3432_v52 = vpop.f32.mrb[11].mxu1 }
 0x1e9   :  { %v1419_v26 = vadd.f32 %v3398_v50, %v1349_v20  ;;  %v3433_v27 = vadd.f32 %v3432_v52, %v3431_v13  ;;  %v1904_v20 = vld [vmem:[#allocation11 + $0x58] sm:$0xff]  ;;  %v1906_v50 = vld [vmem:[#allocation11 + $0x68] sm:$0xff]  ;;  %v1907_v52 = vld [vmem:[#allocation11 + $0x70] sm:$0xff] }
 0x1ea   :  { %v4078_v21 = vpack.c.bf16 %v1904_v20, %v1903_v19  ;;  %v4081_v13 = vpack.c.bf16 %v1906_v50, %v1905_v24 }
 0x1eb   :  { %v1489_v28 = vadd.f32 %v3433_v27, %v1419_v26  ;;  %v1908_v26 = vld [vmem:[#allocation11 + $0x78] sm:$0xff] }
 0x1ec   :  { %v4084_v27 = vpack.c.bf16 %v1908_v26, %v1907_v52 }
 0x1ed   :  { %v1493_v30 = vrot.slane %v1489_v28, 6 }
 0x1ef   :  { %v4802_v62 = vsel %vm1495_vm1, %v115_v29, %v1493_v30 }
 0x1f0   :  { %1626 = vmatmul.mubr.f32.vlgmr.msra.gmra.mrb[12].mxu0 %v4802_v62  ;;  %3575 = vmatmul.mubr.f32.vlgmr.msra.gmra.mrb[12].mxu1 %v4802_v62 }
 0x1f1   :  { %3579 = vmatprep.mubr.msk.f32.mxu1 %vm4585_vm0, %v4584_v25  ;;  %3619 = vmatprep.mubr.msk.f32.mxu0 %vm4585_vm0, %v4584_v25 }
 0x1f2   :  { %4064 = vmatpush3.bf16.msra.mxu0 %v4063_v7 }
 0x1f3   :  { %4065 = vmatprep.subr.bf16.mxu0 %v4583_v23 }
 0x1f6   :  { %4067 = vmatpush3.bf16.msra.mxu0 %v4066_v10 }
 0x1f7   :  { %4068 = vmatprep.subr.bf16.mxu0 %v4583_v23 }
 0x1fa   :  { %4070 = vmatpush3.bf16.msra.mxu0 %v4069_v14 }
 0x1fb   :  { %4071 = vmatprep.subr.bf16.mxu0 %v4583_v23 }
 0x1fe   :  { %4073 = vmatpush3.bf16.msra.mxu0 %v4072_v42 }
 0x1ff   :  { %4074 = vmatprep.subr.bf16.mxu0 %v4583_v23 }
 0x202   :  { %4076 = vmatpush3.bf16.msra.mxu0 %v4075_v18 }
 0x203   :  { %4077 = vmatprep.subr.bf16.mxu0 %v4583_v23 }
 0x206   :  { %4079 = vmatpush3.bf16.msra.mxu0 %v4078_v21 }
 0x207   :  { %4080 = vmatprep.subr.bf16.mxu0 %v4583_v23 }
 0x20a   :  { %4082 = vmatpush3.bf16.msra.mxu0 %v4081_v13 }
 0x20b   :  { %4083 = vmatprep.subr.bf16.mxu0 %v4583_v23 }
 0x20e   :  { %4085 = vmatpush3.bf16.msra.mxu0 %v4084_v27 }
 0x2c3   :  { %v1627_v37 = vpop.f32.mrb[12].mxu0  ;;  %v1698_v38 = vpop.f32.mrb[12].mxu1 }
 0x2c4   :  { %v1629_v40 = vpop.f32.mrb[13].mxu0  ;;  %v3576_v41 = vpop.f32.mrb[13].mxu1  ;;  %v1628_v46 = vadd.f32 %v1627_v37, %v1549_v39  ;;  %v1699_v47 = vadd.f32 %v1698_v38, %v1557_v44  ;;  %v118_v37 = vld [vmem:[#allocation12 + $0x3] ss:$0 sm:$0xff] }
 0x2c5   :  { %v1630_v45 = vadd.f32 %v1629_v40, %v1553_v36 }
 0x2c7   :  { %3578 = vmatpush3.xpose.msra.mxu1 %v1630_v45 }
 0x2c8   :  { %3582 = vmatprep.subr.mxu1 %v4584_v25 }
 0x2ca   :  { %3580 = vmatmul.mubr.f32.vlgmr.msra.gmra.mrb[14].mxu1 %v1628_v46 }
 0x2cb   :  { %3583 = vmatpush3.msk.msra.mxu1 %vm1819_vm2, %v1699_v47  ;;  %3584 = vmatprep.mubr.msk.f32.mxu1 %vm4585_vm0, %v4584_v25 }
 0x39d   :  { %v1768_v54 = vpop.f32.mrb[14].mxu1 }
 0x39e   :  { %v1801_v55 = vmul.f32 0.088388346, %v1768_v54  ;;  %v3581_v56 = vpop.f32.mrb[15].mxu1 }
 0x3a0   :  { %v1802_v57 = vsel %vm1800_vm3, %v1801_v55, -1e+30 }
 0x3a1   :  { %v1804_v58 = vsel %vm1803_vm4, %v1802_v57, -inf }
 0x3a2   :  { %1805 = vmax.xlane.f32.xlu0 %v1804_v58 }
 0x42f   :  { %v1806_v59 = vpop.xlane.xlu0 %1805 }
 0x430   :  { %v1807_v60 = vsub.f32 %v1802_v57, %v1806_v59 }
 0x432   :  { %v1808_v61 = vmul.f32 1.442695, %v1807_v60 }
 0x434   :  { %4366 = vpow2.f32 %v1808_v61 }
 0x43e   :  { %v4367_v63 = vpop.eup %4366 }
 0x43f   :  { %v1810_v2 = vsel %vm1803_vm4, %v4367_v63, 0.0 }
 0x440   :  { %1811 = vadd.xlane.f32.xlu0 %v1810_v2 }
 0x4cd   :  { %v1812_v28 = vpop.xlane.xlu0 %1811 }
 0x4ce   :  { %4368 = vrcp.f32 %v1812_v28 }
 0x4d8   :  { %v4369_v29 = vpop.eup %4368 }
 0x4d9   :  { %v1814_v30 = vmul.f32 %v4369_v29, %v4367_v63 }
 0x4db   :  { %3585 = vmatmul.mubr.msk.f32.vlgmr.msra.gmra.mrb[16].mxu1 %vm1815_vm5, %v1814_v30 }
 0x5ae   :  { %v1889_v32 = vpop.f32.mrb[16].mxu1 }
 0x5af   :  { %v3586_v36 = vpop.f32.mrb[17].mxu1  ;;  %3620 = vmatmul.mubr.f32.vlgmr.msra.gmra.mrb[14].mxu0 %v1889_v32 }
 0x682   :  { %v1975_v38 = vpop.f32.mrb[14].mxu0 }
 0x683   :  { %v1976_v39 = vadd.f32 %v1975_v38, %v118_v37  ;;  %v3621_v40 = vpop.f32.mrb[15].mxu0 }
 0x685   :  { %v1979_v41 = vadd.f32 %v1976_v39, %v4802_v62 }
 0x687   :  { %v1980_v44 = vsel %vm1819_vm2, %v1979_v41, 0.0 }
 0x688   :  { %1981 = vadd.xlane.f32.xlu1 %v1980_v44 }
 0x715   :  { %v1982_v23 = vpop.xlane.xlu1 %1981 }
 0x716   :  { %v1984_v45 = vmul.f32 0.0078125, %v1982_v23 }
 0x718   :  { %v1985_v46 = vsub.f32 %v1979_v41, %v1984_v45 }
 0x71a   :  { %v1986_v47 = vmul.f32 %v1985_v46, %v1985_v46 }
 0x71c   :  { %v1987_v48 = vsel %vm1819_vm2, %v1986_v47, 0.0 }
 0x71d   :  { %1988 = vadd.xlane.f32.xlu1 %v1987_v48 }
 0x71e   :  { %4479 = shalt.err (!%p4476_p6)  }
 0x71f   :  { %s4480_s3 = scalar_lea.vmem %s87_s20, 8192  ;;  %p4485_p8 = scmp.lt.s32.totalorder %s87_s20, %s87_s20 }
 0x720   :  { %p4481_p7 = scmp.ne.s32.totalorder %s87_s20, %s4480_s3  ;;  %p4486_p9 = scmp.lt.s32.totalorder %s4480_s3, %s4480_s3 }
 0x722   :  { %p4487_p10 = por %p4486_p9, %p4485_p8 }
 0x724   :  { %p4488_p11 = pnand %p4487_p10, %p4481_p7 }
 0x726   :  { %4491 = shalt.err (!%p4488_p11)  }
 0x727   :  { %89 = dma.hbm_to_vmem [thread:$0]  %s4950_s5, 8192, %s87_s20, [#allocation5] }
 0x728   :  { %s4492_s11 = scalar_lea.hbm %s4951_s6, 8192 }
 0x729   :  { %p4493_p12 = scmp.ne.s32.totalorder %s4951_s6, %s4492_s11  ;;  %p4496_p13 = scmp.lt.u32.totalorder %s4492_s11, %s4951_s6 }
 0x72b   :  { %p4498_p0 = pnand %p4496_p13, %p4493_p12 }
 0x72d   :  { %4501 = shalt.err (!%p4498_p0)  }
 0x72e   :  { %s4502_s16 = scalar_lea.vmem %s99_s23, 8192  ;;  %p4507_p2 = scmp.lt.s32.totalorder %s99_s23, %s99_s23 }
 0x72f   :  { %p4503_p1 = scmp.ne.s32.totalorder %s99_s23, %s4502_s16  ;;  %p4508_p3 = scmp.lt.s32.totalorder %s4502_s16, %s4502_s16 }
 0x731   :  { %p4509_p4 = por %p4508_p3, %p4507_p2 }
 0x733   :  { %p4510_p5 = pnand %p4509_p4, %p4503_p1 }
 0x735   :  { %4513 = shalt.err (!%p4510_p5)  }
 0x736   :  { %101 = dma.hbm_to_vmem [thread:$0]  %s4951_s6, 8192, %s99_s23, [#allocation5 + $0x1] }
 0x737   :  { %s4588_s18 = smov [#allocation4]   ;;  %s4514_s0 = scalar_lea.hbm %s4952_s7, 16384 }
 0x738   :  { %s110_s19 = sshll.u32 %s4588_s18, 4  ;;  %p4515_p6 = scmp.ne.s32.totalorder %s4952_s7, %s4514_s0  ;;  %s111_s19 = int_to_ptr.vmem [resolvable:$true] %s110_s19 }
 0x739   :  { %p4518_p7 = scmp.lt.u32.totalorder %s4514_s0, %s4952_s7 }
 0x73b   :  { %p4520_p8 = pnand %p4518_p7, %p4515_p6 }
 0x73d   :  { %4523 = shalt.err (!%p4520_p8)  }
 0x73e   :  { %s4524_s26 = scalar_lea.vmem %s111_s19, 16384  ;;  %p4529_p10 = scmp.lt.s32.totalorder %s111_s19, %s111_s19 }
 0x73f   :  { %p4525_p9 = scmp.ne.s32.totalorder %s111_s19, %s4524_s26  ;;  %p4530_p11 = scmp.lt.s32.totalorder %s4524_s26, %s4524_s26 }
 0x741   :  { %p4531_p12 = por %p4530_p11, %p4529_p10 }
 0x743   :  { %p4532_p13 = pnand %p4531_p12, %p4525_p9 }
 0x745   :  { %4535 = shalt.err (!%p4532_p13)  }
 0x746   :  { %113 = dma.hbm_to_vmem [thread:$0]  %s4952_s7, 16384, %s111_s19, [#allocation5 + $0x2]  ;;  %v122_v55 = vld [vmem:[#allocation12 + $0x6] ss:$0 sm:$0xff]  ;;  %v123_v57 = vld [vmem:[#allocation12 + $0x7] ss:$0 sm:$0xff] }
 0x7aa   :  { %v1989_v62 = vpop.xlane.xlu1 %1988 }
 0x7ab   :  { %v1990_v49 = vmul.f32 0.0078125, %v1989_v62 }
 0x7ad   :  { %v1991_v51 = vadd.f32 1e-05, %v1990_v49 }
 0x7af   :  { %4370 = vrsqrt.f32 %v1991_v51 }
 0x7b9   :  { %v4371_v54 = vpop.eup %4370 }
 0x7ba   :  { %v1993_v56 = vmul.f32 %v4371_v54, %v1985_v46 }
 0x7bc   :  { %v1994_v58 = vmul.f32 %v1993_v56, %v122_v55 }
 0x7be   :  { %v4874_v59 = vadd.f32 %v1994_v58, %v123_v57 }
 0x7bf   :  { %4564 = dma.done.wait [#allocation5], 8192 }
 0x7c0   :  { %4565 = vsyncadd [#allocation5], 4294959104  ;;  %2149 = vmatprep.mubr.f32.mxu1 %v4584_v25  ;;  %2220 = vmatprep.mubr.f32.mxu0 %v4584_v25  ;;  %v2001_v60 = vld [vmem:[#allocation2 + $0x8] sm:$0xff]  ;;  %v2003_v63 = vld [vmem:[#allocation2 + $0x18] sm:$0xff] }
 0x7c1   :  { %v2005_v61 = vld [vmem:[#allocation2 + $0x28] sm:$0xff]  ;;  %v2007_v5 = vld [vmem:[#allocation2 + $0x38] sm:$0xff]  ;;  %v2000_v53 = vld [vmem:[#allocation2] sm:$0xff] }
 0x7c2   :  { %v4086_v2 = vpack.c.bf16 %v2005_v61, %v2001_v60  ;;  %v2004_v6 = vld [vmem:[#allocation2 + $0x20] sm:$0xff]  ;;  %v4118_v7 = vpack.c.bf16 %v2007_v5, %v2003_v63  ;;  %v2002_v10 = vld [vmem:[#allocation2 + $0x10] sm:$0xff]  ;;  %v2009_v12 = vld [vmem:[#allocation2 + $0x48] sm:$0xff] }
 0x7c3   :  { %v4088_v35 = vpack.c.bf16 %v2004_v6, %v2000_v53  ;;  %v2006_v11 = vld [vmem:[#allocation2 + $0x30] sm:$0xff]  ;;  %v2013_v15 = vld [vmem:[#allocation2 + $0x68] sm:$0xff]  ;;  %v2011_v16 = vld [vmem:[#allocation2 + $0x58] sm:$0xff] }
 0x7c4   :  { %4087 = vmatprep.subr.bf16.mxu1 %v4086_v2  ;;  %v4120_v14 = vpack.c.bf16 %v2006_v11, %v2002_v10  ;;  %v2015_v42 = vld [vmem:[#allocation2 + $0x78] sm:$0xff]  ;;  %4119 = vmatprep.subr.bf16.mxu0 %v4118_v7  ;;  %v4090_v43 = vpack.c.bf16 %v2013_v15, %v2009_v12  ;;  %v2008_v18 = vld [vmem:[#allocation2 + $0x40] sm:$0xff]  ;;  %v2010_v20 = vld [vmem:[#allocation2 + $0x50] sm:$0xff] }
 0x7c5   :  { %4089 = vmatpush1.bf16.msra.mxu1 %v4088_v35  ;;  %v4122_v17 = vpack.c.bf16 %v2015_v42, %v2011_v16  ;;  %v2012_v19 = vld [vmem:[#allocation2 + $0x60] sm:$0xff]  ;;  %v2014_v24 = vld [vmem:[#allocation2 + $0x70] sm:$0xff]  ;;  %v2017_v50 = vld [vmem:[#allocation2 + $0x88] sm:$0xff] }
 0x7c6   :  { %4121 = vmatpush1.bf16.msra.mxu0 %v4120_v14  ;;  %v4092_v21 = vpack.c.bf16 %v2012_v19, %v2008_v18  ;;  %v2021_v13 = vld [vmem:[#allocation2 + $0xa8] sm:$0xff]  ;;  %4091 = vmatprep.subr.bf16.mxu1 %v4090_v43  ;;  %v4124_v52 = vpack.c.bf16 %v2014_v24, %v2010_v20  ;;  %v2019_v27 = vld [vmem:[#allocation2 + $0x98] sm:$0xff]  ;;  %v2016_v29 = vld [vmem:[#allocation2 + $0x80] sm:$0xff] }
 0x7c7   :  { %4123 = vmatprep.subr.bf16.mxu0 %v4122_v17  ;;  %v4094_v26 = vpack.c.bf16 %v2021_v13, %v2017_v50  ;;  %v2023_v28 = vld [vmem:[#allocation2 + $0xb8] sm:$0xff]  ;;  %v2020_v32 = vld [vmem:[#allocation2 + $0xa0] sm:$0xff]  ;;  %v2018_v36 = vld [vmem:[#allocation2 + $0x90] sm:$0xff] }
 0x7c8   :  { %v4126_v30 = vpack.c.bf16 %v2023_v28, %v2019_v27  ;;  %v2022_v37 = vld [vmem:[#allocation2 + $0xb0] sm:$0xff]  ;;  %v4096_v38 = vpack.c.bf16 %v2020_v32, %v2016_v29  ;;  %v2025_v39 = vld [vmem:[#allocation2 + $0xc8] sm:$0xff]  ;;  %v2027_v41 = vld [vmem:[#allocation2 + $0xd8] sm:$0xff] }
 0x7c9   :  { %4093 = vmatpush1.bf16.msra.mxu1 %v4092_v21  ;;  %v2029_v40 = vld [vmem:[#allocation2 + $0xe8] sm:$0xff]  ;;  %v4128_v44 = vpack.c.bf16 %v2022_v37, %v2018_v36  ;;  %v2031_v45 = vld [vmem:[#allocation2 + $0xf8] sm:$0xff]  ;;  %v2024_v46 = vld [vmem:[#allocation2 + $0xc0] sm:$0xff] }
 0x7ca   :  { %4125 = vmatpush1.bf16.msra.mxu0 %v4124_v52  ;;  %4095 = vmatprep.subr.bf16.mxu1 %v4094_v26  ;;  %v4098_v23 = vpack.c.bf16 %v2029_v40, %v2025_v39  ;;  %v2028_v47 = vld [vmem:[#allocation2 + $0xe0] sm:$0xff]  ;;  %v4130_v48 = vpack.c.bf16 %v2031_v45, %v2027_v41  ;;  %v2026_v62 = vld [vmem:[#allocation2 + $0xd0] sm:$0xff]  ;;  %v2033_v51 = vld [vmem:[#allocation2 + $0x108] sm:$0xff] }
 0x7cb   :  { %4127 = vmatprep.subr.bf16.mxu0 %v4126_v30  ;;  %v2030_v49 = vld [vmem:[#allocation2 + $0xf0] sm:$0xff]  ;;  %v2037_v54 = vld [vmem:[#allocation2 + $0x128] sm:$0xff]  ;;  %v2035_v55 = vld [vmem:[#allocation2 + $0x118] sm:$0xff]  ;;  %v4100_v57 = vpack.c.bf16 %v2028_v47, %v2024_v46 }
 0x7cc   :  { %v2039_v56 = vld [vmem:[#allocation2 + $0x138] sm:$0xff]  ;;  %v4132_v58 = vpack.c.bf16 %v2030_v49, %v2026_v62  ;;  %v4102_v60 = vpack.c.bf16 %v2037_v54, %v2033_v51  ;;  %v2032_v61 = vld [vmem:[#allocation2 + $0x100] sm:$0xff]  ;;  %v2034_v2 = vld [vmem:[#allocation2 + $0x110] sm:$0xff]  ;;  %v2079_v62 = vsub.s32 3, %v4701_v8  ;;  %v2068_v49 = vrot.slane %v4690_v0, %v4814_v33 }
 0x7cd   :  { %4097 = vmatpush1.bf16.msra.mxu1 %v4096_v38  ;;  %v2036_v63 = vld [vmem:[#allocation2 + $0x120] sm:$0xff]  ;;  %v4134_v5 = vpack.c.bf16 %v2039_v56, %v2035_v55  ;;  %v2038_v53 = vld [vmem:[#allocation2 + $0x130] sm:$0xff]  ;;  %v2041_v6 = vld [vmem:[#allocation2 + $0x148] sm:$0xff]  ;;  %v2076_v51 = vrot.slane %v4690_v0, %v4817_v34  ;;  %v2072_v54 = vrot.slane %v4690_v0, %v4811_v31 }
 0x7ce   :  { %4129 = vmatpush1.bf16.msra.mxu0 %v4128_v44  ;;  %4099 = vmatprep.subr.bf16.mxu1 %v4098_v23  ;;  %v2045_v7 = vld [vmem:[#allocation2 + $0x168] sm:$0xff]  ;;  %v2043_v35 = vld [vmem:[#allocation2 + $0x158] sm:$0xff]  ;;  %v4104_v11 = vpack.c.bf16 %v2036_v63, %v2032_v61  ;;  %v4136_v12 = vpack.c.bf16 %v2038_v53, %v2034_v2  ;;  %v2040_v15 = vld [vmem:[#allocation2 + $0x140] sm:$0xff]  ;;  %v2080_v55 = vrot.slane %v4690_v0, %v2079_v62 }
 0x7cf   :  { %4131 = vmatprep.subr.bf16.mxu0 %v4130_v48  ;;  %v2047_v10 = vld [vmem:[#allocation2 + $0x178] sm:$0xff]  ;;  %v4106_v14 = vpack.c.bf16 %v2045_v7, %v2041_v6  ;;  %v2044_v16 = vld [vmem:[#allocation2 + $0x160] sm:$0xff]  ;;  %v2042_v42 = vld [vmem:[#allocation2 + $0x150] sm:$0xff] }
 0x7d0   :  { %v4138_v43 = vpack.c.bf16 %v2047_v10, %v2043_v35  ;;  %v2046_v17 = vld [vmem:[#allocation2 + $0x170] sm:$0xff]  ;;  %v2049_v18 = vld [vmem:[#allocation2 + $0x188] sm:$0xff]  ;;  %v2051_v20 = vld [vmem:[#allocation2 + $0x198] sm:$0xff]  ;;  %v4108_v24 = vpack.c.bf16 %v2044_v16, %v2040_v15 }
 0x7d1   :  { %4101 = vmatpush1.bf16.msra.mxu1 %v4100_v57  ;;  %v2053_v19 = vld [vmem:[#allocation2 + $0x1a8] sm:$0xff]  ;;  %v2055_v21 = vld [vmem:[#allocation2 + $0x1b8] sm:$0xff]  ;;  %v4140_v50 = vpack.c.bf16 %v2046_v17, %v2042_v42  ;;  %v2048_v52 = vld [vmem:[#allocation2 + $0x180] sm:$0xff] }
 0x7d2   :  { %4133 = vmatpush1.bf16.msra.mxu0 %v4132_v58  ;;  %4103 = vmatprep.subr.bf16.mxu1 %v4102_v60  ;;  %v4110_v13 = vpack.c.bf16 %v2053_v19, %v2049_v18  ;;  %v2052_v26 = vld [vmem:[#allocation2 + $0x1a0] sm:$0xff]  ;;  %v2050_v27 = vld [vmem:[#allocation2 + $0x190] sm:$0xff]  ;;  %v4142_v28 = vpack.c.bf16 %v2055_v21, %v2051_v20  ;;  %v2057_v30 = vld [vmem:[#allocation2 + $0x1c8] sm:$0xff] }
 0x7d3   :  { %4135 = vmatprep.subr.bf16.mxu0 %v4134_v5  ;;  %v2054_v29 = vld [vmem:[#allocation2 + $0x1b0] sm:$0xff]  ;;  %v2061_v32 = vld [vmem:[#allocation2 + $0x1e8] sm:$0xff]  ;;  %v2059_v36 = vld [vmem:[#allocation2 + $0x1d8] sm:$0xff]  ;;  %v4112_v38 = vpack.c.bf16 %v2052_v26, %v2048_v52 }
 0x7d4   :  { %v2063_v37 = vld [vmem:[#allocation2 + $0x1f8] sm:$0xff]  ;;  %v4144_v39 = vpack.c.bf16 %v2054_v29, %v2050_v27  ;;  %v4114_v40 = vpack.c.bf16 %v2061_v32, %v2057_v30  ;;  %v2056_v41 = vld [vmem:[#allocation2 + $0x1c0] sm:$0xff]  ;;  %v2058_v45 = vld [vmem:[#allocation2 + $0x1d0] sm:$0xff] }
 0x7d5   :  { %4105 = vmatpush1.bf16.msra.mxu1 %v4104_v11  ;;  %v2060_v44 = vld [vmem:[#allocation2 + $0x1e0] sm:$0xff]  ;;  %v4146_v23 = vpack.c.bf16 %v2063_v37, %v2059_v36  ;;  %v2062_v46 = vld [vmem:[#allocation2 + $0x1f0] sm:$0xff] }
 0x7d6   :  { %4137 = vmatpush1.bf16.msra.mxu0 %v4136_v12  ;;  %4107 = vmatprep.subr.bf16.mxu1 %v4106_v14  ;;  %v4116_v47 = vpack.c.bf16 %v2060_v44, %v2056_v41  ;;  %v4148_v48 = vpack.c.bf16 %v2062_v46, %v2058_v45 }
 0x7d7   :  { %4139 = vmatprep.subr.bf16.mxu0 %v4138_v43 }
 0x7d9   :  { %4109 = vmatpush1.bf16.msra.mxu1 %v4108_v24 }
 0x7da   :  { %4141 = vmatpush1.bf16.msra.mxu0 %v4140_v50  ;;  %4111 = vmatprep.subr.bf16.mxu1 %v4110_v13 }
 0x7db   :  { %4143 = vmatprep.subr.bf16.mxu0 %v4142_v28 }
 0x7dd   :  { %4113 = vmatpush1.bf16.msra.mxu1 %v4112_v38 }
 0x7de   :  { %4145 = vmatpush1.bf16.msra.mxu0 %v4144_v39  ;;  %4115 = vmatprep.subr.bf16.mxu1 %v4114_v40 }
 0x7df   :  { %4147 = vmatprep.subr.bf16.mxu0 %v4146_v23 }
 0x7e1   :  { %4117 = vmatpush1.bf16.msra.mxu1 %v4116_v47 }
 0x7e2   :  { %4149 = vmatpush1.bf16.msra.mxu0 %v4148_v48 }
 0x7e4   :  { %2150 = vmatmul.mubr.f32.vlgmr.msra.gmra.mrb[18].mxu1 %v4874_v59 }
 0x7e5   :  { %2221 = vmatmul.mubr.f32.vlgmr.msra.gmra.mrb[16].mxu0 %v4874_v59 }
 0x8b7   :  { %v2151_v56 = vpop.f32.mrb[18].mxu1 }
 0x8b8   :  { %v2152_v57 = vadd.f32 %v2151_v56, %v2068_v49  ;;  %v2222_v58 = vpop.f32.mrb[16].mxu0  ;;  %v2153_v60 = vpop.f32.mrb[19].mxu1 }
 0x8b9   :  { %v2223_v61 = vadd.f32 %v2222_v58, %v2076_v51  ;;  %v2154_v63 = vadd.f32 %v2153_v60, %v2072_v54  ;;  %v2224_v2 = vpop.f32.mrb[17].mxu0 }
 0x8ba   :  { %v2231_v5 = vmul.f32 0.70710677, %v2152_v57  ;;  %v2225_v53 = vadd.f32 %v2224_v2, %v2080_v55  ;;  %v2227_v12 = vmul.f32 0.5, %v2152_v57 }
 0x8bb   :  { %v2233_v6 = vmul.f32 0.70710677, %v2223_v61  ;;  %v2232_v7 = vmul.f32 0.70710677, %v2154_v63  ;;  %v2229_v15 = vmul.f32 0.5, %v2223_v61  ;;  %v2228_v17 = vmul.f32 0.5, %v2154_v63 }
 0x8bc   :  { %4372 = verf.f32 %v2231_v5  ;;  %v2234_v35 = vmul.f32 0.70710677, %v2225_v53  ;;  %v2230_v20 = vmul.f32 0.5, %v2225_v53 }
 0x8bd   :  { %4374 = verf.f32 %v2233_v6 }
 0x8be   :  { %4376 = verf.f32 %v2232_v7 }
 0x8bf   :  { %4378 = verf.f32 %v2234_v35 }
 0x8c6   :  { %v4373_v10 = vpop.eup %4372 }
 0x8c7   :  { %v4375_v11 = vpop.eup %4374  ;;  %v2239_v0 = vadd.f32 1.0, %v4373_v10 }
 0x8c8   :  { %v4377_v14 = vpop.eup %4376  ;;  %v2241_v16 = vadd.f32 1.0, %v4375_v11 }
 0x8c9   :  { %v4379_v42 = vpop.eup %4378  ;;  %v4890_v43 = vmul.f32 %v2239_v0, %v2227_v12  ;;  %v2240_v18 = vadd.f32 1.0, %v4377_v14 }
 0x8ca   :  { %v4892_v19 = vmul.f32 %v2241_v16, %v2229_v15  ;;  %v2242_v21 = vadd.f32 1.0, %v4379_v42 }
 0x8cb   :  { %v2244_v24 = vmul.f32 %v2240_v18, %v2228_v17 }
 0x8cc   :  { %v2246_v50 = vmul.f32 %v2242_v21, %v2230_v20 }
 0x8cd   :  { %4566 = dma.done.wait [#allocation5 + $0x1], 8192 }
 0x8ce   :  { %4567 = vsyncadd [#allocation5 + $0x1], 4294959104  ;;  %2378 = vmatprep.mubr.f32.mxu1 %v2244_v24  ;;  %2448 = vmatprep.mubr.f32.mxu0 %v2246_v50  ;;  %v2266_v13 = vld [vmem:[#allocation3 + $0x80] sm:$0xff]  ;;  %v2267_v52 = vld [vmem:[#allocation3 + $0x88] sm:$0xff] }
 0x8cf   :  { %v2250_v26 = vld [vmem:[#allocation3] sm:$0xff]  ;;  %v4150_v27 = vpack.c.bf16 %v2267_v52, %v2266_v13  ;;  %v2251_v28 = vld [vmem:[#allocation3 + $0x8] sm:$0xff]  ;;  %v2268_v39 = vld [vmem:[#allocation3 + $0x90] sm:$0xff] }
 0x8d0   :  { %v2298_v29 = vld [vmem:[#allocation3 + $0x180] sm:$0xff]  ;;  %v2299_v30 = vld [vmem:[#allocation3 + $0x188] sm:$0xff]  ;;  %v4152_v32 = vpack.c.bf16 %v2251_v28, %v2250_v26  ;;  %v2269_v41 = vld [vmem:[#allocation3 + $0x98] sm:$0xff] }
 0x8d1   :  { %v4182_v36 = vpack.c.bf16 %v2299_v30, %v2298_v29  ;;  %v2282_v37 = vld [vmem:[#allocation3 + $0x100] sm:$0xff]  ;;  %v2283_v38 = vld [vmem:[#allocation3 + $0x108] sm:$0xff]  ;;  %4151 = vmatprep.subr.bf16.mxu1 %v4150_v27  ;;  %v2252_v44 = vld [vmem:[#allocation3 + $0x10] sm:$0xff]  ;;  %v4154_v45 = vpack.c.bf16 %v2269_v41, %v2268_v39 }
 0x8d2   :  { %v4184_v40 = vpack.c.bf16 %v2283_v38, %v2282_v37  ;;  %v2253_v23 = vld [vmem:[#allocation3 + $0x18] sm:$0xff]  ;;  %4153 = vmatpush3.bf16.msra.mxu1 %v4152_v32  ;;  %v2300_v47 = vld [vmem:[#allocation3 + $0x190] sm:$0xff]  ;;  %v2270_v55 = vld [vmem:[#allocation3 + $0xa0] sm:$0xff] }
 0x8d3   :  { %4183 = vmatprep.subr.bf16.mxu0 %v4182_v36  ;;  %v4156_v46 = vpack.c.bf16 %v2253_v23, %v2252_v44  ;;  %v2301_v48 = vld [vmem:[#allocation3 + $0x198] sm:$0xff]  ;;  %v2284_v49 = vld [vmem:[#allocation3 + $0x110] sm:$0xff]  ;;  %v2271_v56 = vld [vmem:[#allocation3 + $0xa8] sm:$0xff]  ;;  %4155 = vmatprep.subr.bf16.mxu1 %v4154_v45 }
 0x8d4   :  { %4185 = vmatpush3.bf16.msra.mxu0 %v4184_v40  ;;  %v4186_v51 = vpack.c.bf16 %v2301_v48, %v2300_v47  ;;  %v2285_v54 = vld [vmem:[#allocation3 + $0x118] sm:$0xff]  ;;  %v4158_v58 = vpack.c.bf16 %v2271_v56, %v2270_v55  ;;  %v2254_v60 = vld [vmem:[#allocation3 + $0x20] sm:$0xff]  ;;  %v2255_v61 = vld [vmem:[#allocation3 + $0x28] sm:$0xff] }
 0x8d5   :  { %v4188_v57 = vpack.c.bf16 %v2285_v54, %v2284_v49  ;;  %v2302_v63 = vld [vmem:[#allocation3 + $0x1a0] sm:$0xff]  ;;  %v2303_v2 = vld [vmem:[#allocation3 + $0x1a8] sm:$0xff]  ;;  %v4160_v6 = vpack.c.bf16 %v2255_v61, %v2254_v60  ;;  %v2272_v35 = vld [vmem:[#allocation3 + $0xb0] sm:$0xff] }
 0x8d6   :  { %4187 = vmatprep.subr.bf16.mxu0 %v4186_v51  ;;  %v2286_v5 = vld [vmem:[#allocation3 + $0x120] sm:$0xff]  ;;  %v2287_v53 = vld [vmem:[#allocation3 + $0x128] sm:$0xff]  ;;  %4157 = vmatpush3.bf16.msra.mxu1 %v4156_v46  ;;  %v4190_v7 = vpack.c.bf16 %v2303_v2, %v2302_v63  ;;  %v2273_v10 = vld [vmem:[#allocation3 + $0xb8] sm:$0xff] }
 0x8d7   :  { %v2256_v11 = vld [vmem:[#allocation3 + $0x30] sm:$0xff]  ;;  %4159 = vmatprep.subr.bf16.mxu1 %v4158_v58  ;;  %v4192_v12 = vpack.c.bf16 %v2287_v53, %v2286_v5  ;;  %v4162_v0 = vpack.c.bf16 %v2273_v10, %v2272_v35  ;;  %v2257_v14 = vld [vmem:[#allocation3 + $0x38] sm:$0xff]  ;;  %v2274_v20 = vld [vmem:[#allocation3 + $0xc0] sm:$0xff] }
 0x8d8   :  { %4189 = vmatpush3.bf16.msra.mxu0 %v4188_v57  ;;  %v2304_v15 = vld [vmem:[#allocation3 + $0x1b0] sm:$0xff]  ;;  %v2305_v16 = vld [vmem:[#allocation3 + $0x1b8] sm:$0xff]  ;;  %v2275_v21 = vld [vmem:[#allocation3 + $0xc8] sm:$0xff]  ;;  %v4164_v24 = vpack.c.bf16 %v2257_v14, %v2256_v11 }
 0x8d9   :  { %4191 = vmatprep.subr.bf16.mxu0 %v4190_v7  ;;  %v4194_v42 = vpack.c.bf16 %v2305_v16, %v2304_v15  ;;  %v2288_v17 = vld [vmem:[#allocation3 + $0x130] sm:$0xff]  ;;  %v2289_v18 = vld [vmem:[#allocation3 + $0x138] sm:$0xff]  ;;  %v2306_v50 = vld [vmem:[#allocation3 + $0x1c0] sm:$0xff]  ;;  %v4166_v26 = vpack.c.bf16 %v2275_v21, %v2274_v20 }
 0x8da   :  { %4161 = vmatpush3.bf16.msra.mxu1 %v4160_v6  ;;  %v2307_v13 = vld [vmem:[#allocation3 + $0x1c8] sm:$0xff]  ;;  %v4196_v52 = vpack.c.bf16 %v2289_v18, %v2288_v17  ;;  %v2258_v27 = vld [vmem:[#allocation3 + $0x40] sm:$0xff]  ;;  %v2276_v36 = vld [vmem:[#allocation3 + $0xd0] sm:$0xff] }
 0x8db   :  { %4163 = vmatprep.subr.bf16.mxu1 %v4162_v0  ;;  %v2259_v28 = vld [vmem:[#allocation3 + $0x48] sm:$0xff]  ;;  %v2290_v29 = vld [vmem:[#allocation3 + $0x140] sm:$0xff]  ;;  %v4198_v30 = vpack.c.bf16 %v2307_v13, %v2306_v50  ;;  %v2277_v37 = vld [vmem:[#allocation3 + $0xd8] sm:$0xff] }
 0x8dc   :  { %4193 = vmatpush3.bf16.msra.mxu0 %v4192_v12  ;;  %v2291_v32 = vld [vmem:[#allocation3 + $0x148] sm:$0xff]  ;;  %v2308_v38 = vld [vmem:[#allocation3 + $0x1d0] sm:$0xff]  ;;  %v2309_v39 = vld [vmem:[#allocation3 + $0x1d8] sm:$0xff]  ;;  %v4168_v40 = vpack.c.bf16 %v2259_v28, %v2258_v27  ;;  %v4170_v44 = vpack.c.bf16 %v2277_v37, %v2276_v36 }
 0x8dd   :  { %4195 = vmatprep.subr.bf16.mxu0 %v4194_v42  ;;  %v4200_v41 = vpack.c.bf16 %v2291_v32, %v2290_v29  ;;  %v2260_v23 = vld [vmem:[#allocation3 + $0x50] sm:$0xff]  ;;  %v2261_v45 = vld [vmem:[#allocation3 + $0x58] sm:$0xff]  ;;  %v4202_v47 = vpack.c.bf16 %v2309_v39, %v2308_v38  ;;  %v2278_v49 = vld [vmem:[#allocation3 + $0xe0] sm:$0xff] }
 0x8de   :  { %4165 = vmatpush3.bf16.msra.mxu1 %v4164_v24  ;;  %v2292_v46 = vld [vmem:[#allocation3 + $0x150] sm:$0xff]  ;;  %v2293_v48 = vld [vmem:[#allocation3 + $0x158] sm:$0xff]  ;;  %v2279_v51 = vld [vmem:[#allocation3 + $0xe8] sm:$0xff]  ;;  %v4172_v56 = vpack.c.bf16 %v2261_v45, %v2260_v23 }
 0x8df   :  { %4167 = vmatprep.subr.bf16.mxu1 %v4166_v26  ;;  %v2310_v54 = vld [vmem:[#allocation3 + $0x1e0] sm:$0xff]  ;;  %v2311_v55 = vld [vmem:[#allocation3 + $0x1e8] sm:$0xff]  ;;  %v4204_v57 = vpack.c.bf16 %v2293_v48, %v2292_v46  ;;  %v4174_v58 = vpack.c.bf16 %v2279_v51, %v2278_v49  ;;  %v2280_v53 = vld [vmem:[#allocation3 + $0xf0] sm:$0xff] }
 0x8e0   :  { %4197 = vmatpush3.bf16.msra.mxu0 %v4196_v52  ;;  %v2262_v60 = vld [vmem:[#allocation3 + $0x60] sm:$0xff]  ;;  %v2263_v61 = vld [vmem:[#allocation3 + $0x68] sm:$0xff]  ;;  %v4206_v2 = vpack.c.bf16 %v2311_v55, %v2310_v54  ;;  %v2281_v6 = vld [vmem:[#allocation3 + $0xf8] sm:$0xff] }
 0x8e1   :  { %4199 = vmatprep.subr.bf16.mxu0 %v4198_v30  ;;  %v2294_v63 = vld [vmem:[#allocation3 + $0x160] sm:$0xff]  ;;  %v2295_v5 = vld [vmem:[#allocation3 + $0x168] sm:$0xff]  ;;  %v2312_v7 = vld [vmem:[#allocation3 + $0x1f0] sm:$0xff]  ;;  %v4176_v10 = vpack.c.bf16 %v2263_v61, %v2262_v60  ;;  %v4178_v12 = vpack.c.bf16 %v2281_v6, %v2280_v53 }
 0x8e2   :  { %4169 = vmatpush3.bf16.msra.mxu1 %v4168_v40  ;;  %v2313_v35 = vld [vmem:[#allocation3 + $0x1f8] sm:$0xff]  ;;  %v4208_v11 = vpack.c.bf16 %v2295_v5, %v2294_v63  ;;  %v2264_v0 = vld [vmem:[#allocation3 + $0x70] sm:$0xff] }
 0x8e3   :  { %4171 = vmatprep.subr.bf16.mxu1 %v4170_v44  ;;  %v2265_v14 = vld [vmem:[#allocation3 + $0x78] sm:$0xff]  ;;  %v4210_v15 = vpack.c.bf16 %v2313_v35, %v2312_v7  ;;  %v2296_v16 = vld [vmem:[#allocation3 + $0x170] sm:$0xff] }
 0x8e4   :  { %4201 = vmatpush3.bf16.msra.mxu0 %v4200_v41  ;;  %v2297_v42 = vld [vmem:[#allocation3 + $0x178] sm:$0xff]  ;;  %v4180_v17 = vpack.c.bf16 %v2265_v14, %v2264_v0 }
 0x8e5   :  { %4203 = vmatprep.subr.bf16.mxu0 %v4202_v47  ;;  %v4212_v18 = vpack.c.bf16 %v2297_v42, %v2296_v16 }
 0x8e6   :  { %4173 = vmatpush3.bf16.msra.mxu1 %v4172_v56 }
 0x8e7   :  { %4175 = vmatprep.subr.bf16.mxu1 %v4174_v58 }
 0x8e8   :  { %4205 = vmatpush3.bf16.msra.mxu0 %v4204_v57 }
 0x8e9   :  { %4207 = vmatprep.subr.bf16.mxu0 %v4206_v2 }
 0x8ea   :  { %4177 = vmatpush3.bf16.msra.mxu1 %v4176_v10 }
 0x8eb   :  { %4179 = vmatprep.subr.bf16.mxu1 %v4178_v12 }
 0x8ec   :  { %4209 = vmatpush3.bf16.msra.mxu0 %v4208_v11 }
 0x8ed   :  { %4211 = vmatprep.subr.bf16.mxu0 %v4210_v15 }
 0x8ee   :  { %4181 = vmatpush3.bf16.msra.mxu1 %v4180_v17 }
 0x8f0   :  { %4213 = vmatpush3.bf16.msra.mxu0 %v4212_v18 }
 0x8f1   :  { %2379 = vmatmul.mubr.f32.vlgmr.msra.gmra.mrb[20].mxu1 %v4890_v43 }
 0x8f3   :  { %2449 = vmatmul.mubr.f32.vlgmr.msra.gmra.mrb[18].mxu0 %v4892_v19 }
 0x9c4   :  { %v3504_v20 = vpop.f32.mrb[20].mxu1 }
 0x9c5   :  { %v3505_v21 = vpop.f32.mrb[21].mxu1 }
 0x9c6   :  { %v3539_v24 = vpop.f32.mrb[18].mxu0  ;;  %v3506_v50 = vadd.f32 %v3505_v21, %v3504_v20 }
 0x9c7   :  { %v3540_v13 = vpop.f32.mrb[19].mxu0 }
 0x9c8   :  { %v3541_v52 = vadd.f32 %v3540_v13, %v3539_v24  ;;  %v2381_v26 = vadd.f32 %v3506_v50, %v4692_v1 }
 0x9ca   :  { %v2451_v27 = vadd.f32 %v3541_v52, %v2381_v26 }
 0x9cc   :  { %v2454_v28 = vadd.f32 %v2451_v27, %v4874_v59 }
 0x9ce   :  { %v2455_v29 = vsel %vm1819_vm2, %v2454_v28, 0.0 }
 0x9cf   :  { %2456 = vadd.xlane.f32.xlu0 %v2455_v29 }
 0xa5c   :  { %v2457_v30 = vpop.xlane.xlu0 %2456 }
 0xa5d   :  { %v2458_v32 = vmul.f32 0.0078125, %v2457_v30 }
 0xa5f   :  { %v2459_v36 = vsub.f32 %v2454_v28, %v2458_v32 }
 0xa61   :  { %v2460_v43 = vmul.f32 %v2459_v36, %v2459_v36 }
 0xa63   :  { %v2461_v19 = vsel %vm1819_vm2, %v2460_v43, 0.0 }
 0xa64   :  { %2462 = vadd.xlane.f32.xlu0 %v2461_v19 }
 0xaf1   :  { %v2463_v37 = vpop.xlane.xlu0 %2462 }
 0xaf2   :  { %v2464_v38 = vmul.f32 0.0078125, %v2463_v37 }
 0xaf4   :  { %v2465_v39 = vadd.f32 1e-05, %v2464_v38 }
 0xaf6   :  { %4380 = vrsqrt.f32 %v2465_v39 }
 0xb00   :  { %v4381_v40 = vpop.eup %4380 }
 0xb01   :  { %v2467_v41 = vmul.f32 %v4381_v40, %v2459_v36 }
 0xb03   :  { %v2468_v1 = vmul.f32 %v2467_v41, %v4694_v3 }
 0xb05   :  { %v4902_v59 = vadd.f32 %v2468_v1, %v4696_v4 }
 0xb06   :  { %4568 = dma.done.wait [#allocation5 + $0x2], 16384 }
 0xb07   :  { %4569 = vsyncadd [#allocation5 + $0x2], 4294950912  ;;  %2706 = vmatprep.mubr.f32.mxu1 %v4584_v25  ;;  %2777 = vmatprep.mubr.f32.mxu0 %v4584_v25  ;;  %v2474_v44 = vld [vmem:[#allocation4 + $0x8] sm:$0xff]  ;;  %v2476_v45 = vld [vmem:[#allocation4 + $0x18] sm:$0xff]  ;;  %s4589_s7 = smov [#allocation14]  }
 0xb08   :  { %v2482_v23 = vld [vmem:[#allocation4 + $0x48] sm:$0xff]  ;;  %v2484_v47 = vld [vmem:[#allocation4 + $0x58] sm:$0xff]  ;;  %v2473_v48 = vld [vmem:[#allocation4] sm:$0xff]  ;;  %s2978_s27 = sshll.u32 %s4589_s7, 4  ;;  %s2979_s27 = int_to_ptr.vmem [resolvable:$true] %s2978_s27 }
 0xb09   :  { %v4214_v46 = vpack.c.bf16 %v2482_v23, %v2474_v44  ;;  %v2481_v49 = vld [vmem:[#allocation4 + $0x40] sm:$0xff]  ;;  %v4246_v51 = vpack.c.bf16 %v2484_v47, %v2476_v45  ;;  %v2475_v55 = vld [vmem:[#allocation4 + $0x10] sm:$0xff]  ;;  %v2490_v56 = vld [vmem:[#allocation4 + $0x88] sm:$0xff]  ;;  %s4536_s29 = scalar_lea.vmem %s2979_s27, 256  ;;  %p4541_p1 = scmp.lt.s32.totalorder %s2979_s27, %s2979_s27 }
 0xb0a   :  { %v4216_v54 = vpack.c.bf16 %v2481_v49, %v2473_v48  ;;  %v2483_v3 = vld [vmem:[#allocation4 + $0x50] sm:$0xff]  ;;  %v2498_v57 = vld [vmem:[#allocation4 + $0xc8] sm:$0xff]  ;;  %v2492_v58 = vld [vmem:[#allocation4 + $0x98] sm:$0xff]  ;;  %p4537_p0 = scmp.ne.s32.totalorder %s2979_s27, %s4536_s29  ;;  %p4542_p2 = scmp.lt.s32.totalorder %s4536_s29, %s4536_s29 }
 0xb0b   :  { %4215 = vmatprep.subr.bf16.mxu1 %v4214_v46  ;;  %v4248_v4 = vpack.c.bf16 %v2483_v3, %v2475_v55  ;;  %v2500_v60 = vld [vmem:[#allocation4 + $0xd8] sm:$0xff]  ;;  %4247 = vmatprep.subr.bf16.mxu0 %v4246_v51  ;;  %v4218_v61 = vpack.c.bf16 %v2498_v57, %v2490_v56  ;;  %v2489_v2 = vld [vmem:[#allocation4 + $0x80] sm:$0xff]  ;;  %v2491_v53 = vld [vmem:[#allocation4 + $0x90] sm:$0xff] }
 0xb0c   :  { %4217 = vmatpush1.bf16.msra.mxu1 %v4216_v54  ;;  %v4250_v63 = vpack.c.bf16 %v2500_v60, %v2492_v58  ;;  %v2497_v5 = vld [vmem:[#allocation4 + $0xc0] sm:$0xff]  ;;  %v2499_v7 = vld [vmem:[#allocation4 + $0xd0] sm:$0xff]  ;;  %v2506_v35 = vld [vmem:[#allocation4 + $0x108] sm:$0xff]  ;;  %p4543_p3 = por %p4542_p2, %p4541_p1 }
 0xb0d   :  { %4249 = vmatpush1.bf16.msra.mxu0 %v4248_v4  ;;  %v4220_v6 = vpack.c.bf16 %v2497_v5, %v2489_v2  ;;  %v2514_v10 = vld [vmem:[#allocation4 + $0x148] sm:$0xff]  ;;  %4219 = vmatprep.subr.bf16.mxu1 %v4218_v61  ;;  %v4252_v11 = vpack.c.bf16 %v2499_v7, %v2491_v53  ;;  %v2508_v0 = vld [vmem:[#allocation4 + $0x118] sm:$0xff]  ;;  %v2505_v15 = vld [vmem:[#allocation4 + $0x100] sm:$0xff] }
 0xb0e   :  { %4251 = vmatprep.subr.bf16.mxu0 %v4250_v63  ;;  %v4222_v12 = vpack.c.bf16 %v2514_v10, %v2506_v35  ;;  %v2516_v14 = vld [vmem:[#allocation4 + $0x158] sm:$0xff]  ;;  %v2513_v42 = vld [vmem:[#allocation4 + $0x140] sm:$0xff]  ;;  %v2507_v17 = vld [vmem:[#allocation4 + $0x110] sm:$0xff]  ;;  %p4544_p4 = pnand %p4543_p3, %p4537_p0 }
 0xb0f   :  { %v4254_v16 = vpack.c.bf16 %v2516_v14, %v2508_v0  ;;  %v2515_v18 = vld [vmem:[#allocation4 + $0x150] sm:$0xff]  ;;  %v4224_v20 = vpack.c.bf16 %v2513_v42, %v2505_v15  ;;  %v2522_v21 = vld [vmem:[#allocation4 + $0x188] sm:$0xff]  ;;  %v2524_v50 = vld [vmem:[#allocation4 + $0x198] sm:$0xff] }
 0xb10   :  { %4221 = vmatpush1.bf16.msra.mxu1 %v4220_v6  ;;  %v2530_v24 = vld [vmem:[#allocation4 + $0x1c8] sm:$0xff]  ;;  %v4256_v13 = vpack.c.bf16 %v2515_v18, %v2507_v17  ;;  %v2532_v26 = vld [vmem:[#allocation4 + $0x1d8] sm:$0xff]  ;;  %v2521_v27 = vld [vmem:[#allocation4 + $0x180] sm:$0xff] }
 0xb11   :  { %4253 = vmatpush1.bf16.msra.mxu0 %v4252_v11  ;;  %4223 = vmatprep.subr.bf16.mxu1 %v4222_v12  ;;  %v4226_v52 = vpack.c.bf16 %v2530_v24, %v2522_v21  ;;  %v2529_v28 = vld [vmem:[#allocation4 + $0x1c0] sm:$0xff]  ;;  %v4258_v29 = vpack.c.bf16 %v2532_v26, %v2524_v50  ;;  %v2523_v30 = vld [vmem:[#allocation4 + $0x190] sm:$0xff]  ;;  %v2538_v36 = vld [vmem:[#allocation4 + $0x208] sm:$0xff] }
 0xb12   :  { %4255 = vmatprep.subr.bf16.mxu0 %v4254_v16  ;;  %v2531_v32 = vld [vmem:[#allocation4 + $0x1d0] sm:$0xff]  ;;  %v2546_v43 = vld [vmem:[#allocation4 + $0x248] sm:$0xff]  ;;  %v2540_v19 = vld [vmem:[#allocation4 + $0x218] sm:$0xff]  ;;  %v4228_v38 = vpack.c.bf16 %v2529_v28, %v2521_v27 }
 0xb13   :  { %v2548_v37 = vld [vmem:[#allocation4 + $0x258] sm:$0xff]  ;;  %v4260_v39 = vpack.c.bf16 %v2531_v32, %v2523_v30  ;;  %v4230_v40 = vpack.c.bf16 %v2546_v43, %v2538_v36  ;;  %v2537_v41 = vld [vmem:[#allocation4 + $0x200] sm:$0xff]  ;;  %v2539_v44 = vld [vmem:[#allocation4 + $0x210] sm:$0xff] }
 0xb14   :  { %4225 = vmatpush1.bf16.msra.mxu1 %v4224_v20  ;;  %v2545_v1 = vld [vmem:[#allocation4 + $0x240] sm:$0xff]  ;;  %v4262_v23 = vpack.c.bf16 %v2548_v37, %v2540_v19  ;;  %v2547_v45 = vld [vmem:[#allocation4 + $0x250] sm:$0xff]  ;;  %v2554_v46 = vld [vmem:[#allocation4 + $0x288] sm:$0xff] }
 0xb15   :  { %4257 = vmatpush1.bf16.msra.mxu0 %v4256_v13  ;;  %4227 = vmatprep.subr.bf16.mxu1 %v4226_v52  ;;  %v2562_v47 = vld [vmem:[#allocation4 + $0x2c8] sm:$0xff]  ;;  %v2556_v48 = vld [vmem:[#allocation4 + $0x298] sm:$0xff]  ;;  %v4232_v51 = vpack.c.bf16 %v2545_v1, %v2537_v41  ;;  %v4264_v54 = vpack.c.bf16 %v2547_v45, %v2539_v44  ;;  %v2553_v3 = vld [vmem:[#allocation4 + $0x280] sm:$0xff] }
 0xb16   :  { %4259 = vmatprep.subr.bf16.mxu0 %v4258_v29  ;;  %v2564_v49 = vld [vmem:[#allocation4 + $0x2d8] sm:$0xff]  ;;  %v4234_v55 = vpack.c.bf16 %v2562_v47, %v2554_v46  ;;  %v2561_v56 = vld [vmem:[#allocation4 + $0x2c0] sm:$0xff]  ;;  %v2555_v4 = vld [vmem:[#allocation4 + $0x290] sm:$0xff] }
 0xb17   :  { %v4266_v57 = vpack.c.bf16 %v2564_v49, %v2556_v48  ;;  %v2563_v58 = vld [vmem:[#allocation4 + $0x2d0] sm:$0xff]  ;;  %v2570_v60 = vld [vmem:[#allocation4 + $0x308] sm:$0xff]  ;;  %v2572_v63 = vld [vmem:[#allocation4 + $0x318] sm:$0xff]  ;;  %v4236_v5 = vpack.c.bf16 %v2561_v56, %v2553_v3 }
 0xb18   :  { %4229 = vmatpush1.bf16.msra.mxu1 %v4228_v38  ;;  %v2578_v61 = vld [vmem:[#allocation4 + $0x348] sm:$0xff]  ;;  %v2580_v2 = vld [vmem:[#allocation4 + $0x358] sm:$0xff]  ;;  %v4268_v53 = vpack.c.bf16 %v2563_v58, %v2555_v4  ;;  %v2569_v7 = vld [vmem:[#allocation4 + $0x300] sm:$0xff] }
 0xb19   :  { %4261 = vmatpush1.bf16.msra.mxu0 %v4260_v39  ;;  %4231 = vmatprep.subr.bf16.mxu1 %v4230_v40  ;;  %v4238_v6 = vpack.c.bf16 %v2578_v61, %v2570_v60  ;;  %v2577_v35 = vld [vmem:[#allocation4 + $0x340] sm:$0xff]  ;;  %v2571_v10 = vld [vmem:[#allocation4 + $0x310] sm:$0xff]  ;;  %v4270_v11 = vpack.c.bf16 %v2580_v2, %v2572_v63  ;;  %v2586_v0 = vld [vmem:[#allocation4 + $0x388] sm:$0xff] }
 0xb1a   :  { %4263 = vmatprep.subr.bf16.mxu0 %v4262_v23  ;;  %v2579_v12 = vld [vmem:[#allocation4 + $0x350] sm:$0xff]  ;;  %v2594_v14 = vld [vmem:[#allocation4 + $0x3c8] sm:$0xff]  ;;  %v2588_v15 = vld [vmem:[#allocation4 + $0x398] sm:$0xff]  ;;  %v4240_v42 = vpack.c.bf16 %v2577_v35, %v2569_v7 }
 0xb1b   :  { %v2596_v16 = vld [vmem:[#allocation4 + $0x3d8] sm:$0xff]  ;;  %v4272_v17 = vpack.c.bf16 %v2579_v12, %v2571_v10  ;;  %v4242_v18 = vpack.c.bf16 %v2594_v14, %v2586_v0  ;;  %v2585_v20 = vld [vmem:[#allocation4 + $0x380] sm:$0xff]  ;;  %v2587_v24 = vld [vmem:[#allocation4 + $0x390] sm:$0xff] }
 0xb1c   :  { %4233 = vmatpush1.bf16.msra.mxu1 %v4232_v51  ;;  %v2593_v21 = vld [vmem:[#allocation4 + $0x3c0] sm:$0xff]  ;;  %v4274_v50 = vpack.c.bf16 %v2596_v16, %v2588_v15  ;;  %v2595_v13 = vld [vmem:[#allocation4 + $0x3d0] sm:$0xff]  ;;  %v2478_v52 = vld [vmem:[#allocation4 + $0x28] sm:$0xff] }
 0xb1d   :  { %4265 = vmatpush1.bf16.msra.mxu0 %v4264_v54  ;;  %4235 = vmatprep.subr.bf16.mxu1 %v4234_v55  ;;  %v2486_v26 = vld [vmem:[#allocation4 + $0x68] sm:$0xff]  ;;  %v2480_v27 = vld [vmem:[#allocation4 + $0x38] sm:$0xff]  ;;  %v4244_v29 = vpack.c.bf16 %v2593_v21, %v2585_v20  ;;  %v4276_v30 = vpack.c.bf16 %v2595_v13, %v2587_v24  ;;  %v2477_v36 = vld [vmem:[#allocation4 + $0x20] sm:$0xff] }
 0xb1e   :  { %4267 = vmatprep.subr.bf16.mxu0 %v4266_v57  ;;  %v2488_v28 = vld [vmem:[#allocation4 + $0x78] sm:$0xff]  ;;  %v4278_v32 = vpack.c.bf16 %v2486_v26, %v2478_v52  ;;  %v2485_v43 = vld [vmem:[#allocation4 + $0x60] sm:$0xff]  ;;  %v2479_v19 = vld [vmem:[#allocation4 + $0x30] sm:$0xff] }
 0xb1f   :  { %v4310_v37 = vpack.c.bf16 %v2488_v28, %v2480_v27  ;;  %v2487_v38 = vld [vmem:[#allocation4 + $0x70] sm:$0xff]  ;;  %v2494_v39 = vld [vmem:[#allocation4 + $0xa8] sm:$0xff]  ;;  %v2496_v41 = vld [vmem:[#allocation4 + $0xb8] sm:$0xff]  ;;  %v4280_v44 = vpack.c.bf16 %v2485_v43, %v2477_v36 }
 0xb20   :  { %4237 = vmatpush1.bf16.msra.mxu1 %v4236_v5  ;;  %v2502_v40 = vld [vmem:[#allocation4 + $0xe8] sm:$0xff]  ;;  %v2504_v1 = vld [vmem:[#allocation4 + $0xf8] sm:$0xff]  ;;  %v4312_v23 = vpack.c.bf16 %v2487_v38, %v2479_v19  ;;  %v2493_v46 = vld [vmem:[#allocation4 + $0xa0] sm:$0xff] }
 0xb21   :  { %4269 = vmatpush1.bf16.msra.mxu0 %v4268_v53  ;;  %4239 = vmatprep.subr.bf16.mxu1 %v4238_v6  ;;  %v4282_v45 = vpack.c.bf16 %v2502_v40, %v2494_v39  ;;  %v2501_v47 = vld [vmem:[#allocation4 + $0xe0] sm:$0xff]  ;;  %v2495_v48 = vld [vmem:[#allocation4 + $0xb0] sm:$0xff]  ;;  %v4314_v49 = vpack.c.bf16 %v2504_v1, %v2496_v41  ;;  %v2510_v54 = vld [vmem:[#allocation4 + $0x128] sm:$0xff] }
 0xb22   :  { %4271 = vmatprep.subr.bf16.mxu0 %v4270_v11  ;;  %v2503_v51 = vld [vmem:[#allocation4 + $0xf0] sm:$0xff]  ;;  %v2518_v55 = vld [vmem:[#allocation4 + $0x168] sm:$0xff]  ;;  %v2512_v3 = vld [vmem:[#allocation4 + $0x138] sm:$0xff]  ;;  %v4284_v4 = vpack.c.bf16 %v2501_v47, %v2493_v46 }
 0xb23   :  { %v2520_v56 = vld [vmem:[#allocation4 + $0x178] sm:$0xff]  ;;  %v4316_v57 = vpack.c.bf16 %v2503_v51, %v2495_v48  ;;  %v4286_v58 = vpack.c.bf16 %v2518_v55, %v2510_v54  ;;  %v2509_v60 = vld [vmem:[#allocation4 + $0x120] sm:$0xff]  ;;  %v2511_v63 = vld [vmem:[#allocation4 + $0x130] sm:$0xff] }
 0xb24   :  { %4241 = vmatpush1.bf16.msra.mxu1 %v4240_v42  ;;  %v2517_v61 = vld [vmem:[#allocation4 + $0x160] sm:$0xff]  ;;  %v4318_v2 = vpack.c.bf16 %v2520_v56, %v2512_v3  ;;  %v2519_v5 = vld [vmem:[#allocation4 + $0x170] sm:$0xff]  ;;  %v2526_v53 = vld [vmem:[#allocation4 + $0x1a8] sm:$0xff] }
 0xb25   :  { %4273 = vmatpush1.bf16.msra.mxu0 %v4272_v17  ;;  %4243 = vmatprep.subr.bf16.mxu1 %v4242_v18  ;;  %v2534_v6 = vld [vmem:[#allocation4 + $0x1e8] sm:$0xff]  ;;  %v2528_v7 = vld [vmem:[#allocation4 + $0x1b8] sm:$0xff]  ;;  %v4288_v10 = vpack.c.bf16 %v2517_v61, %v2509_v60  ;;  %v4320_v11 = vpack.c.bf16 %v2519_v5, %v2511_v63  ;;  %v2525_v0 = vld [vmem:[#allocation4 + $0x1a0] sm:$0xff] }
 0xb26   :  { %4275 = vmatprep.subr.bf16.mxu0 %v4274_v50  ;;  %v2536_v35 = vld [vmem:[#allocation4 + $0x1f8] sm:$0xff]  ;;  %v4290_v12 = vpack.c.bf16 %v2534_v6, %v2526_v53  ;;  %v2533_v14 = vld [vmem:[#allocation4 + $0x1e0] sm:$0xff]  ;;  %v2527_v15 = vld [vmem:[#allocation4 + $0x1b0] sm:$0xff] }
 0xb27   :  { %v4322_v16 = vpack.c.bf16 %v2536_v35, %v2528_v7  ;;  %v2535_v42 = vld [vmem:[#allocation4 + $0x1f0] sm:$0xff]  ;;  %v2542_v17 = vld [vmem:[#allocation4 + $0x228] sm:$0xff]  ;;  %v2544_v20 = vld [vmem:[#allocation4 + $0x238] sm:$0xff]  ;;  %v4292_v24 = vpack.c.bf16 %v2533_v14, %v2525_v0  ;;  %v2613_v0 = vrot.slane %v4698_v9, %v4817_v34  ;;  %v2609_v14 = vrot.slane %v4698_v9, %v4811_v31 }
 0xb28   :  { %4245 = vmatpush1.bf16.msra.mxu1 %v4244_v29  ;;  %v2550_v18 = vld [vmem:[#allocation4 + $0x268] sm:$0xff]  ;;  %v2552_v21 = vld [vmem:[#allocation4 + $0x278] sm:$0xff]  ;;  %v2541_v13 = vld [vmem:[#allocation4 + $0x220] sm:$0xff]  ;;  %v2620_v31 = vsub.s32 4, %v4701_v8 }
 0xb29   :  { %4277 = vmatpush1.bf16.msra.mxu0 %v4276_v30  ;;  %4279 = vmatprep.subr.bf16.mxu1 %v4278_v32  ;;  %v4294_v50 = vpack.c.bf16 %v2550_v18, %v2542_v17  ;;  %v2549_v52 = vld [vmem:[#allocation4 + $0x260] sm:$0xff]  ;;  %v2543_v26 = vld [vmem:[#allocation4 + $0x230] sm:$0xff]  ;;  %v4326_v27 = vpack.c.bf16 %v2552_v21, %v2544_v20  ;;  %v2558_v29 = vld [vmem:[#allocation4 + $0x2a8] sm:$0xff] }
 0xb2a   :  { %4311 = vmatprep.subr.bf16.mxu0 %v4310_v37  ;;  %v2551_v28 = vld [vmem:[#allocation4 + $0x270] sm:$0xff]  ;;  %v2566_v30 = vld [vmem:[#allocation4 + $0x2e8] sm:$0xff]  ;;  %v2560_v32 = vld [vmem:[#allocation4 + $0x2b8] sm:$0xff]  ;;  %v4296_v43 = vpack.c.bf16 %v2549_v52, %v2541_v13  ;;  %v2624_v52 = vsub.s32 5, %v4701_v8 }
 0xb2b   :  { %2707 = vmatmul.mubr.f32.vlgmr.msra.gmra.mrb[22].mxu1 %v4902_v59  ;;  %v2568_v36 = vld [vmem:[#allocation4 + $0x2f8] sm:$0xff]  ;;  %v4328_v19 = vpack.c.bf16 %v2551_v28, %v2543_v26  ;;  %v4298_v37 = vpack.c.bf16 %v2566_v30, %v2558_v29  ;;  %v2557_v38 = vld [vmem:[#allocation4 + $0x2a0] sm:$0xff]  ;;  %v2559_v40 = vld [vmem:[#allocation4 + $0x2b0] sm:$0xff]  ;;  %v2632_v26 = vsub.s32 7, %v4701_v8 }
 0xb2c   :  { %2778 = vmatmul.mubr.f32.vlgmr.msra.gmra.mrb[20].mxu0 %v4902_v59  ;;  %4281 = vmatpush1.bf16.msra.mxu1 %v4280_v44  ;;  %v2565_v39 = vld [vmem:[#allocation4 + $0x2e0] sm:$0xff]  ;;  %v4330_v41 = vpack.c.bf16 %v2568_v36, %v2560_v32  ;;  %v2567_v1 = vld [vmem:[#allocation4 + $0x2f0] sm:$0xff]  ;;  %v2574_v44 = vld [vmem:[#allocation4 + $0x328] sm:$0xff]  ;;  %v2625_v29 = vrot.slane %v4698_v9, %v2624_v52 }
 0xb2d   :  { %4313 = vmatpush1.bf16.msra.mxu0 %v4312_v23  ;;  %4283 = vmatprep.subr.bf16.mxu1 %v4282_v45  ;;  %v2582_v23 = vld [vmem:[#allocation4 + $0x368] sm:$0xff]  ;;  %v2576_v45 = vld [vmem:[#allocation4 + $0x338] sm:$0xff]  ;;  %v4300_v47 = vpack.c.bf16 %v2565_v39, %v2557_v38  ;;  %v4332_v48 = vpack.c.bf16 %v2567_v1, %v2559_v40  ;;  %v2573_v51 = vld [vmem:[#allocation4 + $0x320] sm:$0xff]  ;;  %v2633_v30 = vrot.slane %v4698_v9, %v2632_v26 }
 0xb2e   :  { %4315 = vmatprep.subr.bf16.mxu0 %v4314_v49  ;;  %2848 = vmatprep.mubr.f32.mxu1 %v4584_v25  ;;  %v2584_v46 = vld [vmem:[#allocation4 + $0x378] sm:$0xff]  ;;  %v4302_v49 = vpack.c.bf16 %v2582_v23, %v2574_v44  ;;  %v2581_v54 = vld [vmem:[#allocation4 + $0x360] sm:$0xff]  ;;  %v2575_v55 = vld [vmem:[#allocation4 + $0x330] sm:$0xff] }
 0xb2f   :  { %2919 = vmatprep.mubr.f32.mxu0 %v4584_v25  ;;  %v4324_v25 = vpack.c.bf16 %v2535_v42, %v2527_v15  ;;  %v4334_v3 = vpack.c.bf16 %v2584_v46, %v2576_v45  ;;  %v2583_v56 = vld [vmem:[#allocation4 + $0x370] sm:$0xff]  ;;  %v2600_v60 = vld [vmem:[#allocation4 + $0x3f8] sm:$0xff]  ;;  %v4304_v61 = vpack.c.bf16 %v2581_v54, %v2573_v51  ;;  %v2589_v5 = vld [vmem:[#allocation4 + $0x3a0] sm:$0xff]  ;;  %v2617_v15 = vrot.slane %v4698_v9, %v2079_v62 }
 0xb30   :  { %4285 = vmatpush1.bf16.msra.mxu1 %v4284_v4  ;;  %v2590_v4 = vld [vmem:[#allocation4 + $0x3a8] sm:$0xff]  ;;  %v4336_v63 = vpack.c.bf16 %v2583_v56, %v2575_v55  ;;  %v2597_v53 = vld [vmem:[#allocation4 + $0x3e0] sm:$0xff]  ;;  %v2591_v7 = vld [vmem:[#allocation4 + $0x3b0] sm:$0xff]  ;;  %v2628_v62 = vsub.s32 6, %v4701_v8 }
 0xb31   :  { %4317 = vmatpush1.bf16.msra.mxu0 %v4316_v57  ;;  %4287 = vmatprep.subr.bf16.mxu1 %v4286_v58  ;;  %v2598_v57 = vld [vmem:[#allocation4 + $0x3e8] sm:$0xff]  ;;  %v2592_v58 = vld [vmem:[#allocation4 + $0x3b8] sm:$0xff]  ;;  %v2599_v35 = vld [vmem:[#allocation4 + $0x3f0] sm:$0xff] }
 0xb32   :  { %4319 = vmatprep.subr.bf16.mxu0 %v4318_v2  ;;  %v4306_v2 = vpack.c.bf16 %v2598_v57, %v2590_v4  ;;  %v4338_v6 = vpack.c.bf16 %v2600_v60, %v2592_v58  ;;  %v2629_v28 = vrot.slane %v4698_v9, %v2628_v62 }
 0xb34   :  { %4289 = vmatpush1.bf16.msra.mxu1 %v4288_v10  ;;  %v4308_v10 = vpack.c.bf16 %v2597_v53, %v2589_v5 }
 0xb35   :  { %4321 = vmatpush1.bf16.msra.mxu0 %v4320_v11  ;;  %4291 = vmatprep.subr.bf16.mxu1 %v4290_v12  ;;  %v4340_v11 = vpack.c.bf16 %v2599_v35, %v2591_v7  ;;  %v2605_v12 = vrot.slane %v4698_v9, %v4814_v33 }
 0xb36   :  { %4323 = vmatprep.subr.bf16.mxu0 %v4322_v16 }
 0xb38   :  { %4293 = vmatpush1.bf16.msra.mxu1 %v4292_v24 }
 0xb39   :  { %4325 = vmatpush1.bf16.msra.mxu0 %v4324_v25  ;;  %4295 = vmatprep.subr.bf16.mxu1 %v4294_v50 }
 0xb3a   :  { %4327 = vmatprep.subr.bf16.mxu0 %v4326_v27  ;;  %v2621_v27 = vrot.slane %v4698_v9, %v2620_v31 }
 0xb3c   :  { %4297 = vmatpush1.bf16.msra.mxu1 %v4296_v43 }
 0xb3d   :  { %4329 = vmatpush1.bf16.msra.mxu0 %v4328_v19  ;;  %4299 = vmatprep.subr.bf16.mxu1 %v4298_v37 }
 0xb3e   :  { %4331 = vmatprep.subr.bf16.mxu0 %v4330_v41 }
 0xb40   :  { %4301 = vmatpush1.bf16.msra.mxu1 %v4300_v47 }
 0xb41   :  { %4333 = vmatpush1.bf16.msra.mxu0 %v4332_v48  ;;  %4303 = vmatprep.subr.bf16.mxu1 %v4302_v49 }
 0xb42   :  { %4335 = vmatprep.subr.bf16.mxu0 %v4334_v3 }
 0xb44   :  { %4305 = vmatpush1.bf16.msra.mxu1 %v4304_v61 }
 0xb45   :  { %4337 = vmatpush1.bf16.msra.mxu0 %v4336_v63  ;;  %4307 = vmatprep.subr.bf16.mxu1 %v4306_v2 }
 0xb46   :  { %4339 = vmatprep.subr.bf16.mxu0 %v4338_v6 }
 0xb48   :  { %4309 = vmatpush1.bf16.msra.mxu1 %v4308_v10 }
 0xb49   :  { %4341 = vmatpush1.bf16.msra.mxu0 %v4340_v11 }
 0xb4b   :  { %2849 = vmatmul.mubr.f32.vlgmr.msra.gmra.mrb[24].mxu1 %v4902_v59 }
 0xb4c   :  { %2920 = vmatmul.mubr.f32.vlgmr.msra.gmra.mrb[22].mxu0 %v4902_v59 }
 0xbfe   :  { %v2708_v16 = vpop.f32.mrb[22].mxu1 }
 0xbff   :  { %v2709_v42 = vadd.f32 %v2708_v16, %v2605_v12  ;;  %v2779_v17 = vpop.f32.mrb[20].mxu0  ;;  %v2710_v18 = vpop.f32.mrb[23].mxu1 }
 0xc00   :  { %v2780_v20 = vadd.f32 %v2779_v17, %v2613_v0  ;;  %v2711_v21 = vadd.f32 %v2710_v18, %v2609_v14  ;;  %v2781_v59 = vpop.f32.mrb[21].mxu0 }
 0xc01   :  { %v2782_v24 = vadd.f32 %v2781_v59, %v2617_v15 }
 0xc02   :  { %v2934_v25 = vcombine.low %v2709_v42, %v2711_v21 }
 0xc03   :  { %v2935_v33 = vcombine.low %v2780_v20, %v2782_v24 }
 0xc04   :  { %v2942_v50 = vrot.slane %v2934_v25, %v4704_v22 }
 0xc05   :  { %v2949_v34 = vrot.slane %v2935_v33, %v4704_v22 }
 0xc07   :  { %v2950_v13 = vcombine.low %v2942_v50, %v2949_v34 }
 0xc09   :  { %2970 = vst [vmem:[#allocation14] sm:$0xff] %v2950_v13 }
 0xc1e   :  { %v2850_v32 = vpop.f32.mrb[24].mxu1 }
 0xc1f   :  { %v2851_v36 = vadd.f32 %v2850_v32, %v2621_v27  ;;  %v2921_v43 = vpop.f32.mrb[22].mxu0  ;;  %v2852_v19 = vpop.f32.mrb[25].mxu1 }
 0xc20   :  { %v2922_v37 = vadd.f32 %v2921_v43, %v2629_v28  ;;  %v2853_v38 = vadd.f32 %v2852_v19, %v2625_v29  ;;  %v2923_v39 = vpop.f32.mrb[23].mxu0 }
 0xc21   :  { %v2924_v40 = vadd.f32 %v2923_v39, %v2633_v30 }
 0xc22   :  { %v2951_v41 = vcombine.low %v2851_v36, %v2853_v38 }
 0xc23   :  { %v2952_v1 = vcombine.low %v2922_v37, %v2924_v40 }
 0xc24   :  { %v2959_v8 = vrot.slane %v2951_v41, %v4704_v22 }
 0xc25   :  { %v2966_v44 = vrot.slane %v2952_v1, %v4704_v22 }
 0xc27   :  { %v2967_v23 = vcombine.low %v2959_v8, %v2966_v44 }
 0xc29   :  { %2971 = vst [vmem:[#allocation14 + $0x8] sm:$0xff] %v2967_v23 }
 0xc2a   :  { %4547 = shalt.err (!%p4544_p4)
}
 0xc2b   :  { %s4548_s3 = scalar_lea.hbm %s4953_s8, 256 }
 0xc2c   :  { %p4549_p5 = scmp.ne.s32.totalorder %s4953_s8, %s4548_s3  ;;  %p4552_p6 = scmp.lt.u32.totalorder %s4548_s3, %s4953_s8 }
 0xc2e   :  { %p4554_p7 = pnand %p4552_p6, %p4549_p5 }
 0xc30   :  { %4557 = shalt.err (!%p4554_p7)
}
 0xc31   :  { %2981 = dma.vmem_to_hbm [thread:$0]  %s2979_s27, 256, %s4953_s8, [#allocation8]  }
 0xc32   :  { %4570 = dma.done.wait [#allocation8], 256  }
 0xc33   :  { %4571 = vsyncadd [#allocation8], 4294967040 }
 0xc34   :  { %2985 = vsyncpa [#allocation7], 1 }
 0xc35   :  { %2986 = vsyncpa [#allocation10], 1 }
 0xc36   :  { %2987 = vsyncpa [#allocation13], 1 }
 0xc37   :  { %2988 = vsyncpa [#allocation8], 1 }
 0xc38   :  { %2989 = vsyncmov [#allocation5] }
 0xc3b   :  { %s2990_s13 = vpop.sfrf %2989 }
 0xc3c   :  { %p3011_p8 = scmp.ne.s32.totalorder %s2990_s13, 0 }
 0xc3e   :  { %2994 = shalt.err (%p3011_p8)  }
 0xc3f   :  { %2996 = vsyncmov [#allocation5 + $0x1] }
 0xc42   :  { %s2997_s14 = vpop.sfrf %2996 }
 0xc43   :  { %p3012_p9 = scmp.ne.s32.totalorder %s2997_s14, 0 }
 0xc45   :  { %3001 = shalt.err (%p3012_p9)  }
 0xc46   :  { %3003 = vsyncmov [#allocation5 + $0x2] }
 0xc49   :  { %s3004_s15 = vpop.sfrf %3003 }
 0xc4a   :  { %p3013_p10 = scmp.ne.s32.totalorder %s3004_s15, 0 }
 0xc4c   :  { %3008 = shalt.err (%p3013_p10)  }

</bundles_post_ra>
